<compile_context>
chip_gen: v5e
topology: v5e:2x2
jax: 0.10.0
libtpu: 0.0.40
codegen_flags: <defaults>
</compile_context>

<pallas_src>
import jax
import jax.numpy as jnp
from jax.experimental import pallas as pl
from jax.experimental.pallas import tpu as pltpu

C_IN, C_OUT, KH, KW = 3, 320, 3, 256
CW = C_IN * KW           # 768 = channel-major row width (lane-aligned: 6 * 128)
NEG_SLOPE = 0.01
BN_EPS = 1e-5


def slicenet_kernel(x_ref, w_ref, shift_ref, rw_ref, out_ref):
    # x_ref:    [BN, H+2, CW]   bf16  (zero-padded along H, channel-major rows)
    # w_ref:    [KH, CW, COUT]  bf16  (BN scale folded in)
    # shift_ref:[1, COUT]       f32   (conv bias * scale + BN shift)
    # rw_ref:   [1, H, COUT]    f32   (even-row / mean weights)
    # out_ref:  [BN, COUT]      f32
    bn, hp2, cw = x_ref.shape
    h = hp2 - 2
    cout = out_ref.shape[-1]

    # Conv as 3 shifted dots: one [BN*H, CW] @ [CW, COUT] MXU matmul per kernel row.
    acc = jnp.zeros((bn * h, cout), jnp.float32)
    for kh in range(KH):                                    # static unroll
        xs = x_ref[:, kh:kh + h, :].reshape(bn * h, cw)     # bf16 operands
        acc = acc + jnp.dot(xs, w_ref[kh], preferred_element_type=jnp.float32)

    acc = acc + shift_ref[...]                              # folded conv bias + BN (eval stats)
    acc = jnp.where(acc > 0, acc, NEG_SLOPE * acc)          # LeakyReLU(0.01)

    # MaxPool2d((1,3), stride=2, pad=(0,1)) on a width-1 map == even-row subsample along H;
    # AdaptiveAvgPool2d((1,1)) == mean over kept rows -> one weighted reduce over H.
    acc3 = acc.reshape(bn, h, cout)
    out_ref[...] = jnp.sum(acc3 * rw_ref[...], axis=1)


def slicenet_forward(x, conv_w, conv_b, gamma, beta, run_mean, run_var, *, target_rows=256):
    # target_rows ~ rows fed to the MXU per grid step (256-512 on v6e/v7x, 128-256 on v5e).
    N, C, H, W = x.shape
    assert C == C_IN and W == KW, "SliceNet expects C=3, W=256 input"

    # Fold inference BatchNorm into the conv weights and a single shift vector.
    inv_std = 1.0 / jnp.sqrt(run_var.astype(jnp.float32) + BN_EPS)
    scale = (gamma * inv_std).astype(jnp.float32)                               # [320]
    shift = (conv_b * scale + beta - run_mean * scale).reshape(1, C_OUT).astype(jnp.float32)

    # Weight as [KH, C*W, C_OUT] with BN scale folded in; bf16 for single-pass MXU.
    w3 = conv_w.astype(jnp.float32).transpose(2, 1, 3, 0).reshape(KH, CW, C_OUT)
    w3 = (w3 * scale[None, None, :]).astype(jnp.bfloat16)                       # ~1.5 MB resident

    # Un-im2col'd activation: pad H by 1 each side, channel-major rows, bf16.
    xp = jnp.pad(x.astype(jnp.float32), ((0, 0), (0, 0), (1, 1), (0, 0)))
    xs = xp.transpose(0, 2, 1, 3).reshape(N, H + 2, CW).astype(jnp.bfloat16)

    # Row weights implementing even-row subsample + global mean (exact f32 epilogue).
    n_kept = (H + 1) // 2
    rw = jnp.where((jnp.arange(H) % 2) == 0, 1.0 / n_kept, 0.0).astype(jnp.float32)
    rw = jnp.broadcast_to(rw[None, :, None], (1, H, C_OUT)).astype(jnp.float32)

    # Batch samples so each grid step is an M-tile of ~target_rows rows.
    bn_tile = max(1, target_rows // max(H, 1))
    if bn_tile >= N:
        bn_tile = N                      # single block (block dim == full dim is always legal)
    else:
        bn_tile = max(8, (bn_tile // 8) * 8)   # keep multi-block output sublane-aligned
    n_pad = (-N) % bn_tile
    if n_pad:
        xs = jnp.pad(xs, ((0, n_pad), (0, 0), (0, 0)))
    n_blocks = (N + n_pad) // bn_tile

    # VMEM budget (bf16): weight 2x1.5 MB + input 2 x bn_tile*(H+2)*768*2 B + small epilogue
    # operands -- comfortably under the scoped default on v5e/v6e/v7x for target_rows<=512.
    out = pl.pallas_call(
        slicenet_kernel,
        out_shape=jax.ShapeDtypeStruct((N + n_pad, C_OUT), jnp.float32),
        grid_spec=pltpu.PrefetchScalarGridSpec(
            num_scalar_prefetch=0,
            grid=(n_blocks,),
            in_specs=[
                pl.BlockSpec((bn_tile, H + 2, CW), lambda i: (i, 0, 0)),   # activation slab
                pl.BlockSpec((KH, CW, C_OUT), lambda i: (0, 0, 0)),        # folded weight, resident
                pl.BlockSpec((1, C_OUT), lambda i: (0, 0)),                # folded shift
                pl.BlockSpec((1, H, C_OUT), lambda i: (0, 0, 0)),          # pooling row weights
            ],
            out_specs=pl.BlockSpec((bn_tile, C_OUT), lambda i: (i, 0)),    # lane-dense 2-D output
        ),
        compiler_params=pltpu.CompilerParams(dimension_semantics=("parallel",)),
    )(xs, w3, shift, rw)
    return out[:N]


def reference_forward(x, conv_w, conv_b, gamma, beta, run_mean, run_var):
    # Pure-JAX f32 reference with the module's semantics.
    N, C, H, W = x.shape
    xp = jnp.pad(x, ((0, 0), (0, 0), (1, 1), (0, 0)))
    patches = jnp.stack([xp[:, :, h:h + KH, :] for h in range(H)], axis=1).reshape(N, H, -1)
    conv = jnp.einsum('nhk,ok->nho', patches, conv_w.reshape(C_OUT, -1),
                      precision=jax.lax.Precision.HIGHEST) + conv_b
    bn = (conv - run_mean) / jnp.sqrt(run_var + BN_EPS) * gamma + beta
    act = jnp.where(bn > 0, bn, NEG_SLOPE * bn)
    pooled = act[:, 0::2, :]          # maxpool: W identity, stride-2 along H
    return pooled.mean(axis=1)        # adaptive avg pool (1,1) + flatten -> [N, 320]


if __name__ == "__main__":
    key = jax.random.PRNGKey(0)
    k_x, k_w, k_b, k_g, k_be, k_m, k_v = jax.random.split(key, 7)

    N, H = 2, 8
    x = jax.random.normal(k_x, (N, C_IN, H, KW), dtype=jnp.float32)

    # Deterministic synthetic parameters (shapes from the module's __init__).
    conv_w = 0.02 * jax.random.normal(k_w, (C_OUT, C_IN, KH, KW), dtype=jnp.float32)
    conv_b = 0.1 * jax.random.normal(k_b, (C_OUT,), dtype=jnp.float32)
    gamma = 1.0 + 0.1 * jax.random.normal(k_g, (C_OUT,), dtype=jnp.float32)
    beta = 0.1 * jax.random.normal(k_be, (C_OUT,), dtype=jnp.float32)
    run_mean = 0.05 * jax.random.normal(k_m, (C_OUT,), dtype=jnp.float32)
    run_var = jax.random.uniform(k_v, (C_OUT,), minval=0.5, maxval=1.5, dtype=jnp.float32)

    out = slicenet_forward(x, conv_w, conv_b, gamma, beta, run_mean, run_var)
    out = jax.block_until_ready(out)

    ref = reference_forward(x, conv_w, conv_b, gamma, beta, run_mean, run_var)
    assert out.shape == (N, C_OUT), out.shape
    # bf16 MXU operands with f32 accumulation -> relaxed tolerance vs the f32 reference.
    assert jnp.allclose(out, ref, rtol=2e-2, atol=2e-2), float(jnp.max(jnp.abs(out - ref)))

    print("KERNEL_OK")
</pallas_src>

<mosaic_0001>
module attributes {stable_mosaic.version = 11 : i64} {
  func.func @slicenet_kernel(%arg0: i32, %arg1: memref<2x10x768xbf16, #tpu.memory_space<vmem>>, %arg2: memref<3x768x320xbf16, #tpu.memory_space<vmem>>, %arg3: memref<1x320xf32, #tpu.memory_space<vmem>>, %arg4: memref<1x8x320xf32, #tpu.memory_space<vmem>>, %arg5: memref<2x320xf32, #tpu.memory_space<vmem>>) attributes {dimension_semantics = [#tpu.dimension_semantics<parallel>], iteration_bounds = array<i64: 1>, scalar_prefetch = 0 : i64, scratch_operands = 0 : i64, tpu.core_type = #tpu.core_type<tc>, window_params = [{transform_indices = @transform_0, window_bounds = array<i64: 2, 10, 768>}, {pipeline_mode = #tpu.pipeline_mode<synchronous>, transform_indices = @transform_1, window_bounds = array<i64: 3, 768, 320>}, {pipeline_mode = #tpu.pipeline_mode<synchronous>, transform_indices = @transform_2, window_bounds = array<i64: 1, 320>}, {pipeline_mode = #tpu.pipeline_mode<synchronous>, transform_indices = @transform_3, window_bounds = array<i64: 1, 8, 320>}, {transform_indices = @transform_4, window_bounds = array<i64: 2, 320>}]} {
    %cst = arith.constant 0.000000e+00 : f32
    %0 = vector.broadcast %cst : f32 to vector<16x320xf32>
    %c0 = arith.constant 0 : index
    %c0_0 = arith.constant 0 : index
    %c0_1 = arith.constant 0 : index
    %1 = vector.load %arg1[%c0, %c0_0, %c0_1] : memref<2x10x768xbf16, #tpu.memory_space<vmem>>, vector<2x8x768xbf16>
    %2 = vector.shape_cast %1 : vector<2x8x768xbf16> to vector<16x768xbf16>
    %c0_2 = arith.constant 0 : index
    %c0_3 = arith.constant 0 : index
    %c0_4 = arith.constant 0 : index
    %3 = vector.load %arg2[%c0_2, %c0_3, %c0_4] : memref<3x768x320xbf16, #tpu.memory_space<vmem>>, vector<1x768x320xbf16>
    %4 = vector.shape_cast %3 : vector<1x768x320xbf16> to vector<768x320xbf16>
    %cst_5 = arith.constant dense<0.000000e+00> : vector<16x320xf32>
    %5 = tpu.matmul %2, %4, %cst_5 {dimension_numbers = #tpu.dot_dimension_numbers<[1], [0], [0], [1], [0, 0, 1, 1], [], []>} : vector<16x768xbf16>, vector<768x320xbf16>, vector<16x320xf32> -> vector<16x320xf32>
    %6 = arith.addf %0, %5 : vector<16x320xf32>
    %c0_6 = arith.constant 0 : index
    %c1 = arith.constant 1 : index
    %c0_7 = arith.constant 0 : index
    %7 = vector.load %arg1[%c0_6, %c1, %c0_7] : memref<2x10x768xbf16, #tpu.memory_space<vmem>>, vector<2x8x768xbf16>
    %8 = vector.shape_cast %7 : vector<2x8x768xbf16> to vector<16x768xbf16>
    %c1_8 = arith.constant 1 : index
    %c0_9 = arith.constant 0 : index
    %c0_10 = arith.constant 0 : index
    %9 = vector.load %arg2[%c1_8, %c0_9, %c0_10] : memref<3x768x320xbf16, #tpu.memory_space<vmem>>, vector<1x768x320xbf16>
    %10 = vector.shape_cast %9 : vector<1x768x320xbf16> to vector<768x320xbf16>
    %cst_11 = arith.constant dense<0.000000e+00> : vector<16x320xf32>
    %11 = tpu.matmul %8, %10, %cst_11 {dimension_numbers = #tpu.dot_dimension_numbers<[1], [0], [0], [1], [0, 0, 1, 1], [], []>} : vector<16x768xbf16>, vector<768x320xbf16>, vector<16x320xf32> -> vector<16x320xf32>
    %12 = arith.addf %6, %11 : vector<16x320xf32>
    %c0_12 = arith.constant 0 : index
    %c2 = arith.constant 2 : index
    %c0_13 = arith.constant 0 : index
    %13 = vector.load %arg1[%c0_12, %c2, %c0_13] : memref<2x10x768xbf16, #tpu.memory_space<vmem>>, vector<2x8x768xbf16>
    %14 = vector.shape_cast %13 : vector<2x8x768xbf16> to vector<16x768xbf16>
    %c2_14 = arith.constant 2 : index
    %c0_15 = arith.constant 0 : index
    %c0_16 = arith.constant 0 : index
    %15 = vector.load %arg2[%c2_14, %c0_15, %c0_16] : memref<3x768x320xbf16, #tpu.memory_space<vmem>>, vector<1x768x320xbf16>
    %16 = vector.shape_cast %15 : vector<1x768x320xbf16> to vector<768x320xbf16>
    %cst_17 = arith.constant dense<0.000000e+00> : vector<16x320xf32>
    %17 = tpu.matmul %14, %16, %cst_17 {dimension_numbers = #tpu.dot_dimension_numbers<[1], [0], [0], [1], [0, 0, 1, 1], [], []>} : vector<16x768xbf16>, vector<768x320xbf16>, vector<16x320xf32> -> vector<16x320xf32>
    %18 = arith.addf %12, %17 : vector<16x320xf32>
    %c0_18 = arith.constant 0 : index
    %c0_19 = arith.constant 0 : index
    %19 = vector.load %arg3[%c0_18, %c0_19] : memref<1x320xf32, #tpu.memory_space<vmem>>, vector<1x320xf32>
    %20 = vector.broadcast %19 : vector<1x320xf32> to vector<16x320xf32>
    %21 = arith.addf %18, %20 : vector<16x320xf32>
    %cst_20 = arith.constant 0.000000e+00 : f32
    %22 = vector.broadcast %cst_20 : f32 to vector<16x320xf32>
    %23 = arith.cmpf ogt, %21, %22 : vector<16x320xf32>
    %cst_21 = arith.constant 0.00999999977 : f32
    %24 = vector.broadcast %cst_21 : f32 to vector<16x320xf32>
    %25 = arith.mulf %24, %21 : vector<16x320xf32>
    %26 = arith.select %23, %21, %25 : vector<16x320xi1>, vector<16x320xf32>
    %27 = vector.shape_cast %26 : vector<16x320xf32> to vector<2x8x320xf32>
    %c0_22 = arith.constant 0 : index
    %c0_23 = arith.constant 0 : index
    %c0_24 = arith.constant 0 : index
    %28 = vector.load %arg4[%c0_22, %c0_23, %c0_24] : memref<1x8x320xf32, #tpu.memory_space<vmem>>, vector<1x8x320xf32>
    %29 = vector.broadcast %28 : vector<1x8x320xf32> to vector<2x8x320xf32>
    %30 = arith.mulf %27, %29 : vector<2x8x320xf32>
    %cst_25 = arith.constant dense<0.000000e+00> : vector<2x320xf32>
    %31 = vector.multi_reduction <add>, %30, %cst_25 [1] : vector<2x8x320xf32> to vector<2x320xf32>
    %c0_26 = arith.constant 0 : index
    %c0_27 = arith.constant 0 : index
    %32 = vector.load %arg5[%c0_26, %c0_27] : memref<2x320xf32, #tpu.memory_space<vmem>>, vector<2x320xf32>
    tpu.vector_store %arg5[%c0_26, %c0_27], %31 {strides = array<i32>} : memref<2x320xf32, #tpu.memory_space<vmem>>, vector<2x320xf32>,
    return
  }
  func.func @transform_0(%arg0: i32) -> (i32, i32, i32) {
    %c0_i32 = arith.constant 0 : i32
    %c0_i32_0 = arith.constant 0 : i32
    %c0_i32_1 = arith.constant 0 : i32
    return %arg0, %c0_i32, %c0_i32_0 : i32, i32, i32
  }
  func.func @transform_1(%arg0: i32) -> (i32, i32, i32) {
    %c0_i32 = arith.constant 0 : i32
    %c0_i32_0 = arith.constant 0 : i32
    %c0_i32_1 = arith.constant 0 : i32
    %c0_i32_2 = arith.constant 0 : i32
    return %c0_i32, %c0_i32_0, %c0_i32_1 : i32, i32, i32
  }
  func.func @transform_2(%arg0: i32) -> (i32, i32) {
    %c0_i32 = arith.constant 0 : i32
    %c0_i32_0 = arith.constant 0 : i32
    %c0_i32_1 = arith.constant 0 : i32
    return %c0_i32, %c0_i32_0 : i32, i32
  }
  func.func @transform_3(%arg0: i32) -> (i32, i32, i32) {
    %c0_i32 = arith.constant 0 : i32
    %c0_i32_0 = arith.constant 0 : i32
    %c0_i32_1 = arith.constant 0 : i32
    %c0_i32_2 = arith.constant 0 : i32
    return %c0_i32, %c0_i32_0, %c0_i32_1 : i32, i32, i32
  }
  func.func @transform_4(%arg0: i32) -> (i32, i32) {
    %c0_i32 = arith.constant 0 : i32
    %c0_i32_0 = arith.constant 0 : i32
    return %arg0, %c0_i32 : i32, i32
  }
}

</mosaic_0001>

<bundles_post_ra>
// kernel: tpu_custom_call.1
= control target key start
LH: loop header
LB: loop body
LE: loop exit
PB: predicated region body
PF: predicated region fallthrough
CT: control target
= control target key end

     0   :  { %vm222_vm0 = vsmask.f32 3328  ;;  %vm223_vm1 = vsmask.f32 7440  ;;  %s9690_s0 = inlined_call_operand.vmem [shape: bf16[2,10,768], index: 0, kind: input, shape index: {}]   ;;  %s9691_s1 = inlined_call_operand.vmem [shape: bf16[3,768,320], index: 1, kind: input, shape index: {}]   ;;  %s9692_s2 = inlined_call_operand.vmem [shape: f32[1,320], index: 2, kind: input, shape index: {}]   ;;  %s9693_s3 = inlined_call_operand.vmem [shape: f32[1,8,320], index: 3, kind: input, shape index: {}]   ;;  %s9694_s4 = inlined_call_operand.hbm [shape: f32[2,320], index: 4, kind: output, shape index: {}]  }
   0x1   :  { %v4293_v0 = vld [vmem:[%s9691_s1 + $0x528] sm:$0xf]  ;;  %v6329_v1 = vld [vmem:[%s9691_s1 + $0x530] sm:$0xf0]  ;;  %v4281_v11 = vld [vmem:[%s9691_s1 + $0x510] sm:$0xf] }
   0x2   :  { %v4389_v2 = vld [vmem:[%s9691_s1 + $0x5e8] sm:$0xf]  ;;  %v4294_v3 = vor.u32 %v6329_v1, %v4293_v0  ;;  %v6353_v4 = vld [vmem:[%s9691_s1 + $0x5f0] sm:$0xf0]  ;;  %v6326_v13 = vld [vmem:[%s9691_s1 + $0x518] sm:$0xf0] }
   0x3   :  { %v4485_v5 = vld [vmem:[%s9691_s1 + $0x6a8] sm:$0xf]  ;;  %v6377_v6 = vld [vmem:[%s9691_s1 + $0x6b0] sm:$0xf0]  ;;  %v4390_v7 = vor.u32 %v6353_v4, %v4389_v2  ;;  %v4377_v14 = vld [vmem:[%s9691_s1 + $0x5d0] sm:$0xf]  ;;  %v4282_v16 = vor.u32 %v6326_v13, %v4281_v11 }
   0x4   :  { %v4486_v8 = vor.u32 %v6377_v6, %v4485_v5  ;;  %v4581_v9 = vld [vmem:[%s9691_s1 + $0x768] sm:$0xf]  ;;  %v6401_v10 = vld [vmem:[%s9691_s1 + $0x770] sm:$0xf0]  ;;  %1294 = vmatpush.bf16.msra.mxu0 %v4294_v3  ;;  %v6350_v15 = vld [vmem:[%s9691_s1 + $0x5d8] sm:$0xf0] }
   0x5   :  { %v4582_v12 = vor.u32 %v6401_v10, %v4581_v9  ;;  %1308 = vmatpush.bf16.msra.mxu1 %v4390_v7  ;;  %v4378_v17 = vor.u32 %v6350_v15, %v4377_v14  ;;  %v4473_v18 = vld [vmem:[%s9691_s1 + $0x690] sm:$0xf]  ;;  %v6374_v19 = vld [vmem:[%s9691_s1 + $0x698] sm:$0xf0]  ;;  %v4269_v23 = vld [vmem:[%s9691_s1 + $0x4f8] sm:$0xf] }
   0x6   :  { %1322 = vmatpush.bf16.msra.mxu2 %v4486_v8  ;;  %v4569_v20 = vld [vmem:[%s9691_s1 + $0x750] sm:$0xf]  ;;  %v4474_v21 = vor.u32 %v6374_v19, %v4473_v18  ;;  %v6398_v22 = vld [vmem:[%s9691_s1 + $0x758] sm:$0xf0]  ;;  %v6323_v24 = vld [vmem:[%s9691_s1 + $0x500] sm:$0xf0] }
   0x7   :  { %1336 = vmatpush.bf16.msra.mxu3 %v4582_v12  ;;  %v4570_v25 = vor.u32 %v6398_v22, %v4569_v20  ;;  %v4365_v26 = vld [vmem:[%s9691_s1 + $0x5b8] sm:$0xf]  ;;  %v6347_v27 = vld [vmem:[%s9691_s1 + $0x5c0] sm:$0xf0]  ;;  %v4270_v29 = vor.u32 %v6323_v24, %v4269_v23  ;;  %v4257_v35 = vld [vmem:[%s9691_s1 + $0x4e0] sm:$0xf] }
   0x8   :  { %v4461_v28 = vld [vmem:[%s9691_s1 + $0x678] sm:$0xf]  ;;  %1295 = vmatpush.bf16.msra.mxu0 %v4282_v16  ;;  %v6371_v30 = vld [vmem:[%s9691_s1 + $0x680] sm:$0xf0]  ;;  %v4366_v33 = vor.u32 %v6347_v27, %v4365_v26  ;;  %v6320_v36 = vld [vmem:[%s9691_s1 + $0x4e8] sm:$0xf0] }
   0x9   :  { %v4557_v31 = vld [vmem:[%s9691_s1 + $0x738] sm:$0xf]  ;;  %v6395_v32 = vld [vmem:[%s9691_s1 + $0x740] sm:$0xf0]  ;;  %1309 = vmatpush.bf16.msra.mxu1 %v4378_v17  ;;  %v4462_v34 = vor.u32 %v6371_v30, %v4461_v28  ;;  %v4353_v37 = vld [vmem:[%s9691_s1 + $0x5a0] sm:$0xf]  ;;  %v4258_v44 = vor.u32 %v6320_v36, %v4257_v35 }
   0xa   :  { %1323 = vmatpush.bf16.msra.mxu2 %v4474_v21  ;;  %v4558_v38 = vor.u32 %v6395_v32, %v4557_v31  ;;  %v6344_v39 = vld [vmem:[%s9691_s1 + $0x5a8] sm:$0xf0]  ;;  %v4449_v40 = vld [vmem:[%s9691_s1 + $0x660] sm:$0xf]  ;;  %v4245_v47 = vld [vmem:[%s9691_s1 + $0x4c8] sm:$0xf] }
   0xb   :  { %1337 = vmatpush.bf16.msra.mxu3 %v4570_v25  ;;  %v6368_v41 = vld [vmem:[%s9691_s1 + $0x668] sm:$0xf0]  ;;  %v4545_v42 = vld [vmem:[%s9691_s1 + $0x720] sm:$0xf]  ;;  %v4354_v45 = vor.u32 %v6344_v39, %v4353_v37  ;;  %v6317_v48 = vld [vmem:[%s9691_s1 + $0x4d0] sm:$0xf0] }
   0xc   :  { %v6392_v43 = vld [vmem:[%s9691_s1 + $0x728] sm:$0xf0]  ;;  %1296 = vmatpush.bf16.msra.mxu0 %v4270_v29  ;;  %v4450_v46 = vor.u32 %v6368_v41, %v4449_v40  ;;  %v4341_v49 = vld [vmem:[%s9691_s1 + $0x588] sm:$0xf]  ;;  %v6341_v51 = vld [vmem:[%s9691_s1 + $0x590] sm:$0xf0]  ;;  %v4246_v56 = vor.u32 %v6317_v48, %v4245_v47 }
   0xd   :  { %1310 = vmatpush.bf16.msra.mxu1 %v4366_v33  ;;  %v4546_v50 = vor.u32 %v6392_v43, %v4545_v42  ;;  %v4437_v52 = vld [vmem:[%s9691_s1 + $0x648] sm:$0xf]  ;;  %v6365_v53 = vld [vmem:[%s9691_s1 + $0x650] sm:$0xf0]  ;;  %v4342_v57 = vor.u32 %v6341_v51, %v4341_v49  ;;  %v4233_v59 = vld [vmem:[%s9691_s1 + $0x4b0] sm:$0xf] }
   0xe   :  { %1324 = vmatpush.bf16.msra.mxu2 %v4462_v34  ;;  %v4533_v54 = vld [vmem:[%s9691_s1 + $0x708] sm:$0xf]  ;;  %v6389_v55 = vld [vmem:[%s9691_s1 + $0x710] sm:$0xf0]  ;;  %v4438_v58 = vor.u32 %v6365_v53, %v4437_v52  ;;  %v6314_v60 = vld [vmem:[%s9691_s1 + $0x4b8] sm:$0xf0] }
   0xf   :  { %1338 = vmatpush.bf16.msra.mxu3 %v4558_v38  ;;  %v4329_v61 = vld [vmem:[%s9691_s1 + $0x570] sm:$0xf]  ;;  %v4534_v62 = vor.u32 %v6389_v55, %v4533_v54  ;;  %v6338_v63 = vld [vmem:[%s9691_s1 + $0x578] sm:$0xf0]  ;;  %v4234_v4 = vor.u32 %v6314_v60, %v4233_v59  ;;  %v4221_v5 = vld [vmem:[%s9691_s1 + $0x498] sm:$0xf] }
  0x10   :  { %1297 = vmatpush.bf16.msra.mxu0 %v4258_v44  ;;  %v4425_v0 = vld [vmem:[%s9691_s1 + $0x630] sm:$0xf]  ;;  %v6362_v1 = vld [vmem:[%s9691_s1 + $0x638] sm:$0xf0]  ;;  %v4330_v6 = vor.u32 %v6338_v63, %v4329_v61  ;;  %v6311_v8 = vld [vmem:[%s9691_s1 + $0x4a0] sm:$0xf0] }
  0x11   :  { %1311 = vmatpush.bf16.msra.mxu1 %v4354_v45  ;;  %v4521_v2 = vld [vmem:[%s9691_s1 + $0x6f0] sm:$0xf]  ;;  %v6386_v3 = vld [vmem:[%s9691_s1 + $0x6f8] sm:$0xf0]  ;;  %v4426_v7 = vor.u32 %v6362_v1, %v4425_v0  ;;  %v4317_v9 = vld [vmem:[%s9691_s1 + $0x558] sm:$0xf]  ;;  %v4222_v18 = vor.u32 %v6311_v8, %v4221_v5 }
  0x12   :  { %1325 = vmatpush.bf16.msra.mxu2 %v4450_v46  ;;  %v6335_v10 = vld [vmem:[%s9691_s1 + $0x560] sm:$0xf0]  ;;  %v4522_v11 = vor.u32 %v6386_v3, %v4521_v2  ;;  %v4413_v12 = vld [vmem:[%s9691_s1 + $0x618] sm:$0xf]  ;;  %v4209_v16 = vld [vmem:[%s9691_s1 + $0x480] sm:$0xf] }
  0x13   :  { %1339 = vmatpush.bf16.msra.mxu3 %v4546_v50  ;;  %v6359_v13 = vld [vmem:[%s9691_s1 + $0x620] sm:$0xf0]  ;;  %v4509_v14 = vld [vmem:[%s9691_s1 + $0x6d8] sm:$0xf]  ;;  %v6308_v17 = vld [vmem:[%s9691_s1 + $0x488] sm:$0xf0]  ;;  %v4318_v23 = vor.u32 %v6335_v10, %v4317_v9 }
  0x14   :  { %1298 = vmatpush.bf16.msra.mxu0 %v4246_v56  ;;  %v6383_v15 = vld [vmem:[%s9691_s1 + $0x6e0] sm:$0xf0]  ;;  %v4305_v19 = vld [vmem:[%s9691_s1 + $0x540] sm:$0xf]  ;;  %v6332_v20 = vld [vmem:[%s9691_s1 + $0x548] sm:$0xf0]  ;;  %v4414_v24 = vor.u32 %v6359_v13, %v4413_v12  ;;  %v4210_v35 = vor.u32 %v6308_v17, %v4209_v16 }
  0x15   :  { %1312 = vmatpush.bf16.msra.mxu1 %v4342_v57  ;;  %v4401_v21 = vld [vmem:[%s9691_s1 + $0x600] sm:$0xf]  ;;  %v6356_v22 = vld [vmem:[%s9691_s1 + $0x608] sm:$0xf0]  ;;  %v4677_v25 = vld [vmem:[%s9691_s1 + $0x828] sm:$0xf]  ;;  %v4510_v28 = vor.u32 %v6383_v15, %v4509_v14  ;;  %v4306_v39 = vor.u32 %v6332_v20, %v4305_v19 }
  0x16   :  { %1326 = vmatpush.bf16.msra.mxu2 %v4438_v58  ;;  %v6425_v26 = vld [vmem:[%s9691_s1 + $0x830] sm:$0xf0]  ;;  %v4773_v27 = vld [vmem:[%s9691_s1 + $0x8e8] sm:$0xf]  ;;  %v6328_v30 = vld [vmem:[%s9691_s1 + $0x52c] sm:$0xf]  ;;  %v4402_v40 = vor.u32 %v6356_v22, %v4401_v21 }
  0x17   :  { %1340 = vmatpush.bf16.msra.mxu3 %v4534_v62  ;;  %v6449_v29 = vld [vmem:[%s9691_s1 + $0x8f0] sm:$0xf0]  ;;  %v4295_v31 = vld [vmem:[%s9691_s1 + $0x534] sm:$0xf0]  ;;  %v4497_v32 = vld [vmem:[%s9691_s1 + $0x6c0] sm:$0xf]  ;;  %v4678_v44 = vor.u32 %v6425_v26, %v4677_v25 }
  0x18   :  { %1299 = vmatpush.bf16.msra.mxu0 %v4234_v4  ;;  %v6380_v33 = vld [vmem:[%s9691_s1 + $0x6c8] sm:$0xf0]  ;;  %v4391_v36 = vld [vmem:[%s9691_s1 + $0x5f4] sm:$0xf0]  ;;  %v6873_v37 = vld [vmem:[%s9691_s1 + $0x810] sm:$0xf]  ;;  %v4774_v45 = vor.u32 %v6449_v29, %v4773_v27  ;;  %v4298_v49 = vor.u32 %v6328_v30, %v4295_v31 }
  0x19   :  { %1313 = vmatpush.bf16.msra.mxu1 %v4330_v6  ;;  %v6352_v34 = vld [vmem:[%s9691_s1 + $0x5ec] sm:$0xf]  ;;  %v6878_v38 = vld [vmem:[%s9691_s1 + $0x818] sm:$0xf0]  ;;  %v4761_v41 = vld [vmem:[%s9691_s1 + $0x8d0] sm:$0xf]  ;;  %v4498_v50 = vor.u32 %v6380_v33, %v4497_v32 }
  0x1a   :  { %1327 = vmatpush.bf16.msra.mxu2 %v4426_v7  ;;  %v6446_v42 = vld [vmem:[%s9691_s1 + $0x8d8] sm:$0xf0]  ;;  %v6889_v43 = vld [vmem:[%s9691_s1 + $0x514] sm:$0xf]  ;;  %v4283_v46 = vld [vmem:[%s9691_s1 + $0x51c] sm:$0xf0]  ;;  %v4394_v55 = vor.u32 %v6352_v34, %v4391_v36  ;;  %v4666_v60 = vor.u32 %v6878_v38, %v6873_v37 }
  0x1b   :  { %1341 = vmatpush.bf16.msra.mxu3 %v4522_v11  ;;  %v6897_v47 = vld [vmem:[%s9691_s1 + $0x5d4] sm:$0xf]  ;;  %v6902_v48 = vld [vmem:[%s9691_s1 + $0x5dc] sm:$0xf0]  ;;  %v6907_v51 = vld [vmem:[%s9691_s1 + $0x7f8] sm:$0xf]  ;;  %v4762_v61 = vor.u32 %v6446_v42, %v4761_v41  ;;  %v4286_v62 = vor.u32 %v6889_v43, %v4283_v46 }
  0x1c   :  { %1300 = vmatpush.bf16.msra.mxu0 %v4222_v18  ;;  %v6912_v52 = vld [vmem:[%s9691_s1 + $0x800] sm:$0xf0]  ;;  %v6917_v53 = vld [vmem:[%s9691_s1 + $0x8b8] sm:$0xf]  ;;  %v6927_v56 = vld [vmem:[%s9691_s1 + $0x4fc] sm:$0xf]  ;;  %v4382_v6 = vor.u32 %v6897_v47, %v6902_v48 }
  0x1d   :  { %1314 = vmatpush.bf16.msra.mxu1 %v4318_v23  ;;  %v6922_v54 = vld [vmem:[%s9691_s1 + $0x8c0] sm:$0xf0]  ;;  %v6932_v57 = vld [vmem:[%s9691_s1 + $0x504] sm:$0xf0]  ;;  %v6937_v58 = vld [vmem:[%s9691_s1 + $0x5bc] sm:$0xf]  ;;  %v4654_v16 = vor.u32 %v6912_v52, %v6907_v51 }
  0x1e   :  { %1328 = vmatpush.bf16.msra.mxu2 %v4414_v24  ;;  %v6942_v59 = vld [vmem:[%s9691_s1 + $0x5c4] sm:$0xf0]  ;;  %v6950_v63 = vld [vmem:[%s9691_s1 + $0x7e0] sm:$0xf]  ;;  %v6955_v0 = vld [vmem:[%s9691_s1 + $0x7e8] sm:$0xf0]  ;;  %v4750_v17 = vor.u32 %v6922_v54, %v6917_v53  ;;  %v4274_v22 = vor.u32 %v6927_v56, %v6932_v57 }
  0x1f   :  { %1342 = vmatpush.bf16.msra.mxu3 %v4510_v28  ;;  %v6960_v1 = vld [vmem:[%s9691_s1 + $0x8a0] sm:$0xf]  ;;  %v6965_v2 = vld [vmem:[%s9691_s1 + $0x8a8] sm:$0xf0]  ;;  %v21_v4 = vld [vmem:[%s9690_s0 + $0x30] sm:$0xff]  ;;  %v4370_v23 = vor.u32 %v6937_v58, %v6942_v59  ;;  %v4642_v26 = vor.u32 %v6955_v0, %v6950_v63 }
  0x20   :  { %1301 = vmatpush.bf16.msra.mxu0 %v4210_v35  ;;  %v18_v3 = vld [vmem:[%s9690_s0] sm:$0xff]  ;;  %v216_v5 = vld [vmem:[%s9690_s0 + $0x18] sm:$0x11]  ;;  %v219_v8 = vld [vmem:[%s9690_s0 + $0x48] sm:$0x11]  ;;  %v268_v13 = vshrl.u32 %v21_v4, 16  ;;  %v4738_v27 = vor.u32 %v6965_v2, %v6960_v1 }
  0x21   :  { %1315 = vmatpush.bf16.msra.mxu1 %v4306_v39  ;;  %v6981_v7 = vld [vmem:[%s9691_s1 + $0x4e4] sm:$0xf]  ;;  %v226_v9 = vshrl.u32 %v18_v3, 16  ;;  %v229_v10 = vshll.u32 %v18_v3, 16  ;;  %v6989_v11 = vld [vmem:[%s9691_s1 + $0x4ec] sm:$0xf0]  ;;  %vm7015_vm2 = vmor %vm222_vm0, %vm223_vm1 }
  0x22   :  { %1329 = vmatpush.bf16.msra.mxu2 %v4402_v40  ;;  %v235_v12 = vshll.u32 %v216_v5, 16  ;;  %v271_v14 = vshll.u32 %v21_v4, 16  ;;  %v277_v15 = vshll.u32 %v219_v8, 16  ;;  %v6998_v18 = vld [vmem:[%s9691_s1 + $0x5a4] sm:$0xf]  ;;  %v270_v24 = vrot.slane %v268_v13, 4 }
  0x23   :  { %1343 = vmatpush.bf16.msra.mxu3 %v4498_v50  ;;  %v7003_v19 = vld [vmem:[%s9691_s1 + $0x5ac] sm:$0xf0]  ;;  %v228_v20 = vrot.slane %v226_v9, 4  ;;  %v231_v21 = vrot.slane %v229_v10, 5  ;;  %v4262_v31 = vor.u32 %v6981_v7, %v6989_v11  ;;  %v19_v35 = vld [vmem:[%s9690_s0 + $0x8] sm:$0xff]  ;;  %v22_v36 = vld [vmem:[%s9690_s0 + $0x38] sm:$0xff] }
  0x24   :  { %1350 = vmatpush.bf16.msrb.mxu0 %v4678_v44  ;;  %v273_v25 = vrot.slane %v271_v14, 5  ;;  %v237_v30 = vrot.slane %v235_v12, 5  ;;  %v4358_v32 = vor.u32 %v6998_v18, %v7003_v19  ;;  %v279_v34 = vrot.slane %v277_v15, 5  ;;  %v217_v37 = vld [vmem:[%s9690_s0 + $0x20] sm:$0x11] }
  0x25   :  { %1364 = vmatpush.bf16.msrb.mxu1 %v4774_v45  ;;  %v232_v29 = vor.u32 %v231_v21, %v228_v20  ;;  %v4629_v39 = vld [vmem:[%s9691_s1 + $0x7c8] sm:$0xf]  ;;  %v6413_v40 = vld [vmem:[%s9691_s1 + $0x7d0] sm:$0xf0]  ;;  %v240_v42 = vshrl.u32 %v19_v35, 16  ;;  %v243_v43 = vshll.u32 %v19_v35, 16 }
  0x26   :  { %1378 = vmatpush.bf16.msrb.mxu2 %v4298_v49  ;;  %v274_v33 = vor.u32 %v273_v25, %v270_v24  ;;  %v220_v41 = vld [vmem:[%s9690_s0 + $0x50] sm:$0x11]  ;;  %v249_v44 = vshll.u32 %v217_v37, 16  ;;  %v4725_v46 = vld [vmem:[%s9691_s1 + $0x888] sm:$0xf]  ;;  %v282_v47 = vshrl.u32 %v22_v36, 16  ;;  %v4630_v1 = vor.u32 %v6413_v40, %v4629_v39 }
  0x27   :  { %1392 = vmatpush.bf16.msrb.mxu3 %v4394_v55  ;;  %v233_v38 = vrot.slane %v232_v29, 4  ;;  %v285_v48 = vshll.u32 %v22_v36, 16  ;;  %v291_v49 = vshll.u32 %v220_v41, 16  ;;  %v6437_v51 = vld [vmem:[%s9691_s1 + $0x890] sm:$0xf0]  ;;  %v242_v52 = vrot.slane %v240_v42, 4 }
  0x28   :  { %1351 = vmatpush.bf16.msrb.mxu0 %v4666_v60  ;;  %v275_v45 = vrot.slane %v274_v33, 4  ;;  %v245_v53 = vrot.slane %v243_v43, 5  ;;  %v251_v54 = vrot.slane %v249_v44, 5  ;;  %v284_v58 = vrot.slane %v282_v47, 4  ;;  %v6316_v60 = vld [vmem:[%s9691_s1 + $0x4cc] sm:$0xf] }
  0x29   :  { %1365 = vmatpush.bf16.msrb.mxu1 %v4762_v61  ;;  %v238_v50 = vsel %vm7015_vm2, %v233_v38, %v237_v30  ;;  %v4247_v61 = vld [vmem:[%s9691_s1 + $0x4d4] sm:$0xf0]  ;;  %v287_v0 = vrot.slane %v285_v48, 5  ;;  %v4726_v2 = vor.u32 %v6437_v51, %v4725_v46  ;;  %v293_v3 = vrot.slane %v291_v49, 5  ;;  %v6340_v4 = vld [vmem:[%s9691_s1 + $0x58c] sm:$0xf] }
  0x2a   :  { %1379 = vmatpush.bf16.msrb.mxu2 %v4286_v62  ;;  %v280_v55 = vsel %vm7015_vm2, %v275_v45, %v279_v34  ;;  %v502_v56 = vunpack.c.l.b16 %v238_v50  ;;  %v503_v57 = vunpack.c.h.b16 %v238_v50  ;;  %v246_v63 = vor.u32 %v245_v53, %v242_v52  ;;  %v4343_v5 = vld [vmem:[%s9691_s1 + $0x594] sm:$0xf0]  ;;  %v4617_v10 = vld [vmem:[%s9691_s1 + $0x7b0] sm:$0xf]  ;;  %v6410_v12 = vld [vmem:[%s9691_s1 + $0x7b8] sm:$0xf0] }
  0x2b   :  { %1393 = vmatpush.bf16.msrb.mxu3 %v4382_v6  ;;  %v508_v59 = vunpack.c.l.b16 %v280_v55  ;;  %v509_v62 = vunpack.c.h.b16 %v280_v55  ;;  %v288_v9 = vor.u32 %v287_v0, %v284_v58  ;;  %v4250_v11 = vor.u32 %v6316_v60, %v4247_v61  ;;  %v4713_v13 = vld [vmem:[%s9691_s1 + $0x870] sm:$0xf]  ;;  %v6434_v14 = vld [vmem:[%s9691_s1 + $0x878] sm:$0xf0]  ;;  %v6313_v18 = vld [vmem:[%s9691_s1 + $0x4b4] sm:$0xf] }
  0x2c   :  { %1352 = vmatpush.bf16.msrb.mxu0 %v4654_v16  ;;  %v247_v8 = vrot.slane %v246_v63, 4  ;;  %v4235_v19 = vld [vmem:[%s9691_s1 + $0x4bc] sm:$0xf0]  ;;  %v4605_v24 = vld [vmem:[%s9691_s1 + $0x798] sm:$0xf] }
  0x2d   :  { %1366 = vmatpush.bf16.msrb.mxu1 %v4750_v17  ;;  %v7063_v6 = vpack.c.b16 %v508_v59, %v502_v56  ;;  %v7065_v7 = vpack.c.b16 %v509_v62, %v503_v57  ;;  %v289_v16 = vrot.slane %v288_v9, 4  ;;  %v4346_v17 = vor.u32 %v6340_v4, %v4343_v5  ;;  %v6407_v29 = vld [vmem:[%s9691_s1 + $0x7a0] sm:$0xf0]  ;;  %v4701_v30 = vld [vmem:[%s9691_s1 + $0x858] sm:$0xf] }
  0x2e   :  { %1380 = vmatpush.bf16.msrb.mxu2 %v4274_v22  ;;  %v252_v15 = vsel %vm7015_vm2, %v247_v8, %v251_v54  ;;  %v6337_v22 = vld [vmem:[%s9691_s1 + $0x574] sm:$0xf]  ;;  %v6310_v35 = vld [vmem:[%s9691_s1 + $0x49c] sm:$0xf]  ;;  %v4223_v36 = vld [vmem:[%s9691_s1 + $0x4a4] sm:$0xf0]  ;;  %v4238_v39 = vor.u32 %v6313_v18, %v4235_v19  ;;  %v4606_v49 = vor.u32 %v6407_v29, %v4605_v24 }
  0x2f   :  { %1394 = vmatpush.bf16.msrb.mxu3 %v4370_v23  ;;  %1302 = vmatmul.bf16.vlgmr.msra.gmra.mxu0 %v7063_v6  ;;  %v504_v20 = vunpack.c.l.b16 %v252_v15  ;;  %v505_v21 = vunpack.c.h.b16 %v252_v15  ;;  %v4331_v23 = vld [vmem:[%s9691_s1 + $0x57c] sm:$0xf0]  ;;  %v294_v25 = vsel %vm7015_vm2, %v289_v16, %v293_v3  ;;  %v6334_v37 = vld [vmem:[%s9691_s1 + $0x55c] sm:$0xf]  ;;  %v4319_v41 = vld [vmem:[%s9691_s1 + $0x564] sm:$0xf0]  ;;  %v4226_v54 = vor.u32 %v6310_v35, %v4223_v36 }
  0x30   :  { %1353 = vmatpush.bf16.msrb.mxu0 %v4642_v26  ;;  %1316 = vmatmul.bf16.vlgmr.msra.gmra.mxu1 %v7065_v7  ;;  %v4618_v26 = vor.u32 %v6410_v12, %v4617_v10  ;;  %v510_v33 = vunpack.c.l.b16 %v294_v25  ;;  %v511_v34 = vunpack.c.h.b16 %v294_v25  ;;  %v23_v38 = vld [vmem:[%s9690_s0 + $0x40] sm:$0xff]  ;;  %v4334_v40 = vor.u32 %v6337_v22, %v4331_v23  ;;  %v6404_v43 = vld [vmem:[%s9691_s1 + $0x788] sm:$0xf0]  ;;  %v4487_v51 = vld [vmem:[%s9691_s1 + $0x6b4] sm:$0xf0] }
  0x31   :  { %1367 = vmatpush.bf16.msrb.mxu1 %v4738_v27  ;;  %v4714_v27 = vor.u32 %v6434_v14, %v4713_v13  ;;  %v4593_v42 = vld [vmem:[%s9691_s1 + $0x780] sm:$0xf]  ;;  %v6428_v47 = vld [vmem:[%s9691_s1 + $0x848] sm:$0xf0]  ;;  %v4583_v53 = vld [vmem:[%s9691_s1 + $0x774] sm:$0xf0]  ;;  %v4322_v55 = vor.u32 %v6334_v37, %v4319_v41 }
  0x32   :  { %1381 = vmatpush.bf16.msrb.mxu2 %v4262_v31  ;;  %v6431_v31 = vld [vmem:[%s9691_s1 + $0x860] sm:$0xf0]  ;;  %v7133_v44 = vpack.c.b16 %v510_v33, %v504_v20  ;;  %v7135_v45 = vpack.c.b16 %v511_v34, %v505_v21  ;;  %v4689_v46 = vld [vmem:[%s9691_s1 + $0x840] sm:$0xf]  ;;  %v6376_v48 = vld [vmem:[%s9691_s1 + $0x6ac] sm:$0xf]  ;;  %v4594_v4 = vor.u32 %v6404_v43, %v4593_v42 }
  0x33   :  { %1395 = vmatpush.bf16.msrb.mxu3 %v4358_v32  ;;  %v20_v32 = vld [vmem:[%s9690_s0 + $0x10] sm:$0xff]  ;;  %v4702_v50 = vor.u32 %v6431_v31, %v4701_v30  ;;  %v6400_v52 = vld [vmem:[%s9691_s1 + $0x76c] sm:$0xf]  ;;  %v6307_v56 = vld [vmem:[%s9691_s1 + $0x484] sm:$0xf]  ;;  %v4490_v12 = vor.u32 %v6376_v48, %v4487_v51 }
  0x34   :  { %1354 = vmatpush.bf16.msrb.mxu0 %v4630_v1  ;;  %1330 = vmatmul.bf16.vlgmr.msra.gmra.mxu2 %v7133_v44  ;;  %v4211_v57 = vld [vmem:[%s9691_s1 + $0x48c] sm:$0xf0]  ;;  %v218_v58 = vld [vmem:[%s9690_s0 + $0x28] sm:$0x11]  ;;  %v221_v59 = vld [vmem:[%s9690_s0 + $0x58] sm:$0x11] }
  0x35   :  { %1368 = vmatpush.bf16.msrb.mxu1 %v4726_v2  ;;  %1344 = vmatmul.bf16.vlgmr.msra.gmra.mxu3 %v7135_v45  ;;  %v254_v60 = vshrl.u32 %v20_v32, 16  ;;  %v257_v61 = vshll.u32 %v20_v32, 16  ;;  %v6424_v62 = vld [vmem:[%s9691_s1 + $0x82c] sm:$0xf]  ;;  %v4679_v63 = vld [vmem:[%s9691_s1 + $0x834] sm:$0xf0]  ;;  %v4214_v22 = vor.u32 %v6307_v56, %v4211_v57 }
  0x36   :  { %1382 = vmatpush.bf16.msrb.mxu2 %v4250_v11  ;;  %v263_v0 = vshll.u32 %v218_v58, 16  ;;  %v296_v1 = vshrl.u32 %v23_v38, 16  ;;  %v299_v2 = vshll.u32 %v23_v38, 16  ;;  %v305_v3 = vshll.u32 %v221_v59, 16  ;;  %v6331_v5 = vld [vmem:[%s9691_s1 + $0x544] sm:$0xf] }
  0x37   :  { %1396 = vmatpush.bf16.msrb.mxu3 %v4346_v17  ;;  %v4307_v8 = vld [vmem:[%s9691_s1 + $0x54c] sm:$0xf0]  ;;  %v256_v9 = vrot.slane %v254_v60, 4  ;;  %v259_v10 = vrot.slane %v257_v61, 5  ;;  %v4690_v11 = vor.u32 %v6428_v47, %v4689_v46  ;;  %v6448_v15 = vld [vmem:[%s9691_s1 + $0x8ec] sm:$0xf]  ;;  %v4586_v17 = vor.u32 %v6400_v52, %v4583_v53 }
  0x38   :  { %1355 = vmatpush.bf16.msrb.mxu0 %v4618_v26  ;;  %v298_v13 = vrot.slane %v296_v1, 4  ;;  %v301_v14 = vrot.slane %v299_v2, 5  ;;  %v4775_v16 = vld [vmem:[%s9691_s1 + $0x8f4] sm:$0xf0]  ;;  %v265_v19 = vrot.slane %v263_v0, 5  ;;  %v307_v20 = vrot.slane %v305_v3, 5 }
  0x39   :  { %1369 = vmatpush.bf16.msrb.mxu1 %v4714_v27  ;;  %v260_v18 = vor.u32 %v259_v10, %v256_v9  ;;  %v6373_v21 = vld [vmem:[%s9691_s1 + $0x694] sm:$0xf]  ;;  %v4310_v23 = vor.u32 %v6331_v5, %v4307_v8  ;;  %v4475_v25 = vld [vmem:[%s9691_s1 + $0x69c] sm:$0xf0]  ;;  %v4682_v29 = vor.u32 %v6424_v62, %v4679_v63  ;;  %v4778_v31 = vor.u32 %v6448_v15, %v4775_v16  ;;  %v4463_v41 = vld [vmem:[%s9691_s1 + $0x684] sm:$0xf0] }
  0x3a   :  { %1383 = vmatpush.bf16.msrb.mxu2 %v4238_v39  ;;  %v302_v24 = vor.u32 %v301_v14, %v298_v13  ;;  %v6397_v26 = vld [vmem:[%s9691_s1 + $0x754] sm:$0xf]  ;;  %v4571_v27 = vld [vmem:[%s9691_s1 + $0x75c] sm:$0xf0]  ;;  %v4478_v37 = vor.u32 %v6373_v21, %v4475_v25  ;;  %v6394_v47 = vld [vmem:[%s9691_s1 + $0x73c] sm:$0xf] }
  0x3b   :  { %1397 = vmatpush.bf16.msrb.mxu3 %v4334_v40  ;;  %v261_v30 = vrot.slane %v260_v18, 4  ;;  %v6421_v32 = vld [vmem:[%s9691_s1 + $0x814] sm:$0xf]  ;;  %v4667_v34 = vld [vmem:[%s9691_s1 + $0x81c] sm:$0xf0]  ;;  %v4574_v38 = vor.u32 %v6397_v26, %v4571_v27 }
  0x3c   :  { %1356 = vmatpush.bf16.msrb.mxu0 %v4606_v49  ;;  %v303_v33 = vrot.slane %v302_v24, 4  ;;  %v6445_v35 = vld [vmem:[%s9691_s1 + $0x8d4] sm:$0xf]  ;;  %v4763_v39 = vld [vmem:[%s9691_s1 + $0x8dc] sm:$0xf0]  ;;  %v4670_v51 = vor.u32 %v6421_v32, %v4667_v34 }
  0x3d   :  { %1370 = vmatpush.bf16.msrb.mxu1 %v4702_v50  ;;  %v266_v36 = vsel %vm7015_vm2, %v261_v30, %v265_v19  ;;  %v6370_v40 = vld [vmem:[%s9691_s1 + $0x67c] sm:$0xf]  ;;  %v4559_v48 = vld [vmem:[%s9691_s1 + $0x744] sm:$0xf0]  ;;  %v4766_v52 = vor.u32 %v6445_v35, %v4763_v39  ;;  %v6367_v60 = vld [vmem:[%s9691_s1 + $0x664] sm:$0xf] }
  0x3e   :  { %1384 = vmatpush.bf16.msrb.mxu2 %v4226_v54  ;;  %v308_v42 = vsel %vm7015_vm2, %v303_v33, %v307_v20  ;;  %v506_v43 = vunpack.c.l.b16 %v266_v36  ;;  %v507_v46 = vunpack.c.h.b16 %v266_v36  ;;  %v4466_v53 = vor.u32 %v6370_v40, %v4463_v41  ;;  %v6418_v28 = vld [vmem:[%s9691_s1 + $0x7fc] sm:$0xf]  ;;  %v4655_v54 = vld [vmem:[%s9691_s1 + $0x804] sm:$0xf0]  ;;  %v4451_v61 = vld [vmem:[%s9691_s1 + $0x66c] sm:$0xf0] }
  0x3f   :  { %1398 = vmatpush.bf16.msrb.mxu3 %v4322_v55  ;;  %v512_v49 = vunpack.c.l.b16 %v308_v42  ;;  %v513_v50 = vunpack.c.h.b16 %v308_v42  ;;  %v4562_v57 = vor.u32 %v6394_v47, %v4559_v48  ;;  %v6442_v58 = vld [vmem:[%s9691_s1 + $0x8bc] sm:$0xf]  ;;  %v4751_v59 = vld [vmem:[%s9691_s1 + $0x8c4] sm:$0xf0]  ;;  %v6391_v62 = vld [vmem:[%s9691_s1 + $0x724] sm:$0xf]  ;;  %v4658_v0 = vor.u32 %v6418_v28, %v4655_v54 }
  0x40   :  { %1357 = vmatpush.bf16.msrb.mxu0 %v4594_v4  ;;  %v4547_v63 = vld [vmem:[%s9691_s1 + $0x72c] sm:$0xf0]  ;;  %v4754_v1 = vor.u32 %v6442_v58, %v4751_v59  ;;  %v6415_v2 = vld [vmem:[%s9691_s1 + $0x7e4] sm:$0xf]  ;;  %v4454_v4 = vor.u32 %v6367_v60, %v4451_v61  ;;  %v6364_v10 = vld [vmem:[%s9691_s1 + $0x64c] sm:$0xf] }
  0x41   :  { %1371 = vmatpush.bf16.msrb.mxu1 %v4690_v11  ;;  %v7233_v55 = vpack.c.b16 %v512_v49, %v506_v43  ;;  %v7235_v56 = vpack.c.b16 %v513_v50, %v507_v46  ;;  %v4643_v3 = vld [vmem:[%s9691_s1 + $0x7ec] sm:$0xf0]  ;;  %v4550_v5 = vor.u32 %v6391_v62, %v4547_v63  ;;  %v6439_v8 = vld [vmem:[%s9691_s1 + $0x8a4] sm:$0xf]  ;;  %v4439_v11 = vld [vmem:[%s9691_s1 + $0x654] sm:$0xf0] }
  0x42   :  { %1385 = vmatpush.bf16.msrb.mxu2 %v4214_v22  ;;  %v4739_v9 = vld [vmem:[%s9691_s1 + $0x8ac] sm:$0xf0]  ;;  %v4535_v13 = vld [vmem:[%s9691_s1 + $0x714] sm:$0xf0]  ;;  %v4646_v14 = vor.u32 %v6415_v2, %v4643_v3  ;;  %v6412_v16 = vld [vmem:[%s9691_s1 + $0x7cc] sm:$0xf]  ;;  %v4442_v18 = vor.u32 %v6364_v10, %v4439_v11 }
  0x43   :  { %1399 = vmatpush.bf16.msrb.mxu3 %v4310_v23  ;;  %1358 = vmatmul.bf16.vlgmr.msrb.gmra.mxu0 %v7233_v55  ;;  %v4742_v15 = vor.u32 %v6439_v8, %v4739_v9  ;;  %v6436_v20 = vld [vmem:[%s9691_s1 + $0x88c] sm:$0xf]  ;;  %v4727_v21 = vld [vmem:[%s9691_s1 + $0x894] sm:$0xf0]  ;;  %v6361_v22 = vld [vmem:[%s9691_s1 + $0x634] sm:$0xf] }
  0x44   :  { %1406 = vmatpush.bf16.msra.mxu0 %v4490_v12  ;;  %1372 = vmatmul.bf16.vlgmr.msrb.gmra.mxu1 %v7235_v56  ;;  %v6388_v12 = vld [vmem:[%s9691_s1 + $0x70c] sm:$0xf]  ;;  %v4427_v23 = vld [vmem:[%s9691_s1 + $0x63c] sm:$0xf0]  ;;  %v6385_v24 = vld [vmem:[%s9691_s1 + $0x6f4] sm:$0xf]  ;;  %v4730_v27 = vor.u32 %v6436_v20, %v4727_v21 }
  0x45   :  { %1420 = vmatpush.bf16.msra.mxu1 %v4586_v17  ;;  %1386 = vmatmul.bf16.vlgmr.msrb.gmra.mxu2 %v7063_v6  ;;  %v4631_v17 = vld [vmem:[%s9691_s1 + $0x7d4] sm:$0xf0]  ;;  %v4538_v19 = vor.u32 %v6388_v12, %v4535_v13  ;;  %v4523_v25 = vld [vmem:[%s9691_s1 + $0x6fc] sm:$0xf0]  ;;  %v6433_v33 = vld [vmem:[%s9691_s1 + $0x874] sm:$0xf] }
  0x46   :  { %1434 = vmatpush.bf16.msra.mxu2 %v4682_v29  ;;  %1400 = vmatmul.bf16.vlgmr.msrb.gmra.mxu3 %v7065_v7  ;;  %v4634_v26 = vor.u32 %v6412_v16, %v4631_v17  ;;  %v6409_v29 = vld [vmem:[%s9691_s1 + $0x7b4] sm:$0xf]  ;;  %v4619_v30 = vld [vmem:[%s9691_s1 + $0x7bc] sm:$0xf0]  ;;  %v4526_v32 = vor.u32 %v6385_v24, %v4523_v25  ;;  %v6358_v35 = vld [vmem:[%s9691_s1 + $0x61c] sm:$0xf] }
  0x47   :  { %1448 = vmatpush.bf16.msra.mxu3 %v4778_v31  ;;  %v4430_v31 = vor.u32 %v6361_v22, %v4427_v23  ;;  %v4715_v34 = vld [vmem:[%s9691_s1 + $0x87c] sm:$0xf0]  ;;  %v4415_v36 = vld [vmem:[%s9691_s1 + $0x624] sm:$0xf0]  ;;  %v4622_v39 = vor.u32 %v6409_v29, %v4619_v30  ;;  %v6406_v41 = vld [vmem:[%s9691_s1 + $0x79c] sm:$0xf] }
  0x48   :  { %1407 = vmatpush.bf16.msra.mxu0 %v4478_v37  ;;  %v6382_v37 = vld [vmem:[%s9691_s1 + $0x6dc] sm:$0xf]  ;;  %v4718_v40 = vor.u32 %v6433_v33, %v4715_v34  ;;  %v4607_v42 = vld [vmem:[%s9691_s1 + $0x7a4] sm:$0xf0]  ;;  %v4418_v46 = vor.u32 %v6358_v35, %v4415_v36  ;;  %v6355_v49 = vld [vmem:[%s9691_s1 + $0x604] sm:$0xf] }
  0x49   :  { %1421 = vmatpush.bf16.msra.mxu1 %v4574_v38  ;;  %v4511_v38 = vld [vmem:[%s9691_s1 + $0x6e4] sm:$0xf0]  ;;  %v6430_v43 = vld [vmem:[%s9691_s1 + $0x85c] sm:$0xf]  ;;  %v4403_v50 = vld [vmem:[%s9691_s1 + $0x60c] sm:$0xf0]  ;;  %v4610_v58 = vor.u32 %v6406_v41, %v4607_v42 }
  0x4a   :  { %1435 = vmatpush.bf16.msra.mxu2 %v4670_v51  ;;  %v4514_v47 = vor.u32 %v6382_v37, %v4511_v38  ;;  %v4703_v48 = vld [vmem:[%s9691_s1 + $0x864] sm:$0xf0]  ;;  %v6379_v51 = vld [vmem:[%s9691_s1 + $0x6c4] sm:$0xf]  ;;  %v6330_v28 = vld [vmem:[%s9691_s1 + $0x538] sm:$0xf0]  ;;  %v4406_v63 = vor.u32 %v6355_v49, %v4403_v50 }
  0x4b   :  { %1449 = vmatpush.bf16.msra.mxu3 %v4766_v52  ;;  %v4499_v52 = vld [vmem:[%s9691_s1 + $0x6cc] sm:$0xf0]  ;;  %v4706_v59 = vor.u32 %v6430_v43, %v4703_v48  ;;  %v6403_v60 = vld [vmem:[%s9691_s1 + $0x784] sm:$0xf]  ;;  %v6402_v9 = vld [vmem:[%s9691_s1 + $0x778] sm:$0xf0] }
  0x4c   :  { %1408 = vmatpush.bf16.msra.mxu0 %v4466_v53  ;;  %v4301_v53 = vld [vmem:[%s9691_s1 + $0x530] sm:$0xf]  ;;  %v6427_v2 = vld [vmem:[%s9691_s1 + $0x844] sm:$0xf]  ;;  %v4289_v10 = vld [vmem:[%s9691_s1 + $0x518] sm:$0xf] }
  0x4d   :  { %1422 = vmatpush.bf16.msra.mxu1 %v4562_v57  ;;  %v4397_v54 = vld [vmem:[%s9691_s1 + $0x5f0] sm:$0xf]  ;;  %v6354_v57 = vld [vmem:[%s9691_s1 + $0x5f8] sm:$0xf0]  ;;  %v6327_v11 = vld [vmem:[%s9691_s1 + $0x520] sm:$0xf0] }
  0x4e   :  { %1436 = vmatpush.bf16.msra.mxu2 %v4658_v0  ;;  %v4595_v61 = vld [vmem:[%s9691_s1 + $0x78c] sm:$0xf0]  ;;  %v4502_v0 = vor.u32 %v6379_v51, %v4499_v52  ;;  %v4385_v12 = vld [vmem:[%s9691_s1 + $0x5d8] sm:$0xf]  ;;  %v6351_v13 = vld [vmem:[%s9691_s1 + $0x5e0] sm:$0xf0]  ;;  %v4290_v20 = vor.u32 %v6327_v11, %v4289_v10 }
  0x4f   :  { %1450 = vmatpush.bf16.msra.mxu3 %v4754_v1  ;;  %v4493_v62 = vld [vmem:[%s9691_s1 + $0x6b0] sm:$0xf]  ;;  %v6378_v1 = vld [vmem:[%s9691_s1 + $0x6b8] sm:$0xf0]  ;;  %v4386_v21 = vor.u32 %v6351_v13, %v4385_v12  ;;  %v4577_v22 = vld [vmem:[%s9691_s1 + $0x758] sm:$0xf] }
  0x50   :  { %1409 = vmatpush.bf16.msra.mxu0 %v4454_v4  ;;  %v4691_v3 = vld [vmem:[%s9691_s1 + $0x84c] sm:$0xf0]  ;;  %v4302_v4 = vor.u32 %v6330_v28, %v4301_v53  ;;  %v4494_v16 = vor.u32 %v6378_v1, %v4493_v62  ;;  %v6399_v23 = vld [vmem:[%s9691_s1 + $0x760] sm:$0xf0]  ;;  %v4277_v24 = vld [vmem:[%s9691_s1 + $0x500] sm:$0xf] }
  0x51   :  { %1423 = vmatpush.bf16.msra.mxu1 %v4550_v5  ;;  %v4398_v5 = vor.u32 %v6354_v57, %v4397_v54  ;;  %v4589_v8 = vld [vmem:[%s9691_s1 + $0x770] sm:$0xf]  ;;  %v6324_v25 = vld [vmem:[%s9691_s1 + $0x508] sm:$0xf0]  ;;  %v4578_v30 = vor.u32 %v6399_v23, %v4577_v22  ;;  %v4565_v35 = vld [vmem:[%s9691_s1 + $0x740] sm:$0xf] }
  0x52   :  { %1437 = vmatpush.bf16.msra.mxu2 %v4646_v14  ;;  %v4598_v14 = vor.u32 %v6403_v60, %v4595_v61  ;;  %v4590_v17 = vor.u32 %v6402_v9, %v4589_v8  ;;  %v4278_v33 = vor.u32 %v6324_v25, %v4277_v24  ;;  %v6396_v36 = vld [vmem:[%s9691_s1 + $0x748] sm:$0xf0]  ;;  %v4265_v37 = vld [vmem:[%s9691_s1 + $0x4e8] sm:$0xf]  ;;  %v6321_v38 = vld [vmem:[%s9691_s1 + $0x4f0] sm:$0xf0] }
  0x53   :  { %1451 = vmatpush.bf16.msra.mxu3 %v4742_v15  ;;  %v4694_v15 = vor.u32 %v6427_v2, %v4691_v3  ;;  %v4566_v42 = vor.u32 %v6396_v36, %v4565_v35  ;;  %v4457_v43 = vld [vmem:[%s9691_s1 + $0x668] sm:$0xf]  ;;  %v6393_v50 = vld [vmem:[%s9691_s1 + $0x730] sm:$0xf0]  ;;  %v4253_v51 = vld [vmem:[%s9691_s1 + $0x4d0] sm:$0xf] }
  0x54   :  { %1410 = vmatpush.bf16.msra.mxu0 %v4442_v18  ;;  %v4481_v18 = vld [vmem:[%s9691_s1 + $0x698] sm:$0xf]  ;;  %v4553_v49 = vld [vmem:[%s9691_s1 + $0x728] sm:$0xf]  ;;  %v6318_v52 = vld [vmem:[%s9691_s1 + $0x4d8] sm:$0xf0] }
  0x55   :  { %1424 = vmatpush.bf16.msra.mxu1 %v4538_v19  ;;  %v6375_v19 = vld [vmem:[%s9691_s1 + $0x6a0] sm:$0xf0]  ;;  %v4349_v53 = vld [vmem:[%s9691_s1 + $0x590] sm:$0xf]  ;;  %v6342_v28 = vld [vmem:[%s9691_s1 + $0x598] sm:$0xf0]  ;;  %v4554_v57 = vor.u32 %v6393_v50, %v4553_v49  ;;  %v4254_v60 = vor.u32 %v6318_v52, %v4253_v51 }
  0x56   :  { %1438 = vmatpush.bf16.msra.mxu2 %v4634_v26  ;;  %v4373_v26 = vld [vmem:[%s9691_s1 + $0x5c0] sm:$0xf]  ;;  %v4482_v29 = vor.u32 %v6375_v19, %v4481_v18  ;;  %v4350_v61 = vor.u32 %v6342_v28, %v4349_v53  ;;  %v4541_v62 = vld [vmem:[%s9691_s1 + $0x710] sm:$0xf]  ;;  %v6315_v1 = vld [vmem:[%s9691_s1 + $0x4c0] sm:$0xf0] }
  0x57   :  { %1452 = vmatpush.bf16.msra.mxu3 %v4730_v27  ;;  %v6348_v27 = vld [vmem:[%s9691_s1 + $0x5c8] sm:$0xf0]  ;;  %v4337_v2 = vld [vmem:[%s9691_s1 + $0x578] sm:$0xf]  ;;  %v6339_v3 = vld [vmem:[%s9691_s1 + $0x580] sm:$0xf0] }
  0x58   :  { %1411 = vmatpush.bf16.msra.mxu0 %v4430_v31  ;;  %v4469_v31 = vld [vmem:[%s9691_s1 + $0x680] sm:$0xf]  ;;  %v4374_v34 = vor.u32 %v6348_v27, %v4373_v26  ;;  %v4433_v8 = vld [vmem:[%s9691_s1 + $0x638] sm:$0xf]  ;;  %v6363_v9 = vld [vmem:[%s9691_s1 + $0x640] sm:$0xf0]  ;;  %v4338_v11 = vor.u32 %v6339_v3, %v4337_v2 }
  0x59   :  { %1425 = vmatpush.bf16.msra.mxu1 %v4526_v32  ;;  %v6372_v32 = vld [vmem:[%s9691_s1 + $0x688] sm:$0xf0]  ;;  %v4529_v12 = vld [vmem:[%s9691_s1 + $0x6f8] sm:$0xf]  ;;  %v6387_v13 = vld [vmem:[%s9691_s1 + $0x700] sm:$0xf0]  ;;  %v4434_v18 = vor.u32 %v6363_v9, %v4433_v8 }
  0x5a   :  { %1439 = vmatpush.bf16.msra.mxu2 %v4622_v39  ;;  %v4361_v39 = vld [vmem:[%s9691_s1 + $0x5a8] sm:$0xf]  ;;  %v4470_v41 = vor.u32 %v6372_v32, %v4469_v31  ;;  %v4530_v19 = vor.u32 %v6387_v13, %v4529_v12  ;;  %v4517_v22 = vld [vmem:[%s9691_s1 + $0x6e0] sm:$0xf]  ;;  %v6384_v25 = vld [vmem:[%s9691_s1 + $0x6e8] sm:$0xf0] }
  0x5b   :  { %1453 = vmatpush.bf16.msra.mxu3 %v4718_v40  ;;  %v6345_v40 = vld [vmem:[%s9691_s1 + $0x5b0] sm:$0xf0]  ;;  %v4217_v26 = vld [vmem:[%s9691_s1 + $0x488] sm:$0xf]  ;;  %v4685_v31 = vld [vmem:[%s9691_s1 + $0x830] sm:$0xf]  ;;  %v4518_v36 = vor.u32 %v6384_v25, %v4517_v22 }
  0x5c   :  { %1412 = vmatpush.bf16.msra.mxu0 %v4418_v46  ;;  %v6369_v46 = vld [vmem:[%s9691_s1 + $0x670] sm:$0xf0]  ;;  %v4362_v48 = vor.u32 %v6345_v40, %v4361_v39  ;;  %v6426_v32 = vld [vmem:[%s9691_s1 + $0x838] sm:$0xf0]  ;;  %v4893_v39 = vld [vmem:[%s9691_s1 + $0xa8] sm:$0xf] }
  0x5d   :  { %1426 = vmatpush.bf16.msra.mxu1 %v4514_v47  ;;  %v4266_v47 = vor.u32 %v6321_v38, %v4265_v37  ;;  %v4458_v54 = vor.u32 %v6369_v46, %v4457_v43  ;;  %v6309_v27 = vld [vmem:[%s9691_s1 + $0x490] sm:$0xf0]  ;;  %v4409_v37 = vld [vmem:[%s9691_s1 + $0x608] sm:$0xf]  ;;  %v4673_v51 = vld [vmem:[%s9691_s1 + $0x818] sm:$0xf] }
  0x5e   :  { %1440 = vmatpush.bf16.msra.mxu2 %v4610_v58  ;;  %v4445_v58 = vld [vmem:[%s9691_s1 + $0x650] sm:$0xf]  ;;  %v6357_v38 = vld [vmem:[%s9691_s1 + $0x610] sm:$0xf0]  ;;  %v4218_v40 = vor.u32 %v6309_v27, %v4217_v26  ;;  %v4505_v43 = vld [vmem:[%s9691_s1 + $0x6c8] sm:$0xf] }
  0x5f   :  { %1454 = vmatpush.bf16.msra.mxu3 %v4706_v59  ;;  %v6366_v59 = vld [vmem:[%s9691_s1 + $0x658] sm:$0xf0]  ;;  %v6381_v46 = vld [vmem:[%s9691_s1 + $0x6d0] sm:$0xf0]  ;;  %v4989_v49 = vld [vmem:[%s9691_s1 + $0x168] sm:$0xf] }
  0x60   :  { %1413 = vmatpush.bf16.msra.mxu0 %v4406_v63  ;;  %v6390_v63 = vld [vmem:[%s9691_s1 + $0x718] sm:$0xf0]  ;;  %v6209_v50 = vld [vmem:[%s9691_s1 + $0x170] sm:$0xf0]  ;;  %v6423_v52 = vld [vmem:[%s9691_s1 + $0x820] sm:$0xf0] }
  0x61   :  { %1427 = vmatpush.bf16.msra.mxu1 %v4502_v0  ;;  %v4241_v0 = vld [vmem:[%s9691_s1 + $0x4b8] sm:$0xf]  ;;  %v6447_v28 = vld [vmem:[%s9691_s1 + $0x8e0] sm:$0xf0]  ;;  %v4661_v2 = vld [vmem:[%s9691_s1 + $0x800] sm:$0xf] }
  0x62   :  { %1441 = vmatpush.bf16.msra.mxu2 %v4598_v14  ;;  %v4242_v10 = vor.u32 %v6315_v1, %v4241_v0  ;;  %v4229_v14 = vld [vmem:[%s9691_s1 + $0x4a0] sm:$0xf]  ;;  %v4769_v53 = vld [vmem:[%s9691_s1 + $0x8d8] sm:$0xf]  ;;  %v4977_v0 = vld [vmem:[%s9691_s1 + $0x150] sm:$0xf] }
  0x63   :  { %1455 = vmatpush.bf16.msra.mxu3 %v4694_v15  ;;  %1414 = vmatmul.bf16.vlgmr.msra.gmra.mxu0 %v7133_v44  ;;  %v6312_v15 = vld [vmem:[%s9691_s1 + $0x4a8] sm:$0xf0]  ;;  %v6206_v1 = vld [vmem:[%s9691_s1 + $0x158] sm:$0xf0]  ;;  %v4857_v22 = vld [vmem:[%s9691_s1 + $0x60] sm:$0xf] }
  0x64   :  { %1462 = vmatpush.bf16.msrb.mxu0 %v4302_v4  ;;  %1428 = vmatmul.bf16.vlgmr.msra.gmra.mxu1 %v7135_v45  ;;  %v4446_v4 = vor.u32 %v6366_v59, %v4445_v58  ;;  %v4230_v23 = vor.u32 %v6312_v15, %v4229_v14  ;;  %v4990_v59 = vor.u32 %v6209_v50, %v4989_v49  ;;  %v6420_v3 = vld [vmem:[%s9691_s1 + $0x808] sm:$0xf0]  ;;  %v4965_v14 = vld [vmem:[%s9691_s1 + $0x138] sm:$0xf]  ;;  %v6203_v15 = vld [vmem:[%s9691_s1 + $0x140] sm:$0xf0] }
  0x65   :  { %1476 = vmatpush.bf16.msrb.mxu1 %v4398_v5  ;;  %1442 = vmatmul.bf16.vlgmr.msra.gmra.mxu2 %v7233_v55  ;;  %v4542_v5 = vor.u32 %v6390_v63, %v4541_v62  ;;  %v4674_v62 = vor.u32 %v6423_v52, %v4673_v51  ;;  %v4770_v63 = vor.u32 %v6447_v28, %v4769_v53  ;;  %v6414_v25 = vld [vmem:[%s9691_s1 + $0x7d8] sm:$0xf0]  ;;  %v4733_v26 = vld [vmem:[%s9691_s1 + $0x890] sm:$0xf] }
  0x66   :  { %1490 = vmatpush.bf16.msrb.mxu2 %v4494_v16  ;;  %1456 = vmatmul.bf16.vlgmr.msra.gmra.mxu3 %v7235_v56  ;;  %v4325_v16 = vld [vmem:[%s9691_s1 + $0x560] sm:$0xf]  ;;  %v4978_v9 = vor.u32 %v6206_v1, %v4977_v0  ;;  %v4662_v12 = vor.u32 %v6420_v3, %v4661_v2  ;;  %v6438_v27 = vld [vmem:[%s9691_s1 + $0x898] sm:$0xf0] }
  0x67   :  { %1504 = vmatpush.bf16.msrb.mxu3 %v4590_v17  ;;  %v6336_v17 = vld [vmem:[%s9691_s1 + $0x568] sm:$0xf0] }
  0x68   :  { %1463 = vmatpush.bf16.msrb.mxu0 %v4290_v20  ;;  %v4421_v20 = vld [vmem:[%s9691_s1 + $0x620] sm:$0xf]  ;;  %v4326_v24 = vor.u32 %v6336_v17, %v4325_v16  ;;  %v4649_v16 = vld [vmem:[%s9691_s1 + $0x7e8] sm:$0xf]  ;;  %v6417_v17 = vld [vmem:[%s9691_s1 + $0x7f0] sm:$0xf0] }
  0x69   :  { %1477 = vmatpush.bf16.msrb.mxu1 %v4386_v21  ;;  %v6360_v21 = vld [vmem:[%s9691_s1 + $0x628] sm:$0xf0] }
  0x6a   :  { %1491 = vmatpush.bf16.msrb.mxu2 %v4482_v29  ;;  %v4313_v29 = vld [vmem:[%s9691_s1 + $0x548] sm:$0xf]  ;;  %v4422_v35 = vor.u32 %v6360_v21, %v4421_v20  ;;  %v4966_v21 = vor.u32 %v6203_v15, %v4965_v14 }
  0x6b   :  { %1505 = vmatpush.bf16.msrb.mxu3 %v4578_v30  ;;  %v6333_v30 = vld [vmem:[%s9691_s1 + $0x550] sm:$0xf0] }
  0x6c   :  { %1464 = vmatpush.bf16.msrb.mxu0 %v4278_v33  ;;  %v4781_v33 = vld [vmem:[%s9691_s1 + $0x8f0] sm:$0xf] }
  0x6d   :  { %1478 = vmatpush.bf16.msrb.mxu1 %v4374_v34  ;;  %v6450_v34 = vld [vmem:[%s9691_s1 + $0x8f8] sm:$0xf0] }
  0x6e   :  { %1492 = vmatpush.bf16.msrb.mxu2 %v4470_v41  ;;  %v4314_v41 = vor.u32 %v6333_v30, %v4313_v29 }
  0x6f   :  { %1506 = vmatpush.bf16.msrb.mxu3 %v4566_v42  ;;  %v6185_v42 = vld [vmem:[%s9691_s1 + $0xb0] sm:$0xf0] }
  0x70   :  { %1465 = vmatpush.bf16.msrb.mxu0 %v4266_v47  ;;  %v4686_v47 = vor.u32 %v6426_v32, %v4685_v31  ;;  %v4894_v58 = vor.u32 %v6185_v42, %v4893_v39 }
  0x71   :  { %1479 = vmatpush.bf16.msrb.mxu1 %v4362_v48  ;;  %v4782_v48 = vor.u32 %v6450_v34, %v4781_v33 }
  0x72   :  { %1493 = vmatpush.bf16.msrb.mxu2 %v4458_v54  ;;  %v4410_v54 = vor.u32 %v6357_v38, %v4409_v37 }
  0x73   :  { %1507 = vmatpush.bf16.msrb.mxu3 %v4554_v57  ;;  %v4506_v57 = vor.u32 %v6381_v46, %v4505_v43 }
  0x74   :  { %1466 = vmatpush.bf16.msrb.mxu0 %v4254_v60  ;;  %v4881_v60 = vld [vmem:[%s9691_s1 + $0x90] sm:$0xf] }
  0x75   :  { %1480 = vmatpush.bf16.msrb.mxu1 %v4350_v61  ;;  %v6182_v61 = vld [vmem:[%s9691_s1 + $0x98] sm:$0xf0] }
  0x76   :  { %1494 = vmatpush.bf16.msrb.mxu2 %v4446_v4  ;;  %v4757_v4 = vld [vmem:[%s9691_s1 + $0x8c0] sm:$0xf]  ;;  %v4882_v8 = vor.u32 %v6182_v61, %v4881_v60 }
  0x77   :  { %1508 = vmatpush.bf16.msrb.mxu3 %v4542_v5  ;;  %v6444_v5 = vld [vmem:[%s9691_s1 + $0x8c8] sm:$0xf0] }
  0x78   :  { %1467 = vmatpush.bf16.msrb.mxu0 %v4242_v10  ;;  %v4869_v10 = vld [vmem:[%s9691_s1 + $0x78] sm:$0xf]  ;;  %v4758_v13 = vor.u32 %v6444_v5, %v4757_v4 }
  0x79   :  { %1481 = vmatpush.bf16.msrb.mxu1 %v4338_v11  ;;  %v6179_v11 = vld [vmem:[%s9691_s1 + $0x80] sm:$0xf0] }
  0x7a   :  { %1495 = vmatpush.bf16.msrb.mxu2 %v4434_v18  ;;  %v4745_v18 = vld [vmem:[%s9691_s1 + $0x8a8] sm:$0xf]  ;;  %v4870_v20 = vor.u32 %v6179_v11, %v4869_v10 }
  0x7b   :  { %1509 = vmatpush.bf16.msrb.mxu3 %v4530_v19  ;;  %v6441_v19 = vld [vmem:[%s9691_s1 + $0x8b0] sm:$0xf0] }
  0x7c   :  { %1468 = vmatpush.bf16.msrb.mxu0 %v4230_v23  ;;  %v6176_v23 = vld [vmem:[%s9691_s1 + $0x68] sm:$0xf0] }
  0x7d   :  { %1482 = vmatpush.bf16.msrb.mxu1 %v4326_v24  ;;  %v4637_v24 = vld [vmem:[%s9691_s1 + $0x7d0] sm:$0xf] }
  0x7e   :  { %1496 = vmatpush.bf16.msrb.mxu2 %v4422_v35 }
  0x7f   :  { %1510 = vmatpush.bf16.msrb.mxu3 %v4518_v36 }
  0x80   :  { %1469 = vmatpush.bf16.msrb.mxu0 %v4218_v40 }
  0x81   :  { %1483 = vmatpush.bf16.msrb.mxu1 %v4314_v41 }
  0x82   :  { %1497 = vmatpush.bf16.msrb.mxu2 %v4410_v54 }
  0x83   :  { %1511 = vmatpush.bf16.msrb.mxu3 %v4506_v57  ;;  %1470 = vmatmul.bf16.vlgmr.msrb.gmra.mxu0 %v7063_v6  ;;  %v4953_v6 = vld [vmem:[%s9691_s1 + $0x120] sm:$0xf] }
  0x84   :  { %1518 = vmatpush.bf16.msra.mxu0 %v4686_v47  ;;  %1484 = vmatmul.bf16.vlgmr.msrb.gmra.mxu1 %v7065_v7  ;;  %v4650_v7 = vor.u32 %v6417_v17, %v4649_v16 }
  0x85   :  { %1532 = vmatpush.bf16.msra.mxu1 %v4782_v48  ;;  %1498 = vmatmul.bf16.vlgmr.msrb.gmra.mxu2 %v7133_v44  ;;  %v4746_v44 = vor.u32 %v6441_v19, %v4745_v18 }
  0x86   :  { %2344 = vmatpush.bf16.msra.mxu2 %v4894_v58  ;;  %1512 = vmatmul.bf16.vlgmr.msrb.gmra.mxu3 %v7135_v45  ;;  %v6200_v45 = vld [vmem:[%s9691_s1 + $0x128] sm:$0xf0] }
  0x87   :  { %2358 = vmatpush.bf16.msra.mxu3 %v4990_v59 }
  0x88   :  { %1519 = vmatpush.bf16.msra.mxu0 %v4674_v62 }
  0x89   :  { %1533 = vmatpush.bf16.msra.mxu1 %v4770_v63 }
  0x8a   :  { %2345 = vmatpush.bf16.msra.mxu2 %v4882_v8 }
  0x8b   :  { %2359 = vmatpush.bf16.msra.mxu3 %v4978_v9 }
  0x8c   :  { %1520 = vmatpush.bf16.msra.mxu0 %v4662_v12 }
  0x8d   :  { %1534 = vmatpush.bf16.msra.mxu1 %v4758_v13 }
  0x8e   :  { %9 = vsyncpa [#allocation3], 0  ;;  %2346 = vmatpush.bf16.msra.mxu2 %v4870_v20  ;;  %v4858_v29 = vor.u32 %v6176_v23, %v4857_v22  ;;  %v4954_v30 = vor.u32 %v6200_v45, %v4953_v6  ;;  %v4845_v31 = vld [vmem:[%s9691_s1 + $0x48] sm:$0xf]  ;;  %v6173_v32 = vld [vmem:[%s9691_s1 + $0x50] sm:$0xf0]  ;;  %v4638_v33 = vor.u32 %v6414_v25, %v4637_v24  ;;  %v4734_v34 = vor.u32 %v6438_v27, %v4733_v26 }
  0x8f   :  { %2360 = vmatpush.bf16.msra.mxu3 %v4966_v21  ;;  %v4941_v35 = vld [vmem:[%s9691_s1 + $0x108] sm:$0xf]  ;;  %v6197_v36 = vld [vmem:[%s9691_s1 + $0x110] sm:$0xf0]  ;;  %v4625_v37 = vld [vmem:[%s9691_s1 + $0x7b8] sm:$0xf]  ;;  %v4846_v41 = vor.u32 %v6173_v32, %v4845_v31 }
  0x90   :  { %1521 = vmatpush.bf16.msra.mxu0 %v4650_v7  ;;  %v6411_v38 = vld [vmem:[%s9691_s1 + $0x7c0] sm:$0xf0]  ;;  %v4721_v39 = vld [vmem:[%s9691_s1 + $0x878] sm:$0xf]  ;;  %v4942_v42 = vor.u32 %v6197_v36, %v4941_v35  ;;  %v4833_v43 = vld [vmem:[%s9691_s1 + $0x30] sm:$0xf] }
  0x91   :  { %1535 = vmatpush.bf16.msra.mxu1 %v4746_v44  ;;  %v6435_v40 = vld [vmem:[%s9691_s1 + $0x880] sm:$0xf0]  ;;  %v6170_v46 = vld [vmem:[%s9691_s1 + $0x38] sm:$0xf0]  ;;  %v4626_v47 = vor.u32 %v6411_v38, %v4625_v37  ;;  %v4929_v49 = vld [vmem:[%s9691_s1 + $0xf0] sm:$0xf] }
  0x92   :  { %2347 = vmatpush.bf16.msra.mxu2 %v4858_v29  ;;  %v4722_v48 = vor.u32 %v6435_v40, %v4721_v39  ;;  %v6194_v50 = vld [vmem:[%s9691_s1 + $0xf8] sm:$0xf0]  ;;  %v4613_v51 = vld [vmem:[%s9691_s1 + $0x7a0] sm:$0xf]  ;;  %v6408_v52 = vld [vmem:[%s9691_s1 + $0x7a8] sm:$0xf0]  ;;  %v4834_v54 = vor.u32 %v6170_v46, %v4833_v43 }
  0x93   :  { %2361 = vmatpush.bf16.msra.mxu3 %v4954_v30  ;;  %v4709_v53 = vld [vmem:[%s9691_s1 + $0x860] sm:$0xf]  ;;  %v6432_v28 = vld [vmem:[%s9691_s1 + $0x868] sm:$0xf0]  ;;  %v4930_v57 = vor.u32 %v6194_v50, %v4929_v49  ;;  %v4821_v58 = vld [vmem:[%s9691_s1 + $0x18] sm:$0xf]  ;;  %v4614_v61 = vor.u32 %v6408_v52, %v4613_v51 }
  0x94   :  { %1522 = vmatpush.bf16.msra.mxu0 %v4638_v33  ;;  %v6167_v59 = vld [vmem:[%s9691_s1 + $0x20] sm:$0xf0]  ;;  %v4917_v60 = vld [vmem:[%s9691_s1 + $0xd8] sm:$0xf]  ;;  %v4710_v62 = vor.u32 %v6432_v28, %v4709_v53  ;;  %v4601_v0 = vld [vmem:[%s9691_s1 + $0x788] sm:$0xf] }
  0x95   :  { %1536 = vmatpush.bf16.msra.mxu1 %v4734_v34  ;;  %v6191_v63 = vld [vmem:[%s9691_s1 + $0xe0] sm:$0xf0]  ;;  %v6405_v1 = vld [vmem:[%s9691_s1 + $0x790] sm:$0xf0]  ;;  %v4697_v2 = vld [vmem:[%s9691_s1 + $0x848] sm:$0xf]  ;;  %v4822_v10 = vor.u32 %v6167_v59, %v4821_v58 }
  0x96   :  { %2348 = vmatpush.bf16.msra.mxu2 %v4846_v41  ;;  %v6429_v3 = vld [vmem:[%s9691_s1 + $0x850] sm:$0xf0]  ;;  %v5085_v4 = vld [vmem:[%s9691_s1 + $0x228] sm:$0xf]  ;;  %v4918_v11 = vor.u32 %v6191_v63, %v4917_v60  ;;  %v4809_v12 = vld [vmem:[%s9691_s1] sm:$0xf]  ;;  %v4602_v13 = vor.u32 %v6405_v1, %v4601_v0 }
  0x97   :  { %2362 = vmatpush.bf16.msra.mxu3 %v4942_v42  ;;  %v6233_v5 = vld [vmem:[%s9691_s1 + $0x230] sm:$0xf0]  ;;  %v5181_v8 = vld [vmem:[%s9691_s1 + $0x2e8] sm:$0xf]  ;;  %v4698_v14 = vor.u32 %v6429_v3, %v4697_v2  ;;  %v6164_v15 = vld [vmem:[%s9691_s1 + $0x8] sm:$0xf0] }
  0x98   :  { %1523 = vmatpush.bf16.msra.mxu0 %v4626_v47  ;;  %v6257_v9 = vld [vmem:[%s9691_s1 + $0x2f0] sm:$0xf0]  ;;  %v4905_v16 = vld [vmem:[%s9691_s1 + $0xc0] sm:$0xf]  ;;  %v6188_v17 = vld [vmem:[%s9691_s1 + $0xc8] sm:$0xf0]  ;;  %v5086_v18 = vor.u32 %v6233_v5, %v5085_v4  ;;  %v4810_v44 = vor.u32 %v6164_v15, %v4809_v12 }
  0x99   :  { %1537 = vmatpush.bf16.msra.mxu1 %v4722_v48  ;;  %v5182_v19 = vor.u32 %v6257_v9, %v5181_v8  ;;  %v5277_v20 = vld [vmem:[%s9691_s1 + $0x3a8] sm:$0xf]  ;;  %v6281_v21 = vld [vmem:[%s9691_s1 + $0x3b0] sm:$0xf0]  ;;  %v4785_v22 = vld [vmem:[%s9690_s0] sm:$0xf]  ;;  %v4906_v45 = vor.u32 %v6188_v17, %v4905_v16 }
  0x9a   :  { %2349 = vmatpush.bf16.msra.mxu2 %v4834_v54  ;;  %v6160_v23 = vld [vmem:[%s9690_s0 + $0x2c] sm:$0xf0]  ;;  %v5373_v6 = vld [vmem:[%s9691_s1 + $0x468] sm:$0xf]  ;;  %v6305_v7 = vld [vmem:[%s9691_s1 + $0x470] sm:$0xf0]  ;;  %v5278_v27 = vor.u32 %v6281_v21, %v5277_v20 }
  0x9b   :  { %2363 = vmatpush.bf16.msra.mxu3 %v4930_v57  ;;  %v6157_v24 = vld [vmem:[%s9690_s0 + $0x4] sm:$0xf]  ;;  %v4787_v25 = vld [vmem:[%s9690_s0 + $0x30] sm:$0xf0]  ;;  %v5073_v26 = vld [vmem:[%s9691_s1 + $0x210] sm:$0xf]  ;;  %v5374_v32 = vor.u32 %v6305_v7, %v5373_v6  ;;  %v7813_v35 = vor.u32 %v6160_v23, %v4785_v22 }
  0x9c   :  { %1524 = vmatpush.bf16.msra.mxu0 %v4614_v61  ;;  %v6230_v29 = vld [vmem:[%s9691_s1 + $0x218] sm:$0xf0]  ;;  %v5169_v30 = vld [vmem:[%s9691_s1 + $0x2d0] sm:$0xf]  ;;  %v7815_v36 = vor.u32 %v6157_v24, %v4787_v25  ;;  %v5061_v41 = vld [vmem:[%s9691_s1 + $0x1f8] sm:$0xf] }
  0x9d   :  { %1538 = vmatpush.bf16.msra.mxu1 %v4710_v62  ;;  %v6254_v31 = vld [vmem:[%s9691_s1 + $0x2d8] sm:$0xf0]  ;;  %v5265_v33 = vld [vmem:[%s9691_s1 + $0x390] sm:$0xf]  ;;  %v5074_v39 = vor.u32 %v6230_v29, %v5073_v26  ;;  %v6227_v43 = vld [vmem:[%s9691_s1 + $0x200] sm:$0xf0] }
  0x9e   :  { %2350 = vmatpush.bf16.msra.mxu2 %v4822_v10  ;;  %v6278_v34 = vld [vmem:[%s9691_s1 + $0x398] sm:$0xf0]  ;;  %v5361_v37 = vld [vmem:[%s9691_s1 + $0x450] sm:$0xf]  ;;  %v5170_v40 = vor.u32 %v6254_v31, %v5169_v30  ;;  %v5157_v46 = vld [vmem:[%s9691_s1 + $0x2b8] sm:$0xf]  ;;  %v5062_v51 = vor.u32 %v6227_v43, %v5061_v41 }
  0x9f   :  { %2364 = vmatpush.bf16.msra.mxu3 %v4918_v11  ;;  %v6302_v38 = vld [vmem:[%s9691_s1 + $0x458] sm:$0xf0]  ;;  %v5266_v42 = vor.u32 %v6278_v34, %v5265_v33  ;;  %v6251_v47 = vld [vmem:[%s9691_s1 + $0x2c0] sm:$0xf0]  ;;  %v5349_v50 = vld [vmem:[%s9691_s1 + $0x438] sm:$0xf] }
  0xa0   :  { %1525 = vmatpush.bf16.msra.mxu0 %v4602_v13  ;;  %v5362_v48 = vor.u32 %v6302_v38, %v5361_v37  ;;  %v6275_v49 = vld [vmem:[%s9691_s1 + $0x380] sm:$0xf0]  ;;  %v5158_v52 = vor.u32 %v6251_v47, %v5157_v46  ;;  %v5049_v53 = vld [vmem:[%s9691_s1 + $0x1e0] sm:$0xf]  ;;  %v6224_v54 = vld [vmem:[%s9691_s1 + $0x1e8] sm:$0xf0] }
  0xa1   :  { %1539 = vmatpush.bf16.msra.mxu1 %v4698_v14  ;;  %v5145_v57 = vld [vmem:[%s9691_s1 + $0x2a0] sm:$0xf]  ;;  %v6248_v58 = vld [vmem:[%s9691_s1 + $0x2a8] sm:$0xf0]  ;;  %v5050_v0 = vor.u32 %v6224_v54, %v5049_v53  ;;  %v5037_v2 = vld [vmem:[%s9691_s1 + $0x1c8] sm:$0xf] }
  0xa2   :  { %2351 = vmatpush.bf16.msra.mxu2 %v4810_v44  ;;  %v5241_v60 = vld [vmem:[%s9691_s1 + $0x360] sm:$0xf]  ;;  %v6272_v61 = vld [vmem:[%s9691_s1 + $0x368] sm:$0xf0]  ;;  %v5146_v1 = vor.u32 %v6248_v58, %v5145_v57  ;;  %v6221_v4 = vld [vmem:[%s9691_s1 + $0x1d0] sm:$0xf0] }
  0xa3   :  { %2365 = vmatpush.bf16.msra.mxu3 %v4906_v45  ;;  %1526 = vmatmul.bf16.vlgmr.msra.gmra.mxu0 %v7233_v55  ;;  %v5253_v55 = vld [vmem:[%s9691_s1 + $0x378] sm:$0xf]  ;;  %v5337_v62 = vld [vmem:[%s9691_s1 + $0x420] sm:$0xf]  ;;  %v6296_v63 = vld [vmem:[%s9691_s1 + $0x428] sm:$0xf0]  ;;  %v5242_v3 = vor.u32 %v6272_v61, %v5241_v60  ;;  %v5038_v14 = vor.u32 %v6221_v4, %v5037_v2 }
  0xa4   :  { %2372 = vmatpush.bf16.msrb.mxu0 %v5086_v18  ;;  %1540 = vmatmul.bf16.vlgmr.msra.gmra.mxu1 %v7235_v56  ;;  %v6299_v56 = vld [vmem:[%s9691_s1 + $0x440] sm:$0xf0]  ;;  %v5254_v28 = vor.u32 %v6275_v49, %v5253_v55  ;;  %v5133_v5 = vld [vmem:[%s9691_s1 + $0x288] sm:$0xf]  ;;  %v6245_v8 = vld [vmem:[%s9691_s1 + $0x290] sm:$0xf0]  ;;  %v5338_v9 = vor.u32 %v6296_v63, %v5337_v62 }
  0xa5   :  { %2386 = vmatpush.bf16.msrb.mxu1 %v5182_v19  ;;  %2352 = vmatmul.bf16.vlgmr.msra.gmra.mxu2 %v7813_v35  ;;  %v5350_v59 = vor.u32 %v6299_v56, %v5349_v50  ;;  %v5229_v10 = vld [vmem:[%s9691_s1 + $0x348] sm:$0xf]  ;;  %v6269_v11 = vld [vmem:[%s9691_s1 + $0x350] sm:$0xf0]  ;;  %v5134_v15 = vor.u32 %v6245_v8, %v5133_v5  ;;  %v5025_v16 = vld [vmem:[%s9691_s1 + $0x1b0] sm:$0xf] }
  0xa6   :  { %2400 = vmatpush.bf16.msrb.mxu2 %v5278_v27  ;;  %2366 = vmatmul.bf16.vlgmr.msra.gmra.mxu3 %v7815_v36  ;;  %v5325_v12 = vld [vmem:[%s9691_s1 + $0x408] sm:$0xf]  ;;  %v6293_v13 = vld [vmem:[%s9691_s1 + $0x410] sm:$0xf0]  ;;  %v5230_v17 = vor.u32 %v6269_v11, %v5229_v10  ;;  %v6218_v18 = vld [vmem:[%s9691_s1 + $0x1b8] sm:$0xf0] }
  0xa7   :  { %2414 = vmatpush.bf16.msrb.mxu3 %v5374_v32  ;;  %v5121_v19 = vld [vmem:[%s9691_s1 + $0x270] sm:$0xf]  ;;  %v6242_v20 = vld [vmem:[%s9691_s1 + $0x278] sm:$0xf0]  ;;  %v5326_v21 = vor.u32 %v6293_v13, %v5325_v12  ;;  %v5026_v44 = vor.u32 %v6218_v18, %v5025_v16  ;;  %v5013_v24 = vld [vmem:[%s9691_s1 + $0x198] sm:$0xf] }
  0xa8   :  { %2373 = vmatpush.bf16.msrb.mxu0 %v5074_v39  ;;  %v5217_v22 = vld [vmem:[%s9691_s1 + $0x330] sm:$0xf]  ;;  %v6266_v23 = vld [vmem:[%s9691_s1 + $0x338] sm:$0xf0]  ;;  %v5122_v45 = vor.u32 %v6242_v20, %v5121_v19  ;;  %v6215_v25 = vld [vmem:[%s9691_s1 + $0x1a0] sm:$0xf0] }
  0xa9   :  { %2387 = vmatpush.bf16.msrb.mxu1 %v5170_v40  ;;  %v5313_v6 = vld [vmem:[%s9691_s1 + $0x3f0] sm:$0xf]  ;;  %v6290_v7 = vld [vmem:[%s9691_s1 + $0x3f8] sm:$0xf0]  ;;  %v5218_v26 = vor.u32 %v6266_v23, %v5217_v22  ;;  %v5109_v27 = vld [vmem:[%s9691_s1 + $0x258] sm:$0xf]  ;;  %v5014_v41 = vor.u32 %v6215_v25, %v5013_v24 }
  0xaa   :  { %2401 = vmatpush.bf16.msrb.mxu2 %v5266_v42  ;;  %v6239_v29 = vld [vmem:[%s9691_s1 + $0x260] sm:$0xf0]  ;;  %v5205_v30 = vld [vmem:[%s9691_s1 + $0x318] sm:$0xf]  ;;  %v5314_v31 = vor.u32 %v6290_v7, %v5313_v6  ;;  %v5001_v37 = vld [vmem:[%s9691_s1 + $0x180] sm:$0xf] }
  0xab   :  { %2415 = vmatpush.bf16.msrb.mxu3 %v5362_v48  ;;  %v6263_v32 = vld [vmem:[%s9691_s1 + $0x320] sm:$0xf0]  ;;  %v5301_v33 = vld [vmem:[%s9691_s1 + $0x3d8] sm:$0xf]  ;;  %v6212_v38 = vld [vmem:[%s9691_s1 + $0x188] sm:$0xf0]  ;;  %v5110_v42 = vor.u32 %v6239_v29, %v5109_v27 }
  0xac   :  { %2374 = vmatpush.bf16.msrb.mxu0 %v5062_v51  ;;  %v6287_v34 = vld [vmem:[%s9691_s1 + $0x3e0] sm:$0xf0]  ;;  %v5097_v39 = vld [vmem:[%s9691_s1 + $0x240] sm:$0xf]  ;;  %v6236_v40 = vld [vmem:[%s9691_s1 + $0x248] sm:$0xf0]  ;;  %v5206_v48 = vor.u32 %v6263_v32, %v5205_v30  ;;  %v1303_v56 = vpop.f32.mrf.mxu0  ;;  %v5002_v61 = vor.u32 %v6212_v38, %v5001_v37 }
  0xad   :  { %2388 = vmatpush.bf16.msrb.mxu1 %v5158_v52  ;;  %v5193_v43 = vld [vmem:[%s9691_s1 + $0x300] sm:$0xf]  ;;  %v6260_v46 = vld [vmem:[%s9691_s1 + $0x308] sm:$0xf0]  ;;  %v4895_v55 = vld [vmem:[%s9691_s1 + $0xb4] sm:$0xf0]  ;;  %v1317_v51 = vpop.f32.mrf.mxu1  ;;  %v5302_v52 = vor.u32 %v6287_v34, %v5301_v33  ;;  %v5098_v62 = vor.u32 %v6236_v40, %v5097_v39 }
  0xae   :  { %2402 = vmatpush.bf16.msrb.mxu2 %v5254_v28  ;;  %v6184_v47 = vld [vmem:[%s9691_s1 + $0xac] sm:$0xf]  ;;  %v4991_v50 = vld [vmem:[%s9691_s1 + $0x174] sm:$0xf0]  ;;  %v5289_v54 = vld [vmem:[%s9691_s1 + $0x3c0] sm:$0xf]  ;;  %v7986_v57 = vadd.f32 %v1317_v51, %v1303_v56  ;;  %v5194_v2 = vor.u32 %v6260_v46, %v5193_v43 }
  0xaf   :  { %2416 = vmatpush.bf16.msrb.mxu3 %v5350_v59  ;;  %v6208_v49 = vld [vmem:[%s9691_s1 + $0x16c] sm:$0xf]  ;;  %v5087_v28 = vld [vmem:[%s9691_s1 + $0x234] sm:$0xf0]  ;;  %v4793_v59 = vld [vmem:[%s9690_s0 + $0x8] sm:$0xf] }
  0xb0   :  { %2375 = vmatpush.bf16.msrb.mxu0 %v5050_v0  ;;  %v6232_v53 = vld [vmem:[%s9691_s1 + $0x22c] sm:$0xf]  ;;  %v6161_v60 = vld [vmem:[%s9690_s0 + $0x34] sm:$0xf0]  ;;  %v4801_v63 = vld [vmem:[%s9690_s0 + $0x10] sm:$0xf] }
  0xb1   :  { %2389 = vmatpush.bf16.msrb.mxu1 %v5146_v1  ;;  %v6284_v58 = vld [vmem:[%s9691_s1 + $0x3c8] sm:$0xf0]  ;;  %v6162_v0 = vld [vmem:[%s9690_s0 + $0x3c] sm:$0xf0]  ;;  %v5183_v4 = vld [vmem:[%s9691_s1 + $0x2f4] sm:$0xf0]  ;;  %v5090_v10 = vor.u32 %v6232_v53, %v5087_v28 }
  0xb2   :  { %2403 = vmatpush.bf16.msrb.mxu2 %v5242_v3  ;;  %v6256_v1 = vld [vmem:[%s9691_s1 + $0x2ec] sm:$0xf]  ;;  %v4898_v3 = vor.u32 %v6184_v47, %v4895_v55  ;;  %v4795_v8 = vld [vmem:[%s9690_s0 + $0x38] sm:$0xf0]  ;;  %v6159_v11 = vld [vmem:[%s9690_s0 + $0x14] sm:$0xf]  ;;  %v8035_v19 = vor.u32 %v6162_v0, %v4801_v63 }
  0xb3   :  { %2417 = vmatpush.bf16.msrb.mxu3 %v5338_v9  ;;  %v6158_v5 = vld [vmem:[%s9690_s0 + $0xc] sm:$0xf]  ;;  %v4994_v9 = vor.u32 %v6208_v49, %v4991_v50  ;;  %v6181_v12 = vld [vmem:[%s9691_s1 + $0x94] sm:$0xf]  ;;  %v4883_v13 = vld [vmem:[%s9691_s1 + $0x9c] sm:$0xf0]  ;;  %v5186_v20 = vor.u32 %v6256_v1, %v5183_v4 }
  0xb4   :  { %2376 = vmatpush.bf16.msrb.mxu0 %v5038_v14  ;;  %v5290_v14 = vor.u32 %v6284_v58, %v5289_v54  ;;  %v4803_v16 = vld [vmem:[%s9690_s0 + $0x40] sm:$0xf0]  ;;  %v4979_v18 = vld [vmem:[%s9691_s1 + $0x15c] sm:$0xf0]  ;;  %v8043_v23 = vor.u32 %v6158_v5, %v4795_v8  ;;  %v4886_v6 = vor.u32 %v6181_v12, %v4883_v13  ;;  %v6253_v7 = vld [vmem:[%s9691_s1 + $0x2d4] sm:$0xf] }
  0xb5   :  { %2390 = vmatpush.bf16.msrb.mxu1 %v5134_v15  ;;  %v8024_v15 = vor.u32 %v6161_v60, %v4793_v59  ;;  %v5075_v22 = vld [vmem:[%s9691_s1 + $0x21c] sm:$0xf0]  ;;  %v6178_v25 = vld [vmem:[%s9691_s1 + $0x7c] sm:$0xf]  ;;  %v4967_v30 = vld [vmem:[%s9691_s1 + $0x144] sm:$0xf0]  ;;  %v8076_v37 = vpop.f32.mrf.mxu1 }
  0xb6   :  { %2404 = vmatpush.bf16.msrb.mxu2 %v5230_v17  ;;  %v6205_v17 = vld [vmem:[%s9691_s1 + $0x154] sm:$0xf]  ;;  %v6202_v29 = vld [vmem:[%s9691_s1 + $0x13c] sm:$0xf]  ;;  %v5063_v34 = vld [vmem:[%s9691_s1 + $0x204] sm:$0xf0] }
  0xb7   :  { %2418 = vmatpush.bf16.msrb.mxu3 %v5326_v21  ;;  %v6229_v21 = vld [vmem:[%s9691_s1 + $0x214] sm:$0xf]  ;;  %v4982_v24 = vor.u32 %v6205_v17, %v4979_v18  ;;  %v6226_v33 = vld [vmem:[%s9691_s1 + $0x1fc] sm:$0xf]  ;;  %v5159_v40 = vld [vmem:[%s9691_s1 + $0x2c4] sm:$0xf0]  ;;  %v4970_v43 = vor.u32 %v6202_v29, %v4967_v30 }
  0xb8   :  { %2377 = vmatpush.bf16.msrb.mxu0 %v5026_v44  ;;  %v5171_v44 = vld [vmem:[%s9691_s1 + $0x2dc] sm:$0xf0]  ;;  %v5078_v27 = vor.u32 %v6229_v21, %v5075_v22  ;;  %v6250_v39 = vld [vmem:[%s9691_s1 + $0x2bc] sm:$0xf]  ;;  %v6175_v46 = vld [vmem:[%s9691_s1 + $0x64] sm:$0xf]  ;;  %v5066_v55 = vor.u32 %v6226_v33, %v5063_v34 }
  0xb9   :  { %2391 = vmatpush.bf16.msrb.mxu1 %v5122_v45  ;;  %v8051_v45 = vor.u32 %v6159_v11, %v4803_v16  ;;  %v5174_v32 = vor.u32 %v6253_v7, %v5171_v44  ;;  %v4859_v47 = vld [vmem:[%s9691_s1 + $0x6c] sm:$0xf0]  ;;  %v6199_v49 = vld [vmem:[%s9691_s1 + $0x124] sm:$0xf]  ;;  %v5162_v56 = vor.u32 %v6250_v39, %v5159_v40  ;;  %v6172_v59 = vld [vmem:[%s9691_s1 + $0x4c] sm:$0xf] }
  0xba   :  { %2405 = vmatpush.bf16.msrb.mxu2 %v5218_v26  ;;  %v4871_v26 = vld [vmem:[%s9691_s1 + $0x84] sm:$0xf0]  ;;  %v4955_v50 = vld [vmem:[%s9691_s1 + $0x12c] sm:$0xf0]  ;;  %v6223_v51 = vld [vmem:[%s9691_s1 + $0x1e4] sm:$0xf]  ;;  %v4862_v28 = vor.u32 %v6175_v46, %v4859_v47 }
  0xbb   :  { %2419 = vmatpush.bf16.msrb.mxu3 %v5314_v31  ;;  %v8067_v31 = vpop.f32.mrf.mxu0  ;;  %v4874_v38 = vor.u32 %v6178_v25, %v4871_v26  ;;  %v6247_v54 = vld [vmem:[%s9691_s1 + $0x2a4] sm:$0xf]  ;;  %v4958_v58 = vor.u32 %v6199_v49, %v4955_v50  ;;  %v4847_v60 = vld [vmem:[%s9691_s1 + $0x54] sm:$0xf0]  ;;  %v6220_v1 = vld [vmem:[%s9691_s1 + $0x1cc] sm:$0xf] }
  0xbc   :  { %2378 = vmatpush.bf16.msrb.mxu0 %v5014_v41  ;;  %v1331_v41 = vpop.f32.mrf.mxu2  ;;  %v4943_v63 = vld [vmem:[%s9691_s1 + $0x114] sm:$0xf0]  ;;  %v6244_v4 = vld [vmem:[%s9691_s1 + $0x28c] sm:$0xf]  ;;  %v4835_v11 = vld [vmem:[%s9691_s1 + $0x3c] sm:$0xf0] }
  0xbd   :  { %2392 = vmatpush.bf16.msrb.mxu1 %v5110_v42  ;;  %v1345_v42 = vpop.f32.mrf.mxu3  ;;  %v5135_v5 = vld [vmem:[%s9691_s1 + $0x294] sm:$0xf0]  ;;  %v6193_v16 = vld [vmem:[%s9691_s1 + $0xf4] sm:$0xf]  ;;  %v4931_v17 = vld [vmem:[%s9691_s1 + $0xfc] sm:$0xf0] }
  0xbe   :  { %2406 = vmatpush.bf16.msrb.mxu2 %v5206_v48  ;;  %v1332_v48 = vadd.f32 %v1331_v41, %v7986_v57  ;;  %v5147_v57 = vld [vmem:[%s9691_s1 + $0x2ac] sm:$0xf0]  ;;  %v5138_v21 = vor.u32 %v6244_v4, %v5135_v5  ;;  %v6217_v22 = vld [vmem:[%s9691_s1 + $0x1b4] sm:$0xf]  ;;  %v5123_v25 = vld [vmem:[%s9691_s1 + $0x27c] sm:$0xf0]  ;;  %v4934_v26 = vor.u32 %v6193_v16, %v4931_v17 }
  0xbf   :  { %2420 = vmatpush.bf16.msrb.mxu3 %v5302_v52  ;;  %v5051_v52 = vld [vmem:[%s9691_s1 + $0x1ec] sm:$0xf0]  ;;  %v5150_v0 = vor.u32 %v6247_v54, %v5147_v57  ;;  %v4823_v29 = vld [vmem:[%s9691_s1 + $0x24] sm:$0xf0]  ;;  %v6238_v40 = vld [vmem:[%s9691_s1 + $0x25c] sm:$0xf] }
  0xc0   :  { %2379 = vmatpush.bf16.msrb.mxu0 %v5002_v61  ;;  %v1346_v53 = vadd.f32 %v1345_v42, %v1332_v48  ;;  %v5054_v61 = vor.u32 %v6223_v51, %v5051_v52  ;;  %v4919_v33 = vld [vmem:[%s9691_s1 + $0xe4] sm:$0xf0]  ;;  %v4811_v46 = vld [vmem:[%s9691_s1 + $0xc] sm:$0xf0]  ;;  %v6187_v48 = vld [vmem:[%s9691_s1 + $0xc4] sm:$0xf] }
  0xc1   :  { %2393 = vmatpush.bf16.msrb.mxu1 %v5098_v62  ;;  %v6196_v62 = vld [vmem:[%s9691_s1 + $0x10c] sm:$0xf]  ;;  %v5015_v39 = vld [vmem:[%s9691_s1 + $0x1a4] sm:$0xf0]  ;;  %v6211_v49 = vld [vmem:[%s9691_s1 + $0x184] sm:$0xf] }
  0xc2   :  { %2407 = vmatpush.bf16.msrb.mxu2 %v5194_v2  ;;  %v5039_v2 = vld [vmem:[%s9691_s1 + $0x1d4] sm:$0xf0]  ;;  %v5111_v42 = vld [vmem:[%s9691_s1 + $0x264] sm:$0xf0]  ;;  %v6280_v51 = vld [vmem:[%s9691_s1 + $0x3ac] sm:$0xf] }
  0xc3   :  { %2421 = vmatpush.bf16.msrb.mxu3 %v5290_v14  ;;  %2380 = vmatmul.bf16.vlgmr.msrb.gmra.mxu0 %v8024_v15  ;;  %v1359_v8 = vpop.f32.mrf.mxu0  ;;  %v5042_v14 = vor.u32 %v6220_v1, %v5039_v2  ;;  %v5279_v52 = vld [vmem:[%s9691_s1 + $0x3b4] sm:$0xf0]  ;;  %v6304_v54 = vld [vmem:[%s9691_s1 + $0x46c] sm:$0xf]  ;;  %v6210_v4 = vld [vmem:[%s9691_s1 + $0x178] sm:$0xf0] }
  0xc4   :  { %2428 = vmatpush.bf16.msra.mxu0 %v4898_v3  ;;  %2394 = vmatmul.bf16.vlgmr.msrb.gmra.mxu1 %v8043_v23  ;;  %v4850_v3 = vor.u32 %v6172_v59, %v4847_v60  ;;  %v8140_v12 = vpop.f32.mrf.mxu2  ;;  %v1360_v13 = vadd.f32 %v1359_v8, %v1346_v53  ;;  %v5375_v57 = vld [vmem:[%s9691_s1 + $0x474] sm:$0xf0]  ;;  %v5282_v2 = vor.u32 %v6280_v51, %v5279_v52  ;;  %v5363_v17 = vld [vmem:[%s9691_s1 + $0x45c] sm:$0xf0]  ;;  %v5339_v52 = vld [vmem:[%s9691_s1 + $0x42c] sm:$0xf0] }
  0xc5   :  { %2442 = vmatpush.bf16.msra.mxu1 %v4994_v9  ;;  %2408 = vmatmul.bf16.vlgmr.msrb.gmra.mxu2 %v8035_v19  ;;  %v4946_v9 = vor.u32 %v6196_v62, %v4943_v63  ;;  %v8148_v18 = vpop.f32.mrf.mxu3  ;;  %v6235_v62 = vld [vmem:[%s9691_s1 + $0x244] sm:$0xf]  ;;  %v5099_v63 = vld [vmem:[%s9691_s1 + $0x24c] sm:$0xf0]  ;;  %v5378_v8 = vor.u32 %v6304_v54, %v5375_v57  ;;  %v4961_v54 = vld [vmem:[%s9691_s1 + $0x128] sm:$0xf] }
  0xc6   :  { %2456 = vmatpush.bf16.msra.mxu2 %v5090_v10  ;;  %2422 = vmatmul.bf16.vlgmr.msrb.gmra.mxu3 %v8051_v45  ;;  %v6169_v10 = vld [vmem:[%s9691_s1 + $0x34] sm:$0xf]  ;;  %vm2614_vm3 = vcmask 1042432   ;;  %vm2615_vm4 = vcmask 1046532   ;;  %vm3974_vm10 = vcmask 1041408   ;;  %vm3937_vm12 = vcmask 523264  }
  0xc7   :  { %2470 = vmatpush.bf16.msra.mxu3 %v5186_v20  ;;  %v1373_v20 = vpop.f32.mrf.mxu1  ;;  %v4838_v44 = vor.u32 %v6169_v10, %v4835_v11  ;;  %v5102_v10 = vor.u32 %v6235_v62, %v5099_v63  ;;  %v6277_v11 = vld [vmem:[%s9691_s1 + $0x394] sm:$0xf]  ;;  %v5231_v62 = vld [vmem:[%s9691_s1 + $0x354] sm:$0xf0]  ;;  %v6292_v63 = vld [vmem:[%s9691_s1 + $0x40c] sm:$0xf] }
  0xc8   :  { %2429 = vmatpush.bf16.msra.mxu0 %v4886_v6  ;;  %v5027_v6 = vld [vmem:[%s9691_s1 + $0x1bc] sm:$0xf0]  ;;  %v8156_v7 = vadd.f32 %v1373_v20, %v1360_v13  ;;  %v4889_v20 = vld [vmem:[%s9691_s1 + $0x98] sm:$0xf]  ;;  %v6201_v57 = vld [vmem:[%s9691_s1 + $0x130] sm:$0xf0] }
  0xc9   :  { %2443 = vmatpush.bf16.msra.mxu1 %v4982_v24  ;;  %v6241_v24 = vld [vmem:[%s9691_s1 + $0x274] sm:$0xf]  ;;  %v5030_v30 = vor.u32 %v6217_v22, %v5027_v6  ;;  %v5267_v13 = vld [vmem:[%s9691_s1 + $0x39c] sm:$0xf0]  ;;  %v4985_v22 = vld [vmem:[%s9691_s1 + $0x158] sm:$0xf] }
  0xca   :  { %2457 = vmatpush.bf16.msra.mxu2 %v5078_v27  ;;  %v6166_v27 = vld [vmem:[%s9691_s1 + $0x1c] sm:$0xf]  ;;  %v5126_v34 = vor.u32 %v6241_v24, %v5123_v25  ;;  %v6207_v6 = vld [vmem:[%s9691_s1 + $0x160] sm:$0xf0]  ;;  %vm8804_vm5 = vmor %vm2614_vm3, %vm2615_vm4  ;;  %vm3976_vm14 = vcmask 1043456   ;;  %vm3994_vm15 = vcmask 1043458  }
  0xcb   :  { %2471 = vmatpush.bf16.msra.mxu3 %v5174_v32  ;;  %v6190_v32 = vld [vmem:[%s9691_s1 + $0xdc] sm:$0xf]  ;;  %v4826_v41 = vor.u32 %v6166_v27, %v4823_v29  ;;  %v5255_v27 = vld [vmem:[%s9691_s1 + $0x384] sm:$0xf0]  ;;  %vm3985_vm0 = vcmask 1041409   ;;  %vm3987_vm1 = vcmask 1043459   ;;  %vm3995_vm2 = vmor %vm3994_vm15, %vm3974_vm10 }
  0xcc   :  { %2430 = vmatpush.bf16.msra.mxu0 %v4874_v38  ;;  %v6214_v38 = vld [vmem:[%s9691_s1 + $0x19c] sm:$0xf]  ;;  %v4922_v47 = vor.u32 %v6190_v32, %v4919_v33  ;;  %v1387_v53 = vpop.f32.mrf.mxu2  ;;  %v4986_v33 = vor.u32 %v6207_v6, %v4985_v22  ;;  %v4841_v6 = vld [vmem:[%s9691_s1 + $0x38] sm:$0xf]  ;;  %vm3996_vm3 = vcmask 521220   ;;  %vm3989_vm4 = vcmask 1045509  }
  0xcd   :  { %2444 = vmatpush.bf16.msra.mxu1 %v4970_v43  ;;  %v6163_v43 = vld [vmem:[%s9691_s1 + $0x4] sm:$0xf]  ;;  %v5018_v50 = vor.u32 %v6214_v38, %v5015_v39  ;;  %v1401_v59 = vpop.f32.mrf.mxu3  ;;  %v6298_v29 = vld [vmem:[%s9691_s1 + $0x43c] sm:$0xf]  ;;  %v4877_v38 = vld [vmem:[%s9691_s1 + $0x80] sm:$0xf] }
  0xce   :  { %2458 = vmatpush.bf16.msra.mxu2 %v5066_v55  ;;  %v4907_v55 = vld [vmem:[%s9691_s1 + $0xcc] sm:$0xf0]  ;;  %v4814_v60 = vor.u32 %v6163_v43, %v4811_v46  ;;  %v6180_v39 = vld [vmem:[%s9691_s1 + $0x88] sm:$0xf0]  ;;  %s4006_s13 = sshll.u32 %s9694_s4, 4  ;;  %s4007_s13 = int_to_ptr.hbm [resolvable:$true] %s4006_s13 }
  0xcf   :  { %2472 = vmatpush.bf16.msra.mxu3 %v5162_v56  ;;  %v5003_v56 = vld [vmem:[%s9691_s1 + $0x18c] sm:$0xf0]  ;;  %v4910_v1 = vor.u32 %v6187_v48, %v4907_v55  ;;  %v6204_v43 = vld [vmem:[%s9691_s1 + $0x148] sm:$0xf0]  ;;  %v8293_v46 = vpop.f32.mrf.mxu1  ;;  %v4878_v55 = vor.u32 %v6180_v39, %v4877_v38 }
  0xd0   :  { %2431 = vmatpush.bf16.msra.mxu0 %v4862_v28  ;;  %v5114_v28 = vor.u32 %v6238_v40, %v5111_v42  ;;  %v5006_v5 = vor.u32 %v6211_v49, %v5003_v56  ;;  %v4973_v42 = vld [vmem:[%s9691_s1 + $0x140] sm:$0xf]  ;;  %v6271_v49 = vld [vmem:[%s9691_s1 + $0x364] sm:$0xf] }
  0xd1   :  { %2445 = vmatpush.bf16.msra.mxu1 %v4958_v58  ;;  %v4901_v58 = vld [vmem:[%s9691_s1 + $0xb0] sm:$0xf]  ;;  %v6295_v56 = vld [vmem:[%s9691_s1 + $0x424] sm:$0xf]  ;;  %v4974_v51 = vor.u32 %v6204_v43, %v4973_v42  ;;  %v5303_v42 = vld [vmem:[%s9691_s1 + $0x3e4] sm:$0xf0] }
  0xd2   :  { %2459 = vmatpush.bf16.msra.mxu2 %v5054_v61  ;;  %v6186_v61 = vld [vmem:[%s9691_s1 + $0xb8] sm:$0xf0]  ;;  %v4829_v43 = vld [vmem:[%s9691_s1 + $0x20] sm:$0xf] }
  0xd3   :  { %2473 = vmatpush.bf16.msra.mxu3 %v5150_v0  ;;  %v8230_v0 = vadd.f32 %v1401_v59, %v1387_v53  ;;  %v4865_v53 = vld [vmem:[%s9691_s1 + $0x68] sm:$0xf]  ;;  %v5342_v59 = vor.u32 %v6295_v56, %v5339_v52  ;;  %v6259_v52 = vld [vmem:[%s9691_s1 + $0x304] sm:$0xf] }
  0xd4   :  { %2432 = vmatpush.bf16.msra.mxu0 %v4850_v3  ;;  %v4997_v3 = vld [vmem:[%s9691_s1 + $0x170] sm:$0xf] }
  0xd5   :  { %2446 = vmatpush.bf16.msra.mxu1 %v4946_v9  ;;  %v4902_v9 = vor.u32 %v6186_v61, %v4901_v58  ;;  %v4998_v16 = vor.u32 %v6210_v4, %v4997_v3  ;;  %v1403_v32 = vpop.f32.mrf.mxu3  ;;  %v6268_v61 = vld [vmem:[%s9691_s1 + $0x34c] sm:$0xf]  ;;  %v4853_v3 = vld [vmem:[%s9691_s1 + $0x50] sm:$0xf]  ;;  %v6174_v4 = vld [vmem:[%s9691_s1 + $0x58] sm:$0xf0] }
  0xd6   :  { %2460 = vmatpush.bf16.msra.mxu2 %v5042_v14  ;;  %v6301_v14 = vld [vmem:[%s9691_s1 + $0x454] sm:$0xf] }
  0xd7   :  { %2474 = vmatpush.bf16.msra.mxu3 %v5138_v21  ;;  %v6183_v21 = vld [vmem:[%s9691_s1 + $0xa0] sm:$0xf0]  ;;  %v5366_v24 = vor.u32 %v6301_v14, %v5363_v17  ;;  %v6265_v17 = vld [vmem:[%s9691_s1 + $0x334] sm:$0xf] }
  0xd8   :  { %2433 = vmatpush.bf16.msra.mxu0 %v4838_v44  ;;  %v5270_v44 = vor.u32 %v6277_v11, %v5267_v13  ;;  %v4890_v25 = vor.u32 %v6183_v21, %v4889_v20  ;;  %v5219_v20 = vld [vmem:[%s9691_s1 + $0x33c] sm:$0xf0]  ;;  %v6289_v21 = vld [vmem:[%s9691_s1 + $0x3f4] sm:$0xf] }
  0xd9   :  { %2447 = vmatpush.bf16.msra.mxu1 %v4934_v26  ;;  %v6274_v26 = vld [vmem:[%s9691_s1 + $0x37c] sm:$0xf] }
  0xda   :  { %2461 = vmatpush.bf16.msra.mxu2 %v5030_v30  ;;  %v1389_v30 = vpop.f32.mrf.mxu2 }
  0xdb   :  { %2475 = vmatpush.bf16.msra.mxu3 %v5126_v34  ;;  %v5351_v34 = vld [vmem:[%s9691_s1 + $0x444] sm:$0xf0]  ;;  %v8281_v40 = vadd.f32 %v1403_v32, %v1389_v30  ;;  %v6262_v32 = vld [vmem:[%s9691_s1 + $0x31c] sm:$0xf] }
  0xdc   :  { %2434 = vmatpush.bf16.msra.mxu0 %v4826_v41  ;;  %v8283_v41 = vpop.f32.mrf.mxu0  ;;  %v5354_v48 = vor.u32 %v6298_v29, %v5351_v34  ;;  %v6286_v34 = vld [vmem:[%s9691_s1 + $0x3dc] sm:$0xf] }
  0xdd   :  { %2448 = vmatpush.bf16.msra.mxu1 %v4922_v47  ;;  %v5258_v47 = vor.u32 %v6274_v26, %v5255_v27  ;;  %v6195_v26 = vld [vmem:[%s9691_s1 + $0x100] sm:$0xf0]  ;;  %v5222_v27 = vor.u32 %v6265_v17, %v5219_v20 }
  0xde   :  { %2462 = vmatpush.bf16.msra.mxu2 %v5018_v50  ;;  %v5243_v50 = vld [vmem:[%s9691_s1 + $0x36c] sm:$0xf0] }
  0xdf   :  { %2476 = vmatpush.bf16.msra.mxu3 %v5114_v28  ;;  %v6177_v28 = vld [vmem:[%s9691_s1 + $0x70] sm:$0xf0]  ;;  %v5246_v58 = vor.u32 %v6271_v49, %v5243_v50  ;;  %v4925_v49 = vld [vmem:[%s9691_s1 + $0xe0] sm:$0xf]  ;;  %v6192_v50 = vld [vmem:[%s9691_s1 + $0xe8] sm:$0xf0] }
  0xe0   :  { %2435 = vmatpush.bf16.msra.mxu0 %v4814_v60  ;;  %v4866_v60 = vor.u32 %v6177_v28, %v4865_v53  ;;  %v5195_v53 = vld [vmem:[%s9691_s1 + $0x30c] sm:$0xf0] }
  0xe1   :  { %2449 = vmatpush.bf16.msra.mxu1 %v4910_v1  ;;  %v4962_v1 = vor.u32 %v6201_v57, %v4961_v54  ;;  %v1429_v13 = vpop.f32.mrf.mxu1 }
  0xe2   :  { %2463 = vmatpush.bf16.msra.mxu2 %v5006_v5  ;;  %v4949_v5 = vld [vmem:[%s9691_s1 + $0x110] sm:$0xf] }
  0xe3   :  { %2477 = vmatpush.bf16.msra.mxu3 %v5102_v10  ;;  %2436 = vmatmul.bf16.vlgmr.msra.gmra.mxu0 %v7813_v35  ;;  %v5234_v10 = vor.u32 %v6268_v61, %v5231_v62  ;;  %v5291_v61 = vld [vmem:[%s9691_s1 + $0x3cc] sm:$0xf0]  ;;  %v4817_v62 = vld [vmem:[%s9691_s1 + $0x8] sm:$0xf] }
  0xe4   :  { %2484 = vmatpush.bf16.msrb.mxu0 %v5282_v2  ;;  %2450 = vmatmul.bf16.vlgmr.msra.gmra.mxu1 %v7815_v36  ;;  %v5327_v2 = vld [vmem:[%s9691_s1 + $0x414] sm:$0xf0] }
  0xe5   :  { %2498 = vmatpush.bf16.msrb.mxu1 %v5378_v8  ;;  %2464 = vmatmul.bf16.vlgmr.msra.gmra.mxu2 %v8024_v15  ;;  %v6198_v8 = vld [vmem:[%s9691_s1 + $0x118] sm:$0xf0]  ;;  %v5330_v14 = vor.u32 %v6292_v63, %v5327_v2  ;;  %v4926_v63 = vor.u32 %v6192_v50, %v4925_v49  ;;  %v6228_v49 = vld [vmem:[%s9691_s1 + $0x208] sm:$0xf0]  ;;  %v5165_v50 = vld [vmem:[%s9691_s1 + $0x2c0] sm:$0xf] }
  0xe6   :  { %2512 = vmatpush.bf16.msrb.mxu2 %v4902_v9  ;;  %2478 = vmatmul.bf16.vlgmr.msra.gmra.mxu3 %v8043_v23  ;;  %v1415_v9 = vpop.f32.mrf.mxu0  ;;  %v4950_v22 = vor.u32 %v6198_v8, %v4949_v5  ;;  %v6234_v2 = vld [vmem:[%s9691_s1 + $0x238] sm:$0xf0]  ;;  %v5285_v8 = vld [vmem:[%s9691_s1 + $0x3b0] sm:$0xf] }
  0xe7   :  { %2526 = vmatpush.bf16.msrb.mxu3 %v4998_v16  ;;  %v1416_v11 = vadd.f32 %v1415_v9, %v8230_v0  ;;  %v4854_v16 = vor.u32 %v6174_v4, %v4853_v3  ;;  %v5315_v0 = vld [vmem:[%s9691_s1 + $0x3fc] sm:$0xf0]  ;;  %v5189_v4 = vld [vmem:[%s9691_s1 + $0x2f0] sm:$0xf]  ;;  %v6258_v5 = vld [vmem:[%s9691_s1 + $0x2f8] sm:$0xf0]  ;;  %v5198_v9 = vor.u32 %v6259_v52, %v5195_v53 }
  0xe8   :  { %2485 = vmatpush.bf16.msrb.mxu0 %v5270_v44  ;;  %v6171_v44 = vld [vmem:[%s9691_s1 + $0x40] sm:$0xf0]  ;;  %v5318_v29 = vor.u32 %v6289_v21, %v5315_v0  ;;  %v1443_v38 = vpop.f32.mrf.mxu2  ;;  %v5190_v21 = vor.u32 %v6258_v5, %v5189_v4  ;;  %v6306_v0 = vld [vmem:[%s9691_s1 + $0x478] sm:$0xf0]  ;;  %v6276_v52 = vld [vmem:[%s9691_s1 + $0x388] sm:$0xf0] }
  0xe9   :  { %2499 = vmatpush.bf16.msrb.mxu1 %v5366_v24  ;;  %v1430_v24 = vadd.f32 %v1429_v13, %v1416_v11  ;;  %v4842_v30 = vor.u32 %v6171_v44, %v4841_v6  ;;  %v1431_v57 = vpop.f32.mrf.mxu1  ;;  %v4913_v11 = vld [vmem:[%s9691_s1 + $0xc8] sm:$0xf]  ;;  %v6189_v13 = vld [vmem:[%s9691_s1 + $0xd0] sm:$0xf0] }
  0xea   :  { %2513 = vmatpush.bf16.msrb.mxu2 %v4890_v25  ;;  %v4937_v25 = vld [vmem:[%s9691_s1 + $0xf8] sm:$0xf]  ;;  %v6297_v4 = vld [vmem:[%s9691_s1 + $0x430] sm:$0xf0] }
  0xeb   :  { %2527 = vmatpush.bf16.msrb.mxu3 %v4986_v33  ;;  %v5207_v33 = vld [vmem:[%s9691_s1 + $0x324] sm:$0xf0]  ;;  %v4938_v39 = vor.u32 %v6195_v26, %v4937_v25  ;;  %v4914_v25 = vor.u32 %v6189_v13, %v4913_v11  ;;  %v5081_v26 = vld [vmem:[%s9691_s1 + $0x218] sm:$0xf]  ;;  %v5141_v11 = vld [vmem:[%s9691_s1 + $0x290] sm:$0xf] }
  0xec   :  { %2486 = vmatpush.bf16.msrb.mxu0 %v5258_v47  ;;  %v6168_v47 = vld [vmem:[%s9691_s1 + $0x28] sm:$0xf0]  ;;  %v6246_v13 = vld [vmem:[%s9691_s1 + $0x298] sm:$0xf0] }
  0xed   :  { %2500 = vmatpush.bf16.msrb.mxu1 %v5354_v48  ;;  %v1444_v48 = vadd.f32 %v1443_v38, %v1430_v24 }
  0xee   :  { %2514 = vmatpush.bf16.msrb.mxu2 %v4878_v55  ;;  %v1457_v55 = vpop.f32.mrf.mxu3  ;;  %v1417_v56 = vpop.f32.mrf.mxu0 }
  0xef   :  { %2528 = vmatpush.bf16.msrb.mxu3 %v4974_v51  ;;  %v5210_v51 = vor.u32 %v6262_v32, %v5207_v33  ;;  %v8399_v28 = vadd.f32 %v1457_v55, %v1444_v48  ;;  %v1418_v54 = vadd.f32 %v1417_v56, %v8281_v40  ;;  %v6165_v40 = vld [vmem:[%s9691_s1 + $0x10] sm:$0xf0]  ;;  %v5273_v32 = vld [vmem:[%s9691_s1 + $0x398] sm:$0xf]  ;;  %v6279_v33 = vld [vmem:[%s9691_s1 + $0x3a0] sm:$0xf0] }
  0xf0   :  { %2487 = vmatpush.bf16.msrb.mxu0 %v5246_v58  ;;  %v5306_v58 = vor.u32 %v6286_v34, %v5303_v42  ;;  %v1445_v17 = vpop.f32.mrf.mxu2  ;;  %v5369_v42 = vld [vmem:[%s9691_s1 + $0x458] sm:$0xf]  ;;  %v5274_v48 = vor.u32 %v6279_v33, %v5273_v32  ;;  %v5069_v55 = vld [vmem:[%s9691_s1 + $0x200] sm:$0xf]  ;;  %v6252_v56 = vld [vmem:[%s9691_s1 + $0x2c8] sm:$0xf0] }
  0xf1   :  { %2501 = vmatpush.bf16.msrb.mxu1 %v5342_v59  ;;  %v4830_v59 = vor.u32 %v6168_v47, %v4829_v43  ;;  %v1432_v3 = vadd.f32 %v1431_v57, %v1418_v54  ;;  %v6303_v43 = vld [vmem:[%s9691_s1 + $0x460] sm:$0xf0]  ;;  %v5357_v54 = vld [vmem:[%s9691_s1 + $0x440] sm:$0xf]  ;;  %v6300_v57 = vld [vmem:[%s9691_s1 + $0x448] sm:$0xf0] }
  0xf2   :  { %2515 = vmatpush.bf16.msrb.mxu2 %v4866_v60  ;;  %v6283_v60 = vld [vmem:[%s9691_s1 + $0x3c4] sm:$0xf]  ;;  %v5370_v53 = vor.u32 %v6303_v43, %v5369_v42  ;;  %v5225_v32 = vld [vmem:[%s9691_s1 + $0x338] sm:$0xf] }
  0xf3   :  { %2529 = vmatpush.bf16.msrb.mxu3 %v4962_v1  ;;  %v5093_v1 = vld [vmem:[%s9691_s1 + $0x230] sm:$0xf]  ;;  %v1446_v6 = vadd.f32 %v1445_v17, %v1432_v3  ;;  %v5345_v3 = vld [vmem:[%s9691_s1 + $0x428] sm:$0xf]  ;;  %v6267_v33 = vld [vmem:[%s9691_s1 + $0x340] sm:$0xf0] }
  0xf4   :  { %2488 = vmatpush.bf16.msrb.mxu0 %v5234_v10  ;;  %v6282_v10 = vld [vmem:[%s9691_s1 + $0x3b8] sm:$0xf0]  ;;  %v5094_v20 = vor.u32 %v6234_v2, %v5093_v1  ;;  %v5358_v1 = vor.u32 %v6300_v57, %v5357_v54  ;;  %v5321_v42 = vld [vmem:[%s9691_s1 + $0x3f8] sm:$0xf]  ;;  %v6291_v43 = vld [vmem:[%s9691_s1 + $0x400] sm:$0xf0] }
  0xf5   :  { %2502 = vmatpush.bf16.msrb.mxu1 %v5330_v14  ;;  %v5294_v14 = vor.u32 %v6283_v60, %v5291_v61  ;;  %v5286_v24 = vor.u32 %v6282_v10, %v5285_v8  ;;  %v5057_v60 = vld [vmem:[%s9691_s1 + $0x1e8] sm:$0xf]  ;;  %v6222_v10 = vld [vmem:[%s9691_s1 + $0x1d8] sm:$0xf0]  ;;  %v6264_v54 = vld [vmem:[%s9691_s1 + $0x328] sm:$0xf0]  ;;  %v5322_v57 = vor.u32 %v6291_v43, %v5321_v42 }
  0xf6   :  { %2516 = vmatpush.bf16.msrb.mxu2 %v4854_v16  ;;  %v4818_v16 = vor.u32 %v6165_v40, %v4817_v62  ;;  %v1459_v44 = vpop.f32.mrf.mxu3  ;;  %v5153_v61 = vld [vmem:[%s9691_s1 + $0x2a8] sm:$0xf]  ;;  %v6249_v62 = vld [vmem:[%s9691_s1 + $0x2b0] sm:$0xf0]  ;;  %v6470_v42 = vld [vmem:[%s9691_s1 + $0x998] sm:$0xf0] }
  0xf7   :  { %2530 = vmatpush.bf16.msrb.mxu3 %v4950_v22  ;;  %v5381_v22 = vld [vmem:[%s9691_s1 + $0x470] sm:$0xf]  ;;  %v8462_v34 = vadd.f32 %v1459_v44, %v1446_v6  ;;  %v6273_v40 = vld [vmem:[%s9691_s1 + $0x370] sm:$0xf0]  ;;  %v5154_v5 = vor.u32 %v6249_v62, %v5153_v61  ;;  %v6294_v6 = vld [vmem:[%s9691_s1 + $0x418] sm:$0xf0] }
  0xf8   :  { %2489 = vmatpush.bf16.msrb.mxu0 %v5222_v27  ;;  %v6231_v27 = vld [vmem:[%s9691_s1 + $0x220] sm:$0xf0]  ;;  %v5382_v38 = vor.u32 %v6306_v0, %v5381_v22  ;;  %v5333_v0 = vld [vmem:[%s9691_s1 + $0x410] sm:$0xf]  ;;  %v6288_v62 = vld [vmem:[%s9691_s1 + $0x3e8] sm:$0xf0] }
  0xf9   :  { %2503 = vmatpush.bf16.msrb.mxu1 %v5318_v29  ;;  %v5177_v29 = vld [vmem:[%s9691_s1 + $0x2d8] sm:$0xf]  ;;  %v5751_v43 = vld [vmem:[%s9691_s1 + $0xa50] sm:$0xf] }
  0xfa   :  { %2517 = vmatpush.bf16.msrb.mxu2 %v4842_v30  ;;  %v6255_v30 = vld [vmem:[%s9691_s1 + $0x2e0] sm:$0xf0] }
  0xfb   :  { %2531 = vmatpush.bf16.msrb.mxu3 %v4938_v39  ;;  %v5082_v39 = vor.u32 %v6231_v27, %v5081_v26  ;;  %v5178_v47 = vor.u32 %v6255_v30, %v5177_v29  ;;  %v5033_v26 = vld [vmem:[%s9691_s1 + $0x1b8] sm:$0xf]  ;;  %v6219_v27 = vld [vmem:[%s9691_s1 + $0x1c0] sm:$0xf0] }
  0xfc   :  { %2490 = vmatpush.bf16.msrb.mxu0 %v5210_v51  ;;  %v5261_v51 = vld [vmem:[%s9691_s1 + $0x380] sm:$0xf]  ;;  %v5129_v29 = vld [vmem:[%s9691_s1 + $0x278] sm:$0xf]  ;;  %v6243_v30 = vld [vmem:[%s9691_s1 + $0x280] sm:$0xf0] }
  0xfd   :  { %2504 = vmatpush.bf16.msrb.mxu1 %v5306_v58  ;;  %v5166_v58 = vor.u32 %v6252_v56, %v5165_v50  ;;  %v6216_v50 = vld [vmem:[%s9691_s1 + $0x1a8] sm:$0xf0]  ;;  %v5117_v56 = vld [vmem:[%s9691_s1 + $0x260] sm:$0xf] }
  0xfe   :  { %2518 = vmatpush.bf16.msrb.mxu2 %v4830_v59  ;;  %v5262_v59 = vor.u32 %v6276_v52, %v5261_v51 }
  0xff   :  { %2532 = vmatpush.bf16.msrb.mxu3 %v4926_v63  ;;  %v5249_v63 = vld [vmem:[%s9691_s1 + $0x368] sm:$0xf] }
 0x100   :  { %2491 = vmatpush.bf16.msrb.mxu0 %v5198_v9  ;;  %v5250_v8 = vor.u32 %v6273_v40, %v5249_v63  ;;  %v5045_v9 = vld [vmem:[%s9691_s1 + $0x1d0] sm:$0xf]  ;;  %v1471_v17 = vpop.f32.mrf.mxu0  ;;  %v5009_v63 = vld [vmem:[%s9691_s1 + $0x188] sm:$0xf]  ;;  %v6213_v40 = vld [vmem:[%s9691_s1 + $0x190] sm:$0xf0] }
 0x101   :  { %2505 = vmatpush.bf16.msrb.mxu1 %v5294_v14  ;;  %v5237_v14 = vld [vmem:[%s9691_s1 + $0x350] sm:$0xf]  ;;  %v5046_v22 = vor.u32 %v6222_v10, %v5045_v9  ;;  %v6261_v9 = vld [vmem:[%s9691_s1 + $0x310] sm:$0xf0]  ;;  %v5667_v10 = vld [vmem:[%s9691_s1 + $0x9a8] sm:$0xf] }
 0x102   :  { %2519 = vmatpush.bf16.msrb.mxu2 %v4818_v16  ;;  %v6270_v16 = vld [vmem:[%s9691_s1 + $0x358] sm:$0xf0] }
 0x103   :  { %2533 = vmatpush.bf16.msrb.mxu3 %v4914_v25  ;;  %2492 = vmatmul.bf16.vlgmr.msrb.gmra.mxu0 %v8035_v19  ;;  %v5238_v25 = vor.u32 %v6270_v16, %v5237_v14  ;;  %v5763_v14 = vld [vmem:[%s9691_s1 + $0xa68] sm:$0xf]  ;;  %v6497_v16 = vld [vmem:[%s9691_s1 + $0xa70] sm:$0xf0] }
 0x104   :  { %2540 = vmatpush.bf16.msra.mxu0 %v5094_v20  ;;  %2506 = vmatmul.bf16.vlgmr.msrb.gmra.mxu1 %v8051_v45  ;;  %v5346_v20 = vor.u32 %v6297_v4, %v5345_v3  ;;  %v5105_v4 = vld [vmem:[%s9691_s1 + $0x248] sm:$0xf] }
 0x105   :  { %2554 = vmatpush.bf16.msra.mxu1 %v5190_v21  ;;  %2520 = vmatmul.bf16.vlgmr.msrb.gmra.mxu2 %v7813_v35  ;;  %v5070_v35 = vor.u32 %v6228_v49, %v5069_v55  ;;  %v1485_v21 = vpop.f32.mrf.mxu1  ;;  %v5226_v55 = vor.u32 %v6267_v33, %v5225_v32  ;;  %v5021_v49 = vld [vmem:[%s9691_s1 + $0x1a0] sm:$0xf] }
 0x106   :  { %2568 = vmatpush.bf16.msra.mxu2 %v5286_v24  ;;  %2534 = vmatmul.bf16.vlgmr.msrb.gmra.mxu3 %v7815_v36  ;;  %v6225_v36 = vld [vmem:[%s9691_s1 + $0x1f0] sm:$0xf0]  ;;  %v1486_v44 = vadd.f32 %v1485_v21, %v1471_v17  ;;  %v5142_v24 = vor.u32 %v6246_v13, %v5141_v11  ;;  %v5022_v61 = vor.u32 %v6216_v50, %v5021_v49  ;;  %v5859_v17 = vld [vmem:[%s9691_s1 + $0xb28] sm:$0xf]  ;;  %v6518_v49 = vld [vmem:[%s9691_s1 + $0xb18] sm:$0xf0] }
 0x107   :  { %2582 = vmatpush.bf16.msra.mxu3 %v5382_v38  ;;  %v5058_v2 = vor.u32 %v6225_v36, %v5057_v60  ;;  %v5334_v38 = vor.u32 %v6294_v6, %v5333_v0  ;;  %v6473_v11 = vld [vmem:[%s9691_s1 + $0x9b0] sm:$0xf0] }
 0x108   :  { %2541 = vmatpush.bf16.msra.mxu0 %v5082_v39  ;;  %v5034_v39 = vor.u32 %v6219_v27, %v5033_v26  ;;  %v6521_v21 = vld [vmem:[%s9691_s1 + $0xb30] sm:$0xf0]  ;;  %v5668_v26 = vor.u32 %v6473_v11, %v5667_v10  ;;  %v5764_v27 = vor.u32 %v6497_v16, %v5763_v14  ;;  %v5727_v10 = vld [vmem:[%s9691_s1 + $0xa20] sm:$0xf]  ;;  %v6512_v16 = vld [vmem:[%s9691_s1 + $0xae8] sm:$0xf0] }
 0x109   :  { %2555 = vmatpush.bf16.msra.mxu1 %v5178_v47  ;;  %v1499_v47 = vpop.f32.mrf.mxu2  ;;  %v1513_v52 = vpop.f32.mrf.mxu3  ;;  %v6285_v0 = vld [vmem:[%s9691_s1 + $0x3d0] sm:$0xf0]  ;;  %v5860_v33 = vor.u32 %v6521_v21, %v5859_v17  ;;  %v5823_v14 = vld [vmem:[%s9691_s1 + $0xae0] sm:$0xf]  ;;  %v6536_v21 = vld [vmem:[%s9691_s1 + $0xba8] sm:$0xf0] }
 0x10a   :  { %2569 = vmatpush.bf16.msra.mxu2 %v5274_v48  ;;  %v5130_v48 = vor.u32 %v6243_v30, %v5129_v29  ;;  %v1500_v51 = vadd.f32 %v1499_v47, %v1486_v44  ;;  %v5955_v29 = vld [vmem:[%s9691_s1 + $0xbe8] sm:$0xf]  ;;  %v6545_v30 = vld [vmem:[%s9691_s1 + $0xbf0] sm:$0xf0] }
 0x10b   :  { %2583 = vmatpush.bf16.msra.mxu3 %v5370_v53  ;;  %v6240_v53 = vld [vmem:[%s9691_s1 + $0x268] sm:$0xf0]  ;;  %v5956_v50 = vor.u32 %v6545_v30, %v5955_v29  ;;  %v5715_v30 = vld [vmem:[%s9691_s1 + $0xa08] sm:$0xf] }
 0x10c   :  { %2542 = vmatpush.bf16.msra.mxu0 %v5070_v35  ;;  %v5213_v35 = vld [vmem:[%s9691_s1 + $0x320] sm:$0xf]  ;;  %v8591_v60 = vadd.f32 %v1513_v52, %v1500_v51  ;;  %v8673_v52 = vld [vmem:[%s9690_s0 + $0x48] sm:$0x11] }
 0x10d   :  { %2556 = vmatpush.bf16.msra.mxu1 %v5166_v58  ;;  %v5309_v58 = vld [vmem:[%s9691_s1 + $0x3e0] sm:$0xf]  ;;  %v1487_v36 = vpop.f32.mrf.mxu1  ;;  %v5214_v3 = vor.u32 %v6264_v54, %v5213_v35  ;;  %v5943_v54 = vld [vmem:[%s9691_s1 + $0xbd0] sm:$0xf] }
 0x10e   :  { %2570 = vmatpush.bf16.msra.mxu2 %v5262_v59  ;;  %v1473_v59 = vpop.f32.mrf.mxu0  ;;  %v5310_v13 = vor.u32 %v6288_v62, %v5309_v58  ;;  %v5739_v62 = vld [vmem:[%s9691_s1 + $0xa38] sm:$0xf] }
 0x10f   :  { %2584 = vmatpush.bf16.msra.mxu3 %v5358_v1  ;;  %v1488_v1 = vadd.f32 %v1487_v36, %v1473_v59  ;;  %v5643_v36 = vld [vmem:[%s9691_s1 + $0x978] sm:$0xf] }
 0x110   :  { %2543 = vmatpush.bf16.msra.mxu0 %v5058_v2  ;;  %v5118_v2 = vor.u32 %v6240_v53, %v5117_v56  ;;  %v8667_v56 = vld [vmem:[%s9690_s0 + $0x18] sm:$0x11]  ;;  %v2631_v53 = vrot.slane %v8673_v52, 5 }
 0x111   :  { %2557 = vmatpush.bf16.msra.mxu1 %v5154_v5  ;;  %v6237_v5 = vld [vmem:[%s9691_s1 + $0x250] sm:$0xf0]  ;;  %v1501_v6 = vpop.f32.mrf.mxu2  ;;  %v1515_v32 = vpop.f32.mrf.mxu3  ;;  %v2619_v51 = vrot.slane %v8667_v56, 5  ;;  %v5799_v56 = vld [vmem:[%s9691_s1 + $0xab0] sm:$0xf] }
 0x112   :  { %2571 = vmatpush.bf16.msra.mxu2 %v5250_v8  ;;  %v5201_v8 = vld [vmem:[%s9691_s1 + $0x308] sm:$0xf]  ;;  %v5106_v44 = vor.u32 %v6237_v5, %v5105_v4  ;;  %v5931_v4 = vld [vmem:[%s9691_s1 + $0xbb8] sm:$0xf]  ;;  %v6539_v5 = vld [vmem:[%s9691_s1 + $0xbc0] sm:$0xf0] }
 0x113   :  { %2585 = vmatpush.bf16.msra.mxu3 %v5346_v20  ;;  %v5010_v20 = vor.u32 %v6213_v40, %v5009_v63  ;;  %v1320_v63 = vadd.f32 %v8076_v37, %v8067_v31  ;;  %v6491_v40 = vld [vmem:[%s9691_s1 + $0xa40] sm:$0xf0] }
 0x114   :  { %2544 = vmatpush.bf16.msra.mxu0 %v5046_v22  ;;  %v5297_v22 = vld [vmem:[%s9691_s1 + $0x3c8] sm:$0xf]  ;;  %v8707_v31 = vld [vmem:[%s9690_s0 + $0x20] sm:$0x11]  ;;  %v5740_v11 = vor.u32 %v6491_v40, %v5739_v62  ;;  %v6482_v40 = vld [vmem:[%s9691_s1 + $0x9f8] sm:$0xf0] }
 0x115   :  { %2558 = vmatpush.bf16.msra.mxu1 %v5142_v24  ;;  %v5202_v24 = vor.u32 %v6261_v9, %v5201_v8  ;;  %v5631_v9 = vld [vmem:[%s9691_s1 + $0x960] sm:$0xf]  ;;  %v1334_v17 = vadd.f32 %v8140_v12, %v1320_v63  ;;  %v6461_v12 = vld [vmem:[%s9691_s1 + $0x950] sm:$0xf0]  ;;  %v2597_v62 = vld [vmem:[%s9690_s0 + $0x8] sm:$0xee] }
 0x116   :  { %2572 = vmatpush.bf16.msra.mxu2 %v5238_v25  ;;  %v1502_v25 = vadd.f32 %v1501_v6, %v1488_v1  ;;  %v5835_v1 = vld [vmem:[%s9691_s1 + $0xaf8] sm:$0xf] }
 0x117   :  { %2586 = vmatpush.bf16.msra.mxu3 %v5334_v38  ;;  %v5298_v38 = vor.u32 %v6285_v0, %v5297_v22  ;;  %v2596_v22 = vld [vmem:[%s9690_s0] sm:$0xee]  ;;  %v5932_v0 = vor.u32 %v6539_v5, %v5931_v4 }
 0x118   :  { %2545 = vmatpush.bf16.msra.mxu0 %v5034_v39  ;;  %v5655_v39 = vld [vmem:[%s9691_s1 + $0x990] sm:$0xf]  ;;  %v8653_v47 = vadd.f32 %v1515_v32, %v1502_v25  ;;  %v5383_v25 = vrot.slane %v2596_v22, 9  ;;  %v6485_v32 = vld [vmem:[%s9691_s1 + $0xa10] sm:$0xf0] }
 0x119   :  { %2559 = vmatpush.bf16.msra.mxu1 %v5130_v48  ;;  %v6494_v48 = vld [vmem:[%s9691_s1 + $0xa58] sm:$0xf0]  ;;  %v5656_v35 = vor.u32 %v6470_v42, %v5655_v39  ;;  %v5824_v39 = vor.u32 %v6512_v16, %v5823_v14  ;;  %v8777_v42 = vld [vmem:[%s9691_s1 + $0xb88] sm:$0xf]  ;;  %v5716_v4 = vor.u32 %v6485_v32, %v5715_v30  ;;  %v6479_v30 = vld [vmem:[%s9691_s1 + $0x9e0] sm:$0xf0] }
 0x11a   :  { %2573 = vmatpush.bf16.msra.mxu2 %v5226_v55  ;;  %v5847_v55 = vld [vmem:[%s9691_s1 + $0xb10] sm:$0xf]  ;;  %v5752_v58 = vor.u32 %v6494_v48, %v5751_v43  ;;  %v8782_v43 = vld [vmem:[%s9691_s1 + $0xb90] sm:$0xf0]  ;;  %v8787_v48 = vld [vmem:[%s9690_s0 + $0x28] sm:$0x11] }
 0x11b   :  { %2587 = vmatpush.bf16.msra.mxu3 %v5322_v57  ;;  %v6542_v57 = vld [vmem:[%s9691_s1 + $0xbd8] sm:$0xf0]  ;;  %v5848_v59 = vor.u32 %v6518_v49, %v5847_v55  ;;  %v2627_v55 = vrot.slane %v8787_v48, 5  ;;  %v5787_v32 = vld [vmem:[%s9691_s1 + $0xa98] sm:$0xf] }
 0x11c   :  { %2546 = vmatpush.bf16.msra.mxu0 %v5022_v61  ;;  %v6467_v61 = vld [vmem:[%s9691_s1 + $0x980] sm:$0xf0] }
 0x11d   :  { %2560 = vmatpush.bf16.msra.mxu1 %v5118_v2  ;;  %v6515_v2 = vld [vmem:[%s9691_s1 + $0xb00] sm:$0xf0]  ;;  %v5644_v8 = vor.u32 %v6467_v61, %v5643_v36  ;;  %v8812_v36 = vld [vmem:[%s9691_s1 + $0x9f0] sm:$0xf]  ;;  %v2620_v61 = vsel %vm8804_vm5, %v5383_v25, %v2619_v51  ;;  %v6506_v51 = vld [vmem:[%s9691_s1 + $0xab8] sm:$0xf0] }
 0x11e   :  { %2574 = vmatpush.bf16.msra.mxu2 %v5214_v3  ;;  %v5944_v3 = vor.u32 %v6542_v57, %v5943_v54  ;;  %v5800_v14 = vor.u32 %v6506_v51, %v5799_v56  ;;  %v6147_v56 = vld [vmem:[%s9691_s1 + $0xd68] sm:$0xf]  ;;  %v2598_v51 = vld [vmem:[%s9690_s0 + $0x10] sm:$0xee] }
 0x11f   :  { %2588 = vmatpush.bf16.msra.mxu3 %v5310_v13  ;;  %v5836_v13 = vor.u32 %v6515_v2, %v5835_v1  ;;  %v2834_v2 = vunpack.c.l.b16 %v2620_v61 }
 0x120   :  { %2547 = vmatpush.bf16.msra.mxu0 %v5010_v20  ;;  %v5919_v20 = vld [vmem:[%s9691_s1 + $0xba0] sm:$0xf]  ;;  %v1527_v6 = vpop.f32.mrf.mxu0 }
 0x121   :  { %2561 = vmatpush.bf16.msra.mxu1 %v5106_v44  ;;  %v5619_v44 = vld [vmem:[%s9691_s1 + $0x948] sm:$0xf]  ;;  %v1541_v29 = vpop.f32.mrf.mxu1 }
 0x122   :  { %2575 = vmatpush.bf16.msra.mxu2 %v5202_v24  ;;  %v2599_v24 = vld [vmem:[%s9690_s0 + $0x30] sm:$0xee]  ;;  %v5620_v63 = vor.u32 %v6461_v12, %v5619_v44  ;;  %v6530_v44 = vld [vmem:[%s9691_s1 + $0xb78] sm:$0xf0] }
 0x123   :  { %2589 = vmatpush.bf16.msra.mxu3 %v5298_v38  ;;  %2548 = vmatmul.bf16.vlgmr.msra.gmra.mxu0 %v8024_v15  ;;  %v2623_v15 = vrot.slane %v8707_v31, 5  ;;  %v5386_v57 = vrot.slane %v2599_v24, 9  ;;  %v6455_v24 = vld [vmem:[%s9691_s1 + $0x920] sm:$0xf0]  ;;  %v5691_v31 = vld [vmem:[%s9691_s1 + $0x9d8] sm:$0xf] }
 0x124   :  { %3626 = vmatpush.bf16.msrb.mxu0 %v5668_v26  ;;  %2562 = vmatmul.bf16.vlgmr.msra.gmra.mxu1 %v8043_v23  ;;  %v6464_v23 = vld [vmem:[%s9691_s1 + $0x968] sm:$0xf0]  ;;  %v1528_v26 = vadd.f32 %v1527_v6, %v8591_v60  ;;  %v6509_v60 = vld [vmem:[%s9691_s1 + $0xad0] sm:$0xf0]  ;;  %v5895_v6 = vld [vmem:[%s9691_s1 + $0xb70] sm:$0xf] }
 0x125   :  { %3640 = vmatpush.bf16.msrb.mxu1 %v5764_v27  ;;  %2576 = vmatmul.bf16.vlgmr.msra.gmra.mxu2 %v8035_v19  ;;  %v8713_v19 = vld [vmem:[%s9690_s0 + $0x50] sm:$0x11]  ;;  %v5632_v27 = vor.u32 %v6464_v23, %v5631_v9  ;;  %v2632_v1 = vsel %vm8804_vm5, %v5386_v57, %v2631_v53  ;;  %v5908_v23 = vor.u32 %v8782_v43, %v8777_v42  ;;  %v5679_v57 = vld [vmem:[%s9691_s1 + $0x9c0] sm:$0xf] }
 0x126   :  { %3654 = vmatpush.bf16.msrb.mxu2 %v5860_v33  ;;  %v2635_v37 = vrot.slane %v8713_v19, 5  ;;  %2590 = vmatmul.bf16.vlgmr.msra.gmra.mxu3 %v8051_v45  ;;  %v6488_v45 = vld [vmem:[%s9691_s1 + $0xa28] sm:$0xf0]  ;;  %v5811_v33 = vld [vmem:[%s9691_s1 + $0xac8] sm:$0xf]  ;;  %v8790_v49 = vadd.f32 %v1541_v29, %v1528_v26  ;;  %v2841_v9 = vunpack.c.h.b16 %v2632_v1  ;;  %v5704_v53 = vor.u32 %v6482_v40, %v8812_v36 }
 0x127   :  { %3668 = vmatpush.bf16.msrb.mxu3 %v5956_v50  ;;  %v5728_v38 = vor.u32 %v6488_v45, %v5727_v10  ;;  %v8795_v50 = vld [vmem:[%s9691_s1 + $0x930] sm:$0xf]  ;;  %v5812_v5 = vor.u32 %v6509_v60, %v5811_v33  ;;  %v6503_v33 = vld [vmem:[%s9691_s1 + $0xaa0] sm:$0xf0]  ;;  %v5583_v60 = vld [vmem:[%s9691_s1 + $0x900] sm:$0xf] }
 0x128   :  { %3627 = vmatpush.bf16.msrb.mxu0 %v5656_v35  ;;  %v8800_v35 = vld [vmem:[%s9691_s1 + $0x938] sm:$0xf0]  ;;  %v2353_v52 = vpop.f32.mrf.mxu2  ;;  %v1529_v45 = vpop.f32.mrf.mxu0  ;;  %v5788_v36 = vor.u32 %v6503_v33, %v5787_v32  ;;  %v6569_v40 = vld [vmem:[%s9691_s1 + $0xcb0] sm:$0xf0] }
 0x129   :  { %3641 = vmatpush.bf16.msrb.mxu1 %v5752_v58  ;;  %v1348_v58 = vadd.f32 %v8148_v18, %v1334_v17  ;;  %v2600_v18 = vld [vmem:[%s9690_s0 + $0x38] sm:$0xee]  ;;  %v5608_v10 = vor.u32 %v8800_v35, %v8795_v50  ;;  %v2367_v22 = vpop.f32.mrf.mxu3  ;;  %v6452_v35 = vld [vmem:[%s9691_s1 + $0x908] sm:$0xf0] }
 0x12a   :  { %3655 = vmatpush.bf16.msrb.mxu2 %v5848_v59  ;;  %v5920_v59 = vor.u32 %v6536_v21, %v5919_v20  ;;  %v2354_v20 = vadd.f32 %v2353_v52, %v8156_v7  ;;  %v1530_v21 = vadd.f32 %v1529_v45, %v8653_v47  ;;  %v5595_v47 = vld [vmem:[%s9691_s1 + $0x918] sm:$0xf]  ;;  %v6524_v52 = vld [vmem:[%s9691_s1 + $0xb48] sm:$0xf0] }
 0x12b   :  { %3669 = vmatpush.bf16.msrb.mxu3 %v5944_v3  ;;  %v2835_v3 = vunpack.c.h.b16 %v2620_v61  ;;  %v5596_v50 = vor.u32 %v6455_v24, %v5595_v47  ;;  %v5775_v61 = vld [vmem:[%s9691_s1 + $0xa80] sm:$0xf]  ;;  %v6566_v24 = vld [vmem:[%s9691_s1 + $0xc98] sm:$0xf0] }
 0x12c   :  { %3628 = vmatpush.bf16.msrb.mxu0 %v5644_v8  ;;  %v2840_v8 = vunpack.c.l.b16 %v2632_v1  ;;  %v6601_v1 = vld [vmem:[%s9690_s0 + $0x58] sm:$0x11] }
 0x12d   :  { %3642 = vmatpush.bf16.msrb.mxu1 %v5740_v11  ;;  %v5384_v11 = vrot.slane %v2597_v62, 9  ;;  %v8844_v17 = vpack.c.b16 %v2841_v9, %v2835_v3  ;;  %v6500_v62 = vld [vmem:[%s9691_s1 + $0xa88] sm:$0xf0] }
 0x12e   :  { %3656 = vmatpush.bf16.msrb.mxu2 %v5836_v13  ;;  %v5387_v13 = vrot.slane %v2600_v18, 9  ;;  %v8842_v16 = vpack.c.b16 %v2840_v8, %v2834_v2  ;;  %v6051_v18 = vld [vmem:[%s9691_s1 + $0xca8] sm:$0xf]  ;;  %v2639_v2 = vrot.slane %v6601_v1, 5  ;;  %v5385_v8 = vrot.slane %v2598_v51, 9 }
 0x12f   :  { %3670 = vmatpush.bf16.msrb.mxu3 %v5932_v0  ;;  %v1543_v0 = vpop.f32.mrf.mxu1  ;;  %v2624_v12 = vsel %vm8804_vm5, %v5384_v11, %v2623_v15  ;;  %v5669_v11 = vld [vmem:[%s9691_s1 + $0x9b4] sm:$0xf0]  ;;  %v6015_v1 = vld [vmem:[%s9691_s1 + $0xc60] sm:$0xf] }
 0x130   :  { %3629 = vmatpush.bf16.msrb.mxu0 %v5632_v27  ;;  %v2636_v7 = vsel %vm8804_vm5, %v5387_v13, %v2635_v37  ;;  %v2836_v15 = vunpack.c.l.b16 %v2624_v12  ;;  %v2837_v19 = vunpack.c.h.b16 %v2624_v12  ;;  %v1362_v37 = vadd.f32 %v8283_v41, %v1348_v58  ;;  %v5883_v41 = vld [vmem:[%s9691_s1 + $0xb58] sm:$0xf]  ;;  %v6476_v58 = vld [vmem:[%s9691_s1 + $0x9c8] sm:$0xf0]  ;;  %v2355_v3 = vpop.f32.mrf.mxu2  ;;  %v5871_v13 = vld [vmem:[%s9691_s1 + $0xb40] sm:$0xf] }
 0x131   :  { %3643 = vmatpush.bf16.msrb.mxu1 %v5728_v38  ;;  %v2842_v25 = vunpack.c.l.b16 %v2636_v7  ;;  %v2843_v26 = vunpack.c.h.b16 %v2636_v7  ;;  %v8872_v27 = vadd.f32 %v2367_v22, %v2354_v20  ;;  %v8874_v29 = vadd.f32 %v1543_v0, %v1530_v21  ;;  %v5765_v20 = vld [vmem:[%s9691_s1 + $0xa74] sm:$0xf0]  ;;  %v2601_v21 = vld [vmem:[%s9690_s0 + $0x40] sm:$0xee] }
 0x132   :  { %3657 = vmatpush.bf16.msrb.mxu2 %v5824_v39  ;;  %v5896_v38 = vor.u32 %v6530_v44, %v5895_v6  ;;  %v6527_v39 = vld [vmem:[%s9691_s1 + $0xb60] sm:$0xf0]  ;;  %v5680_v45 = vor.u32 %v6476_v58, %v5679_v57  ;;  %v6052_v0 = vor.u32 %v6569_v40, %v6051_v18  ;;  %v6039_v44 = vld [vmem:[%s9691_s1 + $0xc90] sm:$0xf]  ;;  %v2628_v12 = vsel %vm8804_vm5, %v5385_v8, %v2627_v55  ;;  %v6469_v55 = vld [vmem:[%s9691_s1 + $0x994] sm:$0xf] }
 0x133   :  { %3671 = vmatpush.bf16.msrb.mxu3 %v5920_v59  ;;  %v8894_v42 = vpack.c.b16 %v2842_v25, %v2836_v15  ;;  %v8896_v43 = vpack.c.b16 %v2843_v26, %v2837_v19  ;;  %v5692_v59 = vor.u32 %v6479_v30, %v5691_v31  ;;  %v5872_v47 = vor.u32 %v6524_v52, %v5871_v13  ;;  %v6135_v31 = vld [vmem:[%s9691_s1 + $0xd50] sm:$0xf]  ;;  %v6590_v15 = vld [vmem:[%s9691_s1 + $0xd58] sm:$0xf0]  ;;  %v5657_v25 = vld [vmem:[%s9691_s1 + $0x99c] sm:$0xf0] }
 0x134   :  { %3630 = vmatpush.bf16.msrb.mxu0 %v5620_v63  ;;  %v1376_v63 = vadd.f32 %v8293_v46, %v1362_v37  ;;  %v5884_v46 = vor.u32 %v6527_v39, %v5883_v41  ;;  %v5388_v19 = vrot.slane %v2601_v21, 9  ;;  %v6493_v26 = vld [vmem:[%s9691_s1 + $0xa54] sm:$0xf]  ;;  %v5753_v37 = vld [vmem:[%s9691_s1 + $0xa5c] sm:$0xf0]  ;;  %v2838_v30 = vunpack.c.l.b16 %v2628_v12 }
 0x135   :  { %3644 = vmatpush.bf16.msrb.mxu1 %v5716_v4  ;;  %v6593_v4 = vld [vmem:[%s9691_s1 + $0xd70] sm:$0xf0]  ;;  %v2839_v32 = vunpack.c.h.b16 %v2628_v12  ;;  %v6040_v33 = vor.u32 %v6566_v24, %v6039_v44  ;;  %v6027_v41 = vld [vmem:[%s9691_s1 + $0xc78] sm:$0xf]  ;;  %v6587_v57 = vld [vmem:[%s9691_s1 + $0xd40] sm:$0xf0]  ;;  %v5756_v54 = vor.u32 %v6493_v26, %v5753_v37 }
 0x136   :  { %3658 = vmatpush.bf16.msrb.mxu2 %v5812_v5  ;;  %v6472_v5 = vld [vmem:[%s9691_s1 + $0x9ac] sm:$0xf]  ;;  %v2356_v9 = vadd.f32 %v2355_v3, %v1376_v63  ;;  %v6148_v6 = vor.u32 %v6593_v4, %v6147_v56  ;;  %v2640_v39 = vsel %vm8804_vm5, %v5388_v19, %v2639_v2  ;;  %v5741_v18 = vld [vmem:[%s9691_s1 + $0xa44] sm:$0xf0]  ;;  %v6463_v8 = vld [vmem:[%s9691_s1 + $0x964] sm:$0xf] }
 0x137   :  { %3672 = vmatpush.bf16.msrb.mxu3 %v5908_v23  ;;  %v2369_v23 = vpop.f32.mrf.mxu3  ;;  %v5672_v7 = vor.u32 %v6472_v5, %v5669_v11  ;;  %v2844_v58 = vunpack.c.l.b16 %v2640_v39  ;;  %v6560_v3 = vld [vmem:[%s9691_s1 + $0xc68] sm:$0xf0]  ;;  %v5729_v11 = vld [vmem:[%s9691_s1 + $0xa2c] sm:$0xf0]  ;;  %v6557_v21 = vld [vmem:[%s9691_s1 + $0xc50] sm:$0xf0] }
 0x138   :  { %3631 = vmatpush.bf16.msrb.mxu0 %v5608_v10  ;;  %v5584_v10 = vor.u32 %v6452_v35, %v5583_v60  ;;  %v8953_v22 = vadd.f32 %v2369_v23, %v2356_v9  ;;  %v5660_v60 = vor.u32 %v6469_v55, %v5657_v25  ;;  %v6123_v35 = vld [vmem:[%s9691_s1 + $0xd38] sm:$0xf]  ;;  %v6584_v4 = vld [vmem:[%s9691_s1 + $0xd28] sm:$0xf0]  ;;  %v5633_v9 = vld [vmem:[%s9691_s1 + $0x96c] sm:$0xf0]  ;;  %v6016_v52 = vor.u32 %v6560_v3, %v6015_v1 }
 0x139   :  { %3645 = vmatpush.bf16.msrb.mxu1 %v5704_v53  ;;  %v5776_v53 = vor.u32 %v6500_v62, %v5775_v61  ;;  %v5645_v61 = vld [vmem:[%s9691_s1 + $0x984] sm:$0xf0]  ;;  %v6490_v62 = vld [vmem:[%s9691_s1 + $0xa3c] sm:$0xf]  ;;  %v9012_v63 = vpack.c.b16 %v2844_v58, %v2838_v30  ;;  %v6124_v51 = vor.u32 %v6587_v57, %v6123_v35  ;;  %v6460_v12 = vld [vmem:[%s9691_s1 + $0x94c] sm:$0xf] }
 0x13a   :  { %3659 = vmatpush.bf16.msrb.mxu2 %v5800_v14  ;;  %v6496_v14 = vld [vmem:[%s9691_s1 + $0xa6c] sm:$0xf]  ;;  %v5744_v5 = vor.u32 %v6490_v62, %v5741_v18  ;;  %v5717_v24 = vld [vmem:[%s9691_s1 + $0xa14] sm:$0xf0]  ;;  %v6554_v25 = vld [vmem:[%s9691_s1 + $0xc38] sm:$0xf0] }
 0x13b   :  { %3673 = vmatpush.bf16.msrb.mxu3 %v5896_v38  ;;  %v5768_v48 = vor.u32 %v6496_v14, %v5765_v20  ;;  %v6136_v38 = vor.u32 %v6590_v15, %v6135_v31  ;;  %v5636_v14 = vor.u32 %v6463_v8, %v5633_v9  ;;  %v6087_v19 = vld [vmem:[%s9691_s1 + $0xcf0] sm:$0xf]  ;;  %v6578_v26 = vld [vmem:[%s9691_s1 + $0xcf8] sm:$0xf0]  ;;  %v6551_v62 = vld [vmem:[%s9691_s1 + $0xc20] sm:$0xf0] }
 0x13c   :  { %3632 = vmatpush.bf16.msrb.mxu0 %v5596_v50  ;;  %v6563_v50 = vld [vmem:[%s9691_s1 + $0xc80] sm:$0xf0]  ;;  %v6088_v58 = vor.u32 %v6578_v26, %v6087_v19  ;;  %v6454_v1 = vld [vmem:[%s9691_s1 + $0x91c] sm:$0xf]  ;;  %v5967_v8 = vld [vmem:[%s9691_s1 + $0xc00] sm:$0xf] }
 0x13d   :  { %3646 = vmatpush.bf16.msrb.mxu1 %v5692_v59  ;;  %v2845_v59 = vunpack.c.h.b16 %v2640_v39  ;;  %v6028_v56 = vor.u32 %v6563_v50, %v6027_v41  ;;  %v6481_v39 = vld [vmem:[%s9691_s1 + $0x9f4] sm:$0xf]  ;;  %v6575_v18 = vld [vmem:[%s9691_s1 + $0xce0] sm:$0xf0]  ;;  %v6478_v3 = vld [vmem:[%s9691_s1 + $0x9dc] sm:$0xf] }
 0x13e   :  { %3660 = vmatpush.bf16.msrb.mxu2 %v5788_v36  ;;  %v6466_v36 = vld [vmem:[%s9691_s1 + $0x97c] sm:$0xf]  ;;  %v6548_v9 = vld [vmem:[%s9691_s1 + $0xc08] sm:$0xf0]  ;;  %v6149_v19 = vld [vmem:[%s9691_s1 + $0xd74] sm:$0xf0] }
 0x13f   :  { %3674 = vmatpush.bf16.msrb.mxu3 %v5884_v46  ;;  %v9014_v40 = vpack.c.b16 %v2845_v59, %v2839_v32  ;;  %v5648_v2 = vor.u32 %v6466_v36, %v5645_v61  ;;  %v6111_v46 = vld [vmem:[%s9691_s1 + $0xd20] sm:$0xf]  ;;  %v6457_v32 = vld [vmem:[%s9691_s1 + $0x934] sm:$0xf]  ;;  %v5979_v59 = vld [vmem:[%s9691_s1 + $0xc18] sm:$0xf] }
 0x140   :  { %3633 = vmatpush.bf16.msrb.mxu0 %v5584_v10  ;;  %v2381_v23 = vpop.f32.mrf.mxu0  ;;  %v6487_v10 = vld [vmem:[%s9691_s1 + $0xa24] sm:$0xf]  ;;  %vm3991_vm5 = vcmask 1047559  }
 0x141   :  { %3647 = vmatpush.bf16.msrb.mxu1 %v5680_v45  ;;  %v2382_v13 = vadd.f32 %v2381_v23, %v8872_v27  ;;  %v6112_v45 = vor.u32 %v6584_v4, %v6111_v46  ;;  %v2395_v20 = vpop.f32.mrf.mxu1  ;;  %v6581_v27 = vld [vmem:[%s9691_s1 + $0xd10] sm:$0xf0]  ;;  %v5732_v44 = vor.u32 %v6487_v10, %v5729_v11  ;;  %v5693_v46 = vld [vmem:[%s9691_s1 + $0x9e4] sm:$0xf0]  ;;  %v5980_v4 = vor.u32 %v6551_v62, %v5979_v59  ;;  %v6063_v23 = vld [vmem:[%s9691_s1 + $0xcc0] sm:$0xf] }
 0x142   :  { %3661 = vmatpush.bf16.msrb.mxu2 %v5776_v53  ;;  %v6003_v53 = vld [vmem:[%s9691_s1 + $0xc48] sm:$0xf]  ;;  %v6572_v11 = vld [vmem:[%s9691_s1 + $0xcc8] sm:$0xf0] }
 0x143   :  { %3675 = vmatpush.bf16.msrb.mxu3 %v5872_v47  ;;  %3634 = vmatmul.bf16.vlgmr.msrb.gmra.mxu0 %v8842_v16  ;;  %v6484_v47 = vld [vmem:[%s9691_s1 + $0xa0c] sm:$0xf]  ;;  %v6004_v31 = vor.u32 %v6557_v21, %v6003_v53  ;;  %v5696_v53 = vor.u32 %v6478_v3, %v5693_v46  ;;  %v5837_v62 = vld [vmem:[%s9691_s1 + $0xb04] sm:$0xf0]  ;;  %v6586_v3 = vld [vmem:[%s9691_s1 + $0xd3c] sm:$0xf] }
 0x144   :  { %3682 = vmatpush.bf16.msra.mxu0 %v6052_v0  ;;  %3648 = vmatmul.bf16.vlgmr.msrb.gmra.mxu1 %v8844_v17  ;;  %v6099_v0 = vld [vmem:[%s9691_s1 + $0xd08] sm:$0xf]  ;;  %v5720_v30 = vor.u32 %v6484_v47, %v5717_v24  ;;  %v6544_v21 = vld [vmem:[%s9691_s1 + $0xbec] sm:$0xf]  ;;  %v6064_v47 = vor.u32 %v6572_v11, %v6063_v23  ;;  %v6475_v24 = vld [vmem:[%s9691_s1 + $0x9c4] sm:$0xf] }
 0x145   :  { %3696 = vmatpush.bf16.msra.mxu1 %v6148_v6  ;;  %3662 = vmatmul.bf16.vlgmr.msrb.gmra.mxu2 %v8894_v42  ;;  %v2396_v6 = vadd.f32 %v2395_v20, %v2382_v13  ;;  %v6100_v15 = vor.u32 %v6581_v27, %v6099_v0  ;;  %v6451_v13 = vld [vmem:[%s9691_s1 + $0x904] sm:$0xf]  ;;  %v5861_v20 = vld [vmem:[%s9691_s1 + $0xb34] sm:$0xf0]  ;;  %v6125_v46 = vld [vmem:[%s9691_s1 + $0xd44] sm:$0xf0] }
 0x146   :  { %3710 = vmatpush.bf16.msra.mxu2 %v5672_v7  ;;  %3676 = vmatmul.bf16.vlgmr.msrb.gmra.mxu3 %v8896_v43  ;;  %v5621_v7 = vld [vmem:[%s9691_s1 + $0x954] sm:$0xf0]  ;;  %v6535_v23 = vld [vmem:[%s9691_s1 + $0xba4] sm:$0xf] }
 0x147   :  { %3724 = vmatpush.bf16.msra.mxu3 %v5768_v48  ;;  %v5991_v48 = vld [vmem:[%s9691_s1 + $0xc30] sm:$0xf]  ;;  %v5624_v55 = vor.u32 %v6460_v12, %v5621_v7  ;;  %v5957_v27 = vld [vmem:[%s9691_s1 + $0xbf4] sm:$0xf0]  ;;  %v5968_v7 = vor.u32 %v6548_v9, %v5967_v8  ;;  %v6511_v8 = vld [vmem:[%s9691_s1 + $0xae4] sm:$0xf] }
 0x148   :  { %3683 = vmatpush.bf16.msra.mxu0 %v6040_v33  ;;  %v2409_v37 = vpop.f32.mrf.mxu2  ;;  %v5609_v33 = vld [vmem:[%s9691_s1 + $0x93c] sm:$0xf0]  ;;  %v2383_v41 = vpop.f32.mrf.mxu0  ;;  %v5992_v57 = vor.u32 %v6554_v25, %v5991_v48  ;;  %v6592_v25 = vld [vmem:[%s9691_s1 + $0xd6c] sm:$0xf]  ;;  %v5960_v26 = vor.u32 %v6544_v21, %v5957_v27  ;;  %v5825_v9 = vld [vmem:[%s9691_s1 + $0xaec] sm:$0xf0] }
 0x149   :  { %3697 = vmatpush.bf16.msra.mxu1 %v6136_v38  ;;  %v2410_v38 = vadd.f32 %v2409_v37, %v2396_v6  ;;  %v2384_v50 = vadd.f32 %v2383_v41, %v8953_v22  ;;  %v2423_v35 = vpop.f32.mrf.mxu3  ;;  %v5612_v36 = vor.u32 %v6457_v32, %v5609_v33  ;;  %v2397_v61 = vpop.f32.mrf.mxu1  ;;  %v6075_v22 = vld [vmem:[%s9691_s1 + $0xcd8] sm:$0xf]  ;;  %v6568_v6 = vld [vmem:[%s9691_s1 + $0xcac] sm:$0xf]  ;;  %v5849_v32 = vld [vmem:[%s9691_s1 + $0xb1c] sm:$0xf0] }
 0x14a   :  { %3711 = vmatpush.bf16.msra.mxu2 %v5660_v60  ;;  %v5705_v60 = vld [vmem:[%s9691_s1 + $0x9fc] sm:$0xf0]  ;;  %v6541_v33 = vld [vmem:[%s9691_s1 + $0xbd4] sm:$0xf]  ;;  %v6559_v11 = vld [vmem:[%s9691_s1 + $0xc64] sm:$0xf] }
 0x14b   :  { %3725 = vmatpush.bf16.msra.mxu3 %v5756_v54  ;;  %v9094_v54 = vadd.f32 %v2423_v35, %v2410_v38  ;;  %v5945_v41 = vld [vmem:[%s9691_s1 + $0xbdc] sm:$0xf0] }
 0x14c   :  { %3684 = vmatpush.bf16.msra.mxu0 %v6028_v56  ;;  %v2398_v56 = vadd.f32 %v2397_v61, %v2384_v50  ;;  %v6152_v50 = vor.u32 %v6592_v25, %v6149_v19  ;;  %v5948_v59 = vor.u32 %v6541_v33, %v5945_v41  ;;  %v6514_v61 = vld [vmem:[%s9691_s1 + $0xafc] sm:$0xf]  ;;  %v6580_v25 = vld [vmem:[%s9691_s1 + $0xd0c] sm:$0xf]  ;;  %v6101_v19 = vld [vmem:[%s9691_s1 + $0xd14] sm:$0xf0] }
 0x14d   :  { %3698 = vmatpush.bf16.msra.mxu1 %v6124_v51  ;;  %v5708_v51 = vor.u32 %v6481_v39, %v5705_v60  ;;  %v6565_v39 = vld [vmem:[%s9691_s1 + $0xc94] sm:$0xf]  ;;  %v6041_v60 = vld [vmem:[%s9691_s1 + $0xc9c] sm:$0xf0] }
 0x14e   :  { %3712 = vmatpush.bf16.msra.mxu2 %v5648_v2  ;;  %v5597_v2 = vld [vmem:[%s9691_s1 + $0x924] sm:$0xf0]  ;;  %v6529_v33 = vld [vmem:[%s9691_s1 + $0xb74] sm:$0xf] }
 0x14f   :  { %3726 = vmatpush.bf16.msra.mxu3 %v5744_v5  ;;  %v6076_v5 = vor.u32 %v6575_v18, %v6075_v22  ;;  %v5600_v10 = vor.u32 %v6454_v1, %v5597_v2  ;;  %v6538_v22 = vld [vmem:[%s9691_s1 + $0xbbc] sm:$0xf]  ;;  %v5933_v18 = vld [vmem:[%s9691_s1 + $0xbc4] sm:$0xf0]  ;;  %v5840_v2 = vor.u32 %v6514_v61, %v5837_v62  ;;  %v6553_v41 = vld [vmem:[%s9691_s1 + $0xc34] sm:$0xf] }
 0x150   :  { %3685 = vmatpush.bf16.msra.mxu0 %v6016_v52  ;;  %v5585_v52 = vld [vmem:[%s9691_s1 + $0x90c] sm:$0xf0]  ;;  %v6089_v61 = vld [vmem:[%s9691_s1 + $0xcfc] sm:$0xf0] }
 0x151   :  { %3699 = vmatpush.bf16.msra.mxu1 %v6112_v45  ;;  %v2411_v45 = vpop.f32.mrf.mxu2  ;;  %v2425_v12 = vpop.f32.mrf.mxu3  ;;  %v5588_v48 = vor.u32 %v6451_v13, %v5585_v52  ;;  %v6017_v13 = vld [vmem:[%s9691_s1 + $0xc6c] sm:$0xf0]  ;;  %v6128_v52 = vor.u32 %v6586_v3, %v6125_v46  ;;  %v6550_v46 = vld [vmem:[%s9691_s1 + $0xc1c] sm:$0xf] }
 0x152   :  { %3713 = vmatpush.bf16.msra.mxu2 %v5636_v14  ;;  %v6520_v14 = vld [vmem:[%s9691_s1 + $0xb2c] sm:$0xf]  ;;  %v2412_v0 = vadd.f32 %v2411_v45, %v2398_v56  ;;  %v6562_v56 = vld [vmem:[%s9691_s1 + $0xc7c] sm:$0xf]  ;;  %v6020_v27 = vor.u32 %v6559_v11, %v6017_v13  ;;  %v6499_v11 = vld [vmem:[%s9691_s1 + $0xa84] sm:$0xf] }
 0x153   :  { %3727 = vmatpush.bf16.msra.mxu3 %v5732_v44  ;;  %v6053_v44 = vld [vmem:[%s9691_s1 + $0xcb4] sm:$0xf0]  ;;  %v5777_v13 = vld [vmem:[%s9691_s1 + $0xa8c] sm:$0xf0] }
 0x154   :  { %3686 = vmatpush.bf16.msra.mxu0 %v6004_v31  ;;  %v5681_v31 = vld [vmem:[%s9691_s1 + $0x9cc] sm:$0xf0]  ;;  %v6056_v37 = vor.u32 %v6568_v6, %v6053_v44  ;;  %v6508_v44 = vld [vmem:[%s9691_s1 + $0xacc] sm:$0xf] }
 0x155   :  { %3700 = vmatpush.bf16.msra.mxu1 %v6100_v15  ;;  %v9159_v15 = vadd.f32 %v2425_v12, %v2412_v0  ;;  %v5684_v38 = vor.u32 %v6475_v24, %v5681_v31  ;;  %v5813_v12 = vld [vmem:[%s9691_s1 + $0xad4] sm:$0xf0] }
 0x156   :  { %3714 = vmatpush.bf16.msra.mxu2 %v5624_v55  ;;  %v5864_v55 = vor.u32 %v6520_v14, %v5861_v20  ;;  %v6583_v14 = vld [vmem:[%s9691_s1 + $0xd24] sm:$0xf]  ;;  %v6113_v20 = vld [vmem:[%s9691_s1 + $0xd2c] sm:$0xf0]  ;;  %v6005_v24 = vld [vmem:[%s9691_s1 + $0xc54] sm:$0xf0] }
 0x157   :  { %3728 = vmatpush.bf16.msra.mxu3 %v5720_v30  ;;  %v6517_v30 = vld [vmem:[%s9691_s1 + $0xb14] sm:$0xf] }
 0x158   :  { %3687 = vmatpush.bf16.msra.mxu0 %v5992_v57  ;;  %v5852_v35 = vor.u32 %v6517_v30, %v5849_v32  ;;  %v6589_v57 = vld [vmem:[%s9691_s1 + $0xd54] sm:$0xf]  ;;  %v5801_v32 = vld [vmem:[%s9691_s1 + $0xabc] sm:$0xf0] }
 0x159   :  { %3701 = vmatpush.bf16.msra.mxu1 %v6088_v58  ;;  %v6137_v58 = vld [vmem:[%s9691_s1 + $0xd5c] sm:$0xf0]  ;;  %v6505_v30 = vld [vmem:[%s9691_s1 + $0xab4] sm:$0xf] }
 0x15a   :  { %3715 = vmatpush.bf16.msra.mxu2 %v5612_v36  ;;  %v6044_v36 = vor.u32 %v6565_v39, %v6041_v60  ;;  %v6140_v1 = vor.u32 %v6589_v57, %v6137_v58  ;;  %v5993_v39 = vld [vmem:[%s9691_s1 + $0xc3c] sm:$0xf0] }
 0x15b   :  { %3729 = vmatpush.bf16.msra.mxu3 %v5708_v51  ;;  %v6029_v51 = vld [vmem:[%s9691_s1 + $0xc84] sm:$0xf0] }
 0x15c   :  { %3688 = vmatpush.bf16.msra.mxu0 %v5980_v4  ;;  %v5936_v4 = vor.u32 %v6538_v22, %v5933_v18  ;;  %v5996_v18 = vor.u32 %v6553_v41, %v5993_v39 }
 0x15d   :  { %3702 = vmatpush.bf16.msra.mxu1 %v6076_v5  ;;  %v6032_v5 = vor.u32 %v6562_v56, %v6029_v51  ;;  %v6502_v51 = vld [vmem:[%s9691_s1 + $0xa9c] sm:$0xf] }
 0x15e   :  { %3716 = vmatpush.bf16.msra.mxu2 %v5600_v10  ;;  %v5921_v10 = vld [vmem:[%s9691_s1 + $0xbac] sm:$0xf0] }
 0x15f   :  { %3730 = vmatpush.bf16.msra.mxu3 %v5696_v53  ;;  %v5828_v53 = vor.u32 %v6511_v8, %v5825_v9  ;;  %v5924_v0 = vor.u32 %v6535_v23, %v5921_v10  ;;  %v6574_v9 = vld [vmem:[%s9691_s1 + $0xcdc] sm:$0xf]  ;;  %v6077_v10 = vld [vmem:[%s9691_s1 + $0xce4] sm:$0xf0] }
 0x160   :  { %3689 = vmatpush.bf16.msra.mxu0 %v5968_v7  ;;  %v2437_v45 = vpop.f32.mrf.mxu0  ;;  %v6532_v7 = vld [vmem:[%s9691_s1 + $0xb8c] sm:$0xf] }
 0x161   :  { %3703 = vmatpush.bf16.msra.mxu1 %v6064_v47  ;;  %v2438_v21 = vadd.f32 %v2437_v45, %v8399_v28  ;;  %v2451_v6 = vpop.f32.mrf.mxu1  ;;  %v5909_v47 = vld [vmem:[%s9691_s1 + $0xb94] sm:$0xf0]  ;;  %v6556_v28 = vld [vmem:[%s9691_s1 + $0xc4c] sm:$0xf] }
 0x162   :  { %3717 = vmatpush.bf16.msra.mxu2 %v5588_v48  ;;  %v6116_v48 = vor.u32 %v6583_v14, %v6113_v20  ;;  %v5873_v14 = vld [vmem:[%s9691_s1 + $0xb4c] sm:$0xf0]  ;;  %v6547_v20 = vld [vmem:[%s9691_s1 + $0xc04] sm:$0xf] }
 0x163   :  { %3731 = vmatpush.bf16.msra.mxu3 %v5684_v38  ;;  %3690 = vmatmul.bf16.vlgmr.msra.gmra.mxu0 %v9012_v63  ;;  %v2452_v31 = vadd.f32 %v2451_v6, %v2438_v21  ;;  %v5897_v38 = vld [vmem:[%s9691_s1 + $0xb7c] sm:$0xf0]  ;;  %v5969_v21 = vld [vmem:[%s9691_s1 + $0xc0c] sm:$0xf0] }
 0x164   :  { %3738 = vmatpush.bf16.msrb.mxu0 %v5864_v55  ;;  %3704 = vmatmul.bf16.vlgmr.msra.gmra.mxu1 %v9014_v40  ;;  %v5816_v55 = vor.u32 %v6508_v44, %v5813_v12  ;;  %v5900_v22 = vor.u32 %v6529_v33, %v5897_v38  ;;  %v6080_v44 = vor.u32 %v6574_v9, %v6077_v10  ;;  %v5771_v12 = vld [vmem:[%s9691_s1 + $0xa70] sm:$0xf]  ;;  %v6540_v9 = vld [vmem:[%s9691_s1 + $0xbc8] sm:$0xf0] }
 0x165   :  { %3752 = vmatpush.bf16.msrb.mxu1 %v5960_v26  ;;  %3718 = vmatmul.bf16.vlgmr.msra.gmra.mxu2 %v8842_v16  ;;  %v5912_v26 = vor.u32 %v6532_v7, %v5909_v47  ;;  %v6498_v7 = vld [vmem:[%s9691_s1 + $0xa78] sm:$0xf0]  ;;  %v6571_v47 = vld [vmem:[%s9691_s1 + $0xcc4] sm:$0xf] }
 0x166   :  { %3766 = vmatpush.bf16.msrb.mxu2 %v6056_v37  ;;  %3732 = vmatmul.bf16.vlgmr.msra.gmra.mxu3 %v8844_v17  ;;  %v6008_v37 = vor.u32 %v6556_v28, %v6005_v24  ;;  %v5772_v38 = vor.u32 %v6498_v7, %v5771_v12 }
 0x167   :  { %3780 = vmatpush.bf16.msrb.mxu3 %v6152_v50  ;;  %v6104_v50 = vor.u32 %v6580_v25, %v6101_v19  ;;  %v6522_v25 = vld [vmem:[%s9691_s1 + $0xb38] sm:$0xf0] }
 0x168   :  { %3739 = vmatpush.bf16.msrb.mxu0 %v5852_v35  ;;  %v2465_v60 = vpop.f32.mrf.mxu2  ;;  %v2439_v57 = vpop.f32.mrf.mxu0 }
 0x169   :  { %3753 = vmatpush.bf16.msrb.mxu1 %v5948_v59  ;;  %v2466_v35 = vadd.f32 %v2465_v60, %v2452_v31  ;;  %v2479_v58 = vpop.f32.mrf.mxu3  ;;  %v5804_v59 = vor.u32 %v6505_v30, %v5801_v32  ;;  %v2440_v62 = vadd.f32 %v2439_v57, %v8462_v34  ;;  %v2453_v56 = vpop.f32.mrf.mxu1  ;;  %v5885_v34 = vld [vmem:[%s9691_s1 + $0xb64] sm:$0xf0]  ;;  %v5780_v31 = vor.u32 %v6499_v11, %v5777_v13  ;;  %v6546_v30 = vld [vmem:[%s9691_s1 + $0xbf8] sm:$0xf0]  ;;  %v5663_v60 = vld [vmem:[%s9691_s1 + $0x998] sm:$0xf] }
 0x16a   :  { %3767 = vmatpush.bf16.msrb.mxu2 %v6044_v36  ;;  %v6577_v36 = vld [vmem:[%s9691_s1 + $0xcf4] sm:$0xf]  ;;  %v5639_v13 = vld [vmem:[%s9691_s1 + $0x968] sm:$0xf] }
 0x16b   :  { %3781 = vmatpush.bf16.msrb.mxu3 %v6140_v1  ;;  %v5789_v1 = vld [vmem:[%s9691_s1 + $0xaa4] sm:$0xf0]  ;;  %v9302_v3 = vadd.f32 %v2479_v58, %v2466_v35  ;;  %v6092_v8 = vor.u32 %v6577_v36, %v6089_v61  ;;  %v5759_v35 = vld [vmem:[%s9691_s1 + $0xa58] sm:$0xf]  ;;  %v6495_v58 = vld [vmem:[%s9691_s1 + $0xa60] sm:$0xf0] }
 0x16c   :  { %3740 = vmatpush.bf16.msrb.mxu0 %v5840_v2  ;;  %v6526_v2 = vld [vmem:[%s9691_s1 + $0xb5c] sm:$0xf]  ;;  %v5792_v23 = vor.u32 %v6502_v51, %v5789_v1  ;;  %v6519_v36 = vld [vmem:[%s9691_s1 + $0xb20] sm:$0xf0]  ;;  %v5951_v61 = vld [vmem:[%s9691_s1 + $0xbd8] sm:$0xf] }
 0x16d   :  { %3754 = vmatpush.bf16.msrb.mxu1 %v5936_v4  ;;  %v5981_v4 = vld [vmem:[%s9691_s1 + $0xc24] sm:$0xf0]  ;;  %v5651_v51 = vld [vmem:[%s9691_s1 + $0x980] sm:$0xf]  ;;  %v6468_v1 = vld [vmem:[%s9691_s1 + $0x988] sm:$0xf0] }
 0x16e   :  { %3768 = vmatpush.bf16.msrb.mxu2 %v6032_v5  ;;  %v2454_v5 = vadd.f32 %v2453_v56, %v2440_v62  ;;  %v5984_v45 = vor.u32 %v6550_v46, %v5981_v4  ;;  %v6543_v62 = vld [vmem:[%s9691_s1 + $0xbe0] sm:$0xf0]  ;;  %v6492_v46 = vld [vmem:[%s9691_s1 + $0xa48] sm:$0xf0]  ;;  %v5843_v4 = vld [vmem:[%s9691_s1 + $0xb00] sm:$0xf] }
 0x16f   :  { %3782 = vmatpush.bf16.msrb.mxu3 %v6128_v52  ;;  %v5888_v52 = vor.u32 %v6526_v2, %v5885_v34  ;;  %v5747_v2 = vld [vmem:[%s9691_s1 + $0xa40] sm:$0xf]  ;;  %v5952_v34 = vor.u32 %v6543_v62, %v5951_v61  ;;  %v5903_v62 = vld [vmem:[%s9691_s1 + $0xb78] sm:$0xf] }
 0x170   :  { %3741 = vmatpush.bf16.msrb.mxu0 %v5828_v53  ;;  %v6523_v53 = vld [vmem:[%s9691_s1 + $0xb44] sm:$0xf]  ;;  %v2467_v6 = vpop.f32.mrf.mxu2  ;;  %v5748_v10 = vor.u32 %v6492_v46, %v5747_v2 }
 0x171   :  { %3755 = vmatpush.bf16.msrb.mxu1 %v5924_v0  ;;  %v5675_v0 = vld [vmem:[%s9691_s1 + $0x9b0] sm:$0xf]  ;;  %v2468_v28 = vadd.f32 %v2467_v6, %v2454_v5  ;;  %v2481_v24 = vpop.f32.mrf.mxu3  ;;  %v5876_v19 = vor.u32 %v6523_v53, %v5873_v14  ;;  %v6516_v5 = vld [vmem:[%s9691_s1 + $0xb08] sm:$0xf0]  ;;  %v6489_v14 = vld [vmem:[%s9691_s1 + $0xa30] sm:$0xf0] }
 0x172   :  { %3769 = vmatpush.bf16.msrb.mxu2 %v6020_v27  ;;  %v6474_v27 = vld [vmem:[%s9691_s1 + $0x9b8] sm:$0xf0]  ;;  %v5844_v11 = vor.u32 %v6516_v5, %v5843_v4  ;;  %v5603_v4 = vld [vmem:[%s9691_s1 + $0x920] sm:$0xf]  ;;  %v6456_v5 = vld [vmem:[%s9691_s1 + $0x928] sm:$0xf0] }
 0x173   :  { %3783 = vmatpush.bf16.msrb.mxu3 %v6116_v48  ;;  %v6065_v48 = vld [vmem:[%s9691_s1 + $0xccc] sm:$0xf0]  ;;  %v9367_v32 = vadd.f32 %v2481_v24, %v2468_v28  ;;  %v5676_v33 = vor.u32 %v6474_v27, %v5675_v0  ;;  %v5927_v0 = vld [vmem:[%s9691_s1 + $0xba8] sm:$0xf]  ;;  %v6537_v27 = vld [vmem:[%s9691_s1 + $0xbb0] sm:$0xf0] }
 0x174   :  { %3742 = vmatpush.bf16.msrb.mxu0 %v5816_v55  ;;  %v5867_v55 = vld [vmem:[%s9691_s1 + $0xb30] sm:$0xf]  ;;  %v6068_v41 = vor.u32 %v6571_v47, %v6065_v48 }
 0x175   :  { %3756 = vmatpush.bf16.msrb.mxu1 %v5912_v26  ;;  %v5972_v26 = vor.u32 %v6547_v20, %v5969_v21  ;;  %v5868_v39 = vor.u32 %v6522_v25, %v5867_v55  ;;  %v5831_v20 = vld [vmem:[%s9691_s1 + $0xae8] sm:$0xf]  ;;  %v6513_v21 = vld [vmem:[%s9691_s1 + $0xaf0] sm:$0xf0]  ;;  %v5627_v24 = vld [vmem:[%s9691_s1 + $0x950] sm:$0xf]  ;;  %v5928_v55 = vor.u32 %v6537_v27, %v5927_v0 }
 0x176   :  { %3770 = vmatpush.bf16.msrb.mxu2 %v6008_v37  ;;  %v5963_v37 = vld [vmem:[%s9691_s1 + $0xbf0] sm:$0xf]  ;;  %v5832_v28 = vor.u32 %v6513_v21, %v5831_v20  ;;  %v6453_v21 = vld [vmem:[%s9691_s1 + $0x910] sm:$0xf0]  ;;  %v5687_v0 = vld [vmem:[%s9691_s1 + $0x9c8] sm:$0xf] }
 0x177   :  { %3784 = vmatpush.bf16.msrb.mxu3 %v6104_v50  ;;  %v6471_v50 = vld [vmem:[%s9691_s1 + $0x9a0] sm:$0xf0]  ;;  %v5964_v57 = vor.u32 %v6546_v30, %v5963_v37  ;;  %v5723_v48 = vld [vmem:[%s9691_s1 + $0xa10] sm:$0xf]  ;;  %v6534_v30 = vld [vmem:[%s9691_s1 + $0xb98] sm:$0xf0] }
 0x178   :  { %3743 = vmatpush.bf16.msrb.mxu0 %v5804_v59  ;;  %v5855_v59 = vld [vmem:[%s9691_s1 + $0xb18] sm:$0xf]  ;;  %v5819_v25 = vld [vmem:[%s9691_s1 + $0xad0] sm:$0xf]  ;;  %v6477_v27 = vld [vmem:[%s9691_s1 + $0x9d0] sm:$0xf0] }
 0x179   :  { %3757 = vmatpush.bf16.msrb.mxu1 %v5900_v22  ;;  %v5664_v22 = vor.u32 %v6471_v50, %v5663_v60  ;;  %v5856_v56 = vor.u32 %v6519_v36, %v5855_v59  ;;  %v5915_v37 = vld [vmem:[%s9691_s1 + $0xb90] sm:$0xf]  ;;  %v6459_v60 = vld [vmem:[%s9691_s1 + $0x940] sm:$0xf0]  ;;  %v5711_v50 = vld [vmem:[%s9691_s1 + $0x9f8] sm:$0xf] }
 0x17a   :  { %3771 = vmatpush.bf16.msrb.mxu2 %v5996_v18  ;;  %v5760_v18 = vor.u32 %v6495_v58, %v5759_v35  ;;  %v6483_v35 = vld [vmem:[%s9691_s1 + $0xa00] sm:$0xf0]  ;;  %v5916_v58 = vor.u32 %v6534_v30, %v5915_v37  ;;  %v5807_v59 = vld [vmem:[%s9691_s1 + $0xab8] sm:$0xf]  ;;  %v5688_v37 = vor.u32 %v6477_v27, %v5687_v0  ;;  %v5987_v27 = vld [vmem:[%s9691_s1 + $0xc20] sm:$0xf] }
 0x17b   :  { %3785 = vmatpush.bf16.msrb.mxu3 %v6092_v8  ;;  %v5939_v8 = vld [vmem:[%s9691_s1 + $0xbc0] sm:$0xf]  ;;  %v6507_v36 = vld [vmem:[%s9691_s1 + $0xac0] sm:$0xf0] }
 0x17c   :  { %3744 = vmatpush.bf16.msrb.mxu0 %v5792_v23  ;;  %v5652_v23 = vor.u32 %v6468_v1, %v5651_v51  ;;  %v5940_v53 = vor.u32 %v6540_v9, %v5939_v8  ;;  %v5712_v1 = vor.u32 %v6483_v35, %v5711_v50  ;;  %v5808_v46 = vor.u32 %v6507_v36, %v5807_v59  ;;  %v5699_v8 = vld [vmem:[%s9691_s1 + $0x9e0] sm:$0xf]  ;;  %v6143_v50 = vld [vmem:[%s9691_s1 + $0xd58] sm:$0xf]  ;;  %v6591_v35 = vld [vmem:[%s9691_s1 + $0xd60] sm:$0xf0] }
 0x17d   :  { %3758 = vmatpush.bf16.msrb.mxu1 %v5888_v52  ;;  %v6465_v52 = vld [vmem:[%s9691_s1 + $0x970] sm:$0xf0]  ;;  %v6035_v59 = vld [vmem:[%s9691_s1 + $0xc80] sm:$0xf]  ;;  %v6564_v36 = vld [vmem:[%s9691_s1 + $0xc88] sm:$0xf0] }
 0x17e   :  { %3772 = vmatpush.bf16.msrb.mxu2 %v5984_v45  ;;  %v5735_v45 = vld [vmem:[%s9691_s1 + $0xa28] sm:$0xf] }
 0x17f   :  { %3786 = vmatpush.bf16.msrb.mxu3 %v6080_v44  ;;  %v5640_v44 = vor.u32 %v6465_v52, %v5639_v13  ;;  %v5736_v7 = vor.u32 %v6489_v14, %v5735_v45  ;;  %v5891_v13 = vld [vmem:[%s9691_s1 + $0xb60] sm:$0xf]  ;;  %v6528_v52 = vld [vmem:[%s9691_s1 + $0xb68] sm:$0xf0]  ;;  %v5604_v45 = vor.u32 %v6456_v5, %v5603_v4  ;;  %v6558_v4 = vld [vmem:[%s9691_s1 + $0xc58] sm:$0xf0] }
 0x180   :  { %3745 = vmatpush.bf16.msrb.mxu0 %v5780_v31  ;;  %v2493_v6 = vpop.f32.mrf.mxu0  ;;  %v6462_v31 = vld [vmem:[%s9691_s1 + $0x958] sm:$0xf0]  ;;  %v6107_v5 = vld [vmem:[%s9691_s1 + $0xd10] sm:$0xf] }
 0x181   :  { %3759 = vmatpush.bf16.msrb.mxu1 %v5876_v19  ;;  %v2494_v12 = vadd.f32 %v2493_v6, %v9302_v3  ;;  %v2507_v47 = vpop.f32.mrf.mxu1  ;;  %v6486_v3 = vld [vmem:[%s9691_s1 + $0xa18] sm:$0xf0] }
 0x182   :  { %3773 = vmatpush.bf16.msrb.mxu2 %v5972_v26  ;;  %v6510_v19 = vld [vmem:[%s9691_s1 + $0xad8] sm:$0xf0] }
 0x183   :  { %3787 = vmatpush.bf16.msrb.mxu3 %v6068_v41  ;;  %3746 = vmatmul.bf16.vlgmr.msrb.gmra.mxu0 %v8894_v42  ;;  %v9464_v26 = vadd.f32 %v2507_v47, %v2494_v12  ;;  %v5724_v41 = vor.u32 %v6486_v3, %v5723_v48  ;;  %v5783_v12 = vld [vmem:[%s9691_s1 + $0xa88] sm:$0xf]  ;;  %v6059_v47 = vld [vmem:[%s9691_s1 + $0xcb0] sm:$0xf]  ;;  %v6594_v48 = vld [vmem:[%s9691_s1 + $0xd78] sm:$0xf0] }
 0x184   :  { %3794 = vmatpush.bf16.msra.mxu0 %v5676_v33  ;;  %3760 = vmatmul.bf16.vlgmr.msrb.gmra.mxu1 %v8896_v43  ;;  %v5628_v33 = vor.u32 %v6462_v31, %v5627_v24  ;;  %v6570_v24 = vld [vmem:[%s9691_s1 + $0xcb8] sm:$0xf0]  ;;  %v6155_v31 = vld [vmem:[%s9691_s1 + $0xd70] sm:$0xf] }
 0x185   :  { %3808 = vmatpush.bf16.msra.mxu1 %v5772_v38  ;;  %3774 = vmatmul.bf16.vlgmr.msrb.gmra.mxu2 %v9012_v63  ;;  %v5615_v38 = vld [vmem:[%s9691_s1 + $0x938] sm:$0xf] }
 0x186   :  { %3822 = vmatpush.bf16.msra.mxu2 %v5868_v39  ;;  %3788 = vmatmul.bf16.vlgmr.msrb.gmra.mxu3 %v9014_v40  ;;  %v5820_v39 = vor.u32 %v6510_v19, %v5819_v25  ;;  %v5616_v51 = vor.u32 %v6459_v60, %v5615_v38  ;;  %v5879_v25 = vld [vmem:[%s9691_s1 + $0xb48] sm:$0xf]  ;;  %v6156_v38 = vor.u32 %v6594_v48, %v6155_v31  ;;  %v6567_v60 = vld [vmem:[%s9691_s1 + $0xca0] sm:$0xf0] }
 0x187   :  { %3836 = vmatpush.bf16.msra.mxu3 %v5964_v57 }
 0x188   :  { %3795 = vmatpush.bf16.msra.mxu0 %v5664_v22  ;;  %v2521_v57 = vpop.f32.mrf.mxu2  ;;  %v6531_v22 = vld [vmem:[%s9691_s1 + $0xb80] sm:$0xf0] }
 0x189   :  { %3809 = vmatpush.bf16.msra.mxu1 %v5760_v18  ;;  %v2522_v61 = vadd.f32 %v2521_v57, %v8790_v49  ;;  %v2495_v18 = vpop.f32.mrf.mxu0  ;;  %v2509_v49 = vpop.f32.mrf.mxu1  ;;  %v5904_v9 = vor.u32 %v6531_v22, %v5903_v62  ;;  %v6588_v62 = vld [vmem:[%s9691_s1 + $0xd48] sm:$0xf0]  ;;  %v6036_v22 = vor.u32 %v6564_v36, %v6035_v59 }
 0x18a   :  { %3823 = vmatpush.bf16.msra.mxu2 %v5856_v56  ;;  %v2535_v56 = vpop.f32.mrf.mxu3  ;;  %v2496_v2 = vadd.f32 %v2495_v18, %v9367_v32  ;;  %v6480_v32 = vld [vmem:[%s9691_s1 + $0x9e8] sm:$0xf0]  ;;  %v6023_v18 = vld [vmem:[%s9691_s1 + $0xc68] sm:$0xf] }
 0x18b   :  { %3837 = vmatpush.bf16.msra.mxu3 %v5952_v34  ;;  %v9498_v34 = vadd.f32 %v2535_v56, %v2522_v61  ;;  %v5700_v14 = vor.u32 %v6480_v32, %v5699_v8  ;;  %v6131_v61 = vld [vmem:[%s9691_s1 + $0xd40] sm:$0xf]  ;;  %v6561_v56 = vld [vmem:[%s9691_s1 + $0xc70] sm:$0xf0]  ;;  %v6582_v8 = vld [vmem:[%s9691_s1 + $0xd18] sm:$0xf0] }
 0x18c   :  { %3796 = vmatpush.bf16.msra.mxu0 %v5652_v23  ;;  %v5795_v23 = vld [vmem:[%s9691_s1 + $0xaa0] sm:$0xf] }
 0x18d   :  { %3810 = vmatpush.bf16.msra.mxu1 %v5748_v10  ;;  %v6504_v10 = vld [vmem:[%s9691_s1 + $0xaa8] sm:$0xf0] }
 0x18e   :  { %3824 = vmatpush.bf16.msra.mxu2 %v5844_v11  ;;  %v9518_v11 = vadd.f32 %v2509_v49, %v2496_v2  ;;  %v5796_v20 = vor.u32 %v6504_v10, %v5795_v23  ;;  %v6108_v23 = vor.u32 %v6582_v8, %v6107_v5  ;;  %v6555_v10 = vld [vmem:[%s9691_s1 + $0xc40] sm:$0xf0] }
 0x18f   :  { %3838 = vmatpush.bf16.msra.mxu3 %v5940_v53  ;;  %v5591_v53 = vld [vmem:[%s9691_s1 + $0x908] sm:$0xf] }
 0x190   :  { %3797 = vmatpush.bf16.msra.mxu0 %v5640_v44  ;;  %v2523_v6 = vpop.f32.mrf.mxu2  ;;  %v5892_v44 = vor.u32 %v6528_v52, %v5891_v13  ;;  %v5592_v3 = vor.u32 %v6453_v21, %v5591_v53  ;;  %v6095_v13 = vld [vmem:[%s9691_s1 + $0xcf8] sm:$0xf]  ;;  %v6579_v52 = vld [vmem:[%s9691_s1 + $0xd00] sm:$0xf0] }
 0x191   :  { %3811 = vmatpush.bf16.msra.mxu1 %v5736_v7  ;;  %v6501_v7 = vld [vmem:[%s9691_s1 + $0xa90] sm:$0xf0]  ;;  %v6096_v0 = vor.u32 %v6579_v52, %v6095_v13 }
 0x192   :  { %3825 = vmatpush.bf16.msra.mxu2 %v5832_v28  ;;  %v2524_v28 = vadd.f32 %v2523_v6, %v8874_v29  ;;  %v6525_v29 = vld [vmem:[%s9691_s1 + $0xb50] sm:$0xf0]  ;;  %v5784_v30 = vor.u32 %v6501_v7, %v5783_v12  ;;  %v6552_v7 = vld [vmem:[%s9691_s1 + $0xc28] sm:$0xf0] }
 0x193   :  { %3839 = vmatpush.bf16.msra.mxu3 %v5928_v55  ;;  %v2537_v55 = vpop.f32.mrf.mxu3  ;;  %v5988_v31 = vor.u32 %v6552_v7, %v5987_v27 }
 0x194   :  { %3798 = vmatpush.bf16.msra.mxu0 %v5628_v33  ;;  %v9563_v19 = vadd.f32 %v2537_v55, %v2524_v28  ;;  %v6060_v33 = vor.u32 %v6570_v24, %v6059_v47  ;;  %v6083_v47 = vld [vmem:[%s9691_s1 + $0xce0] sm:$0xf]  ;;  %v6576_v28 = vld [vmem:[%s9691_s1 + $0xce8] sm:$0xf0]  ;;  %v5975_v55 = vld [vmem:[%s9691_s1 + $0xc08] sm:$0xf] }
 0x195   :  { %3812 = vmatpush.bf16.msra.mxu1 %v5724_v41  ;;  %v6047_v41 = vld [vmem:[%s9691_s1 + $0xc98] sm:$0xf]  ;;  %v6084_v48 = vor.u32 %v6576_v28, %v6083_v47 }
 0x196   :  { %3826 = vmatpush.bf16.msra.mxu2 %v5820_v39  ;;  %v5880_v39 = vor.u32 %v6525_v29, %v5879_v25  ;;  %v6048_v57 = vor.u32 %v6567_v60, %v6047_v41  ;;  %v6071_v25 = vld [vmem:[%s9691_s1 + $0xcc8] sm:$0xf]  ;;  %v6573_v29 = vld [vmem:[%s9691_s1 + $0xcd0] sm:$0xf0] }
 0x197   :  { %3840 = vmatpush.bf16.msra.mxu3 %v5916_v58  ;;  %v6144_v58 = vor.u32 %v6591_v35, %v6143_v50 }
 0x198   :  { %3799 = vmatpush.bf16.msra.mxu0 %v5616_v51 }
 0x199   :  { %3813 = vmatpush.bf16.msra.mxu1 %v5712_v1  ;;  %v6024_v1 = vor.u32 %v6561_v56, %v6023_v18 }
 0x19a   :  { %3827 = vmatpush.bf16.msra.mxu2 %v5808_v46 }
 0x19b   :  { %3841 = vmatpush.bf16.msra.mxu3 %v5904_v9 }
 0x19c   :  { %3800 = vmatpush.bf16.msra.mxu0 %v5604_v45 }
 0x19d   :  { %3814 = vmatpush.bf16.msra.mxu1 %v5700_v14 }
 0x19e   :  { %3828 = vmatpush.bf16.msra.mxu2 %v5796_v20 }
 0x19f   :  { %3842 = vmatpush.bf16.msra.mxu3 %v5892_v44 }
 0x1a0   :  { %3801 = vmatpush.bf16.msra.mxu0 %v5592_v3  ;;  %v2549_v51 = vpop.f32.mrf.mxu0  ;;  %v6549_v3 = vld [vmem:[%s9691_s1 + $0xc10] sm:$0xf0] }
 0x1a1   :  { %3815 = vmatpush.bf16.msra.mxu1 %v5688_v37  ;;  %v2550_v49 = vadd.f32 %v2549_v51, %v9498_v34  ;;  %v2563_v46 = vpop.f32.mrf.mxu1  ;;  %v5999_v34 = vld [vmem:[%s9691_s1 + $0xc38] sm:$0xf] }
 0x1a2   :  { %3829 = vmatpush.bf16.msra.mxu2 %v5784_v30  ;;  %v6000_v21 = vor.u32 %v6555_v10, %v5999_v34 }
 0x1a3   :  { %3843 = vmatpush.bf16.msra.mxu3 %v5880_v39  ;;  %3802 = vmatmul.bf16.vlgmr.msra.gmra.mxu0 %v8842_v16  ;;  %v6132_v16 = vor.u32 %v6588_v62, %v6131_v61  ;;  %v2564_v9 = vadd.f32 %v2563_v46, %v2550_v49 }
 0x1a4   :  { %3850 = vmatpush.bf16.msrb.mxu0 %v6060_v33  ;;  %3816 = vmatmul.bf16.vlgmr.msra.gmra.mxu1 %v8844_v17  ;;  %v6585_v17 = vld [vmem:[%s9691_s1 + $0xd30] sm:$0xf0]  ;;  %v5976_v33 = vor.u32 %v6549_v3, %v5975_v55 }
 0x1a5   :  { %3864 = vmatpush.bf16.msrb.mxu1 %v6156_v38  ;;  %3830 = vmatmul.bf16.vlgmr.msra.gmra.mxu2 %v8894_v42  ;;  %v6119_v42 = vld [vmem:[%s9691_s1 + $0xd28] sm:$0xf]  ;;  %v6072_v38 = vor.u32 %v6573_v29, %v6071_v25 }
 0x1a6   :  { %3844 = vmatmul.bf16.vlgmr.msra.gmra.mxu3 %v8896_v43  ;;  %v6120_v2 = vor.u32 %v6585_v17, %v6119_v42  ;;  %v6011_v43 = vld [vmem:[%s9691_s1 + $0xc50] sm:$0xf] }
 0x1a7   :  { %v6012_v32 = vor.u32 %v6558_v4, %v6011_v43 }
 0x1a8   :  { %3851 = vmatpush.bf16.msrb.mxu0 %v6048_v57  ;;  %v2577_v45 = vpop.f32.mrf.mxu2  ;;  %v2551_v14 = vpop.f32.mrf.mxu0 }
 0x1a9   :  { %3865 = vmatpush.bf16.msrb.mxu1 %v6144_v58  ;;  %v2578_v53 = vadd.f32 %v2577_v45, %v2564_v9  ;;  %v2591_v20 = vpop.f32.mrf.mxu3  ;;  %v2552_v6 = vadd.f32 %v2551_v14, %v9563_v19  ;;  %v2565_v12 = vpop.f32.mrf.mxu1 }
 0x1ab   :  { %v9634_v44 = vadd.f32 %v2591_v20, %v2578_v53  ;;  %v2566_v24 = vadd.f32 %v2565_v12, %v2552_v6  ;;  %v3916_v20 = vld [vmem:[%s9693_s3] sm:$0xff] }
 0x1ac   :  { %3852 = vmatpush.bf16.msrb.mxu0 %v6036_v22 }
 0x1ad   :  { %3866 = vmatpush.bf16.msrb.mxu1 %v6132_v16 }
 0x1b0   :  { %3853 = vmatpush.bf16.msrb.mxu0 %v6024_v1  ;;  %v2579_v19 = vpop.f32.mrf.mxu2 }
 0x1b1   :  { %3867 = vmatpush.bf16.msrb.mxu1 %v6120_v2  ;;  %v2580_v37 = vadd.f32 %v2579_v19, %v2566_v24  ;;  %v2593_v30 = vpop.f32.mrf.mxu3  ;;  %v9665_v2 = vld [vmem:[%s9692_s2] sm:$0x7] }
 0x1b2   :  { %v3886_v46 = vperm.slane %v9665_v2, 0 }
 0x1b3   :  { %v9657_v41 = vadd.f32 %v2593_v30, %v2580_v37 }
 0x1b4   :  { %3854 = vmatpush.bf16.msrb.mxu0 %v6012_v32 }
 0x1b5   :  { %3868 = vmatpush.bf16.msrb.mxu1 %v6108_v23 }
 0x1b8   :  { %3855 = vmatpush.bf16.msrb.mxu0 %v6000_v21 }
 0x1b9   :  { %3869 = vmatpush.bf16.msrb.mxu1 %v6096_v0 }
 0x1bc   :  { %3856 = vmatpush.bf16.msrb.mxu0 %v5988_v31 }
 0x1bd   :  { %3870 = vmatpush.bf16.msrb.mxu1 %v6084_v48 }
 0x1c0   :  { %3857 = vmatpush.bf16.msrb.mxu0 %v5976_v33  ;;  %v3635_v39 = vpop.f32.mrf.mxu0  ;;  %v3917_v33 = vld [vmem:[%s9693_s3 + $0x8] sm:$0xff] }
 0x1c1   :  { %3871 = vmatpush.bf16.msrb.mxu1 %v6072_v38  ;;  %v3649_v60 = vpop.f32.mrf.mxu1 }
 0x1c2   :  { %v3650_v50 = vadd.f32 %v3649_v60, %v3635_v39 }
 0x1c3   :  { %3858 = vmatmul.bf16.vlgmr.msrb.gmra.mxu0 %v9012_v63 }
 0x1c4   :  { %3872 = vmatmul.bf16.vlgmr.msrb.gmra.mxu1 %v9014_v40 }
 0x1c8   :  { %v3637_v35 = vpop.f32.mrf.mxu0  ;;  %v3663_v58 = vpop.f32.mrf.mxu2 }
 0x1c9   :  { %v3651_v57 = vpop.f32.mrf.mxu1  ;;  %v3664_v59 = vadd.f32 %v3663_v58, %v3650_v50  ;;  %v3677_v36 = vpop.f32.mrf.mxu3 }
 0x1ca   :  { %v3652_v63 = vadd.f32 %v3651_v57, %v3637_v35 }
 0x1cb   :  { %v3678_v61 = vadd.f32 %v3677_v36, %v3664_v59 }
 0x1d0   :  { %v3665_v42 = vpop.f32.mrf.mxu2 }
 0x1d1   :  { %v3679_v17 = vpop.f32.mrf.mxu3  ;;  %v3666_v40 = vadd.f32 %v3665_v42, %v3652_v63 }
 0x1d3   :  { %v3680_v49 = vadd.f32 %v3679_v17, %v3666_v40 }
 0x1e0   :  { %v3691_v62 = vpop.f32.mrf.mxu0 }
 0x1e1   :  { %v3692_v22 = vadd.f32 %v3691_v62, %v3678_v61  ;;  %v3705_v16 = vpop.f32.mrf.mxu1 }
 0x1e3   :  { %v3706_v18 = vadd.f32 %v3705_v16, %v3692_v22 }
 0x1e5   :  { %v3878_v56 = vadd.f32 %v3706_v18, %v9094_v54 }
 0x1e7   :  { %v3892_v9 = vadd.f32 %v3886_v46, %v3878_v56 }
 0x1e8   :  { %v3719_v51 = vpop.f32.mrf.mxu2  ;;  %v3693_v43 = vpop.f32.mrf.mxu0 }
 0x1e9   :  { %v3733_v1 = vpop.f32.mrf.mxu3  ;;  %v3694_v4 = vadd.f32 %v3693_v43, %v3680_v49  ;;  %v3707_v5 = vpop.f32.mrf.mxu1  ;;  %v3904_v34 = vmul.f32 0.01, %v3892_v9  ;;  %vm3898_vm6 = vcmp.gt.f32.partialorder %v3892_v9, 0.0 }
 0x1ea   :  { %v3734_v32 = vadd.f32 %v3733_v1, %v3719_v51 }
 0x1eb   :  { %v3708_v54 = vadd.f32 %v3707_v5, %v3694_v4  ;;  %v3910_v14 = vsel %vm3898_vm6, %v3892_v9, %v3904_v34  ;;  %vm3997_vm6 = vmor %vm3996_vm3, %vm3995_vm2 }
 0x1ec   :  { %v3919_v12 = vmul.f32 %v3916_v20, %v3910_v14 }
 0x1ed   :  { %v3881_v10 = vadd.f32 %v3708_v54, %v9159_v15  ;;  %v3887_v15 = vperm.slane %v9665_v2, 1 }
 0x1ee   :  { %v3925_v3 = vrot.slane %v3919_v12, 4 }
 0x1ef   :  { %v3895_v21 = vadd.f32 %v3886_v46, %v3881_v10 }
 0x1f0   :  { %v3721_v8 = vpop.f32.mrf.mxu2  ;;  %v3926_v39 = vadd.f32 %v3925_v3, %v3919_v12  ;;  %v3888_v3 = vperm.slane %v9665_v2, 2 }
 0x1f1   :  { %v3735_v23 = vpop.f32.mrf.mxu3  ;;  %v3907_v47 = vmul.f32 0.01, %v3895_v21  ;;  %vm3901_vm7 = vcmp.gt.f32.partialorder %v3895_v21, 0.0 }
 0x1f2   :  { %v3736_v0 = vadd.f32 %v3735_v23, %v3721_v8  ;;  %v3927_v59 = vrot.slane %v3926_v39, 2 }
 0x1f3   :  { %v3913_v29 = vsel %vm3901_vm7, %v3895_v21, %v3907_v47 }
 0x1f4   :  { %v3922_v60 = vmul.f32 %v3916_v20, %v3913_v29  ;;  %v3928_v18 = vadd.f32 %v3927_v59, %v3926_v39 }
 0x1f6   :  { %v3945_v36 = vrot.slane %v3922_v60, 4  ;;  %v3929_v40 = vrot.slane %v3928_v18, 1 }
 0x1f8   :  { %v3946_v56 = vadd.f32 %v3945_v36, %v3922_v60  ;;  %v3930_v8 = vadd.f32 %v3929_v40, %v3928_v18 }
 0x1fa   :  { %v3947_v1 = vrot.slane %v3946_v56, 2 }
 0x200   :  { %v3747_v13 = vpop.f32.mrf.mxu0 }
 0x201   :  { %v3761_v52 = vpop.f32.mrf.mxu1  ;;  %v3748_v45 = vadd.f32 %v3747_v13, %v3734_v32 }
 0x203   :  { %v3762_v53 = vadd.f32 %v3761_v52, %v3748_v45 }
 0x208   :  { %v3775_v27 = vpop.f32.mrf.mxu2  ;;  %v3749_v24 = vpop.f32.mrf.mxu0 }
 0x209   :  { %v3776_v6 = vadd.f32 %v3775_v27, %v3762_v53  ;;  %v3789_v7 = vpop.f32.mrf.mxu3  ;;  %v3763_v31 = vpop.f32.mrf.mxu1  ;;  %v3750_v48 = vadd.f32 %v3749_v24, %v3736_v0 }
 0x20b   :  { %v3790_v28 = vadd.f32 %v3789_v7, %v3776_v6  ;;  %v3764_v25 = vadd.f32 %v3763_v31, %v3750_v48 }
 0x20d   :  { %v3879_v55 = vadd.f32 %v3790_v28, %v9464_v26 }
 0x20f   :  { %v3893_v19 = vadd.f32 %v3887_v15, %v3879_v55 }
 0x210   :  { %v3777_v37 = vpop.f32.mrf.mxu2 }
 0x211   :  { %vm3899_vm8 = vcmp.gt.f32.partialorder %v3893_v19, 0.0  ;;  %v3905_v30 = vmul.f32 0.01, %v3893_v19  ;;  %v3778_v38 = vadd.f32 %v3777_v37, %v3764_v25  ;;  %v3791_v50 = vpop.f32.mrf.mxu3 }
 0x213   :  { %v3911_v35 = vsel %vm3899_vm8, %v3893_v19, %v3905_v30  ;;  %v3792_v57 = vadd.f32 %v3791_v50, %v3778_v38  ;;  %v3918_v38 = vld [vmem:[%s9693_s3 + $0x10] sm:$0xff]  ;;  %s6628_s3 = smov [#allocation2]  }
 0x214   :  { %v3920_v58 = vmul.f32 %v3917_v33, %v3911_v35  ;;  %s4004_s10 = sshll.u32 %s6628_s3, 4  ;;  %s4005_s10 = int_to_ptr.vmem [resolvable:$true] %s4004_s10 }
 0x215   :  { %v3882_v26 = vadd.f32 %v3792_v57, %v9518_v11  ;;  %v3948_v11 = vadd.f32 %v3947_v1, %v3946_v56 }
 0x216   :  { %v3931_v61 = vrot.slane %v3920_v58, 4 }
 0x217   :  { %v3896_v62 = vadd.f32 %v3887_v15, %v3882_v26  ;;  %v3949_v23 = vrot.slane %v3948_v11, 1 }
 0x218   :  { %v3932_v22 = vadd.f32 %v3931_v61, %v3920_v58 }
 0x219   :  { %vm3902_vm9 = vcmp.gt.f32.partialorder %v3896_v62, 0.0  ;;  %v3908_v16 = vmul.f32 0.01, %v3896_v62  ;;  %v3950_v13 = vadd.f32 %v3949_v23, %v3948_v11 }
 0x21a   :  { %v3933_v42 = vrot.slane %v3932_v22, 2 }
 0x21b   :  { %v3914_v17 = vsel %vm3902_vm9, %v3896_v62, %v3908_v16 }
 0x21c   :  { %v3934_v63 = vadd.f32 %v3933_v42, %v3932_v22  ;;  %v3923_v51 = vmul.f32 %v3917_v33, %v3914_v17 }
 0x21e   :  { %v3935_v43 = vrot.slane %v3934_v63, 1  ;;  %v3951_v49 = vrot.slane %v3923_v51, 4 }
 0x220   :  { %v3952_v46 = vadd.f32 %v3951_v49, %v3923_v51  ;;  %v3936_v4 = vadd.f32 %v3935_v43, %v3934_v63  ;;  %v3803_v45 = vpop.f32.mrf.mxu0 }
 0x221   :  { %v3817_v53 = vpop.f32.mrf.mxu1 }
 0x222   :  { %v3953_v5 = vrot.slane %v3952_v46, 2  ;;  %v3970_v9 = vrot.slane %v3936_v4, 6  ;;  %v3818_v21 = vadd.f32 %v3817_v53, %v3803_v45 }
 0x224   :  { %v3954_v54 = vadd.f32 %v3953_v5, %v3952_v46  ;;  %v3975_v32 = vsel %vm3974_vm10, %v3930_v8, %v3970_v9 }
 0x226   :  { %v3955_v34 = vrot.slane %v3954_v54, 1 }
 0x228   :  { %v3956_v10 = vadd.f32 %v3955_v34, %v3954_v54  ;;  %v3831_v20 = vpop.f32.mrf.mxu2  ;;  %v3805_v0 = vpop.f32.mrf.mxu0 }
 0x229   :  { %v3819_v27 = vpop.f32.mrf.mxu1  ;;  %v3845_v6 = vpop.f32.mrf.mxu3  ;;  %v3832_v12 = vadd.f32 %v3831_v20, %v3818_v21 }
 0x22a   :  { %v3972_v52 = vrot.slane %v3956_v10, 6  ;;  %v3820_v47 = vadd.f32 %v3819_v27, %v3805_v0 }
 0x22b   :  { %v3846_v7 = vadd.f32 %v3845_v6, %v3832_v12 }
 0x22c   :  { %v3978_v14 = vsel %vm3974_vm10, %v3950_v13, %v3972_v52 }
 0x230   :  { %v3833_v28 = vpop.f32.mrf.mxu2 }
 0x231   :  { %v3834_v48 = vadd.f32 %v3833_v28, %v3820_v47  ;;  %v3847_v25 = vpop.f32.mrf.mxu3 }
 0x233   :  { %v3848_v19 = vadd.f32 %v3847_v25, %v3834_v48 }
 0x240   :  { %v3859_v15 = vpop.f32.mrf.mxu0 }
 0x241   :  { %v3873_v24 = vpop.f32.mrf.mxu1  ;;  %v3860_v31 = vadd.f32 %v3859_v15, %v3846_v7 }
 0x243   :  { %v3874_v55 = vadd.f32 %v3873_v24, %v3860_v31 }
 0x245   :  { %v3880_v29 = vadd.f32 %v3874_v55, %v9634_v44 }
 0x247   :  { %v3894_v37 = vadd.f32 %v3888_v3, %v3880_v29 }
 0x248   :  { %v3861_v30 = vpop.f32.mrf.mxu0 }
 0x249   :  { %vm3900_vm11 = vcmp.gt.f32.partialorder %v3894_v37, 0.0  ;;  %v3906_v33 = vmul.f32 0.01, %v3894_v37  ;;  %v3862_v39 = vadd.f32 %v3861_v30, %v3848_v19  ;;  %v3875_v60 = vpop.f32.mrf.mxu1 }
 0x24b   :  { %v3912_v50 = vsel %vm3900_vm11, %v3894_v37, %v3906_v33  ;;  %v3876_v35 = vadd.f32 %v3875_v60, %v3862_v39 }
 0x24c   :  { %v3921_v57 = vmul.f32 %v3918_v38, %v3912_v50 }
 0x24d   :  { %v3883_v2 = vadd.f32 %v3876_v35, %v9657_v41 }
 0x24e   :  { %v3938_v58 = vsel %vm3937_vm12, %v3921_v57, 0.0 }
 0x24f   :  { %v3939_v26 = vrot.slane %v3938_v58, 4  ;;  %v3897_v44 = vadd.f32 %v3888_v3, %v3883_v2 }
 0x251   :  { %v3940_v59 = vadd.f32 %v3939_v26, %v3938_v58  ;;  %vm3903_vm13 = vcmp.gt.f32.partialorder %v3897_v44, 0.0  ;;  %v3909_v36 = vmul.f32 0.01, %v3897_v44 }
 0x253   :  { %v3941_v61 = vrot.slane %v3940_v59, 2  ;;  %v3915_v62 = vsel %vm3903_vm13, %v3897_v44, %v3909_v36 }
 0x254   :  { %v3924_v22 = vmul.f32 %v3918_v38, %v3915_v62 }
 0x255   :  { %v3942_v16 = vadd.f32 %v3941_v61, %v3940_v59 }
 0x256   :  { %v3957_v18 = vsel %vm3937_vm12, %v3924_v22, 0.0 }
 0x257   :  { %v3943_v56 = vrot.slane %v3942_v16, 1  ;;  %v3958_v42 = vrot.slane %v3957_v18, 4 }
 0x259   :  { %v3944_v17 = vadd.f32 %v3943_v56, %v3942_v16  ;;  %v3959_v63 = vadd.f32 %v3958_v42, %v3957_v18 }
 0x25b   :  { %v3960_v51 = vrot.slane %v3959_v63, 2  ;;  %v3971_v40 = vrot.slane %v3944_v17, 4 }
 0x25d   :  { %v3961_v1 = vadd.f32 %v3960_v51, %v3959_v63  ;;  %v3977_v41 = vsel %vm3976_vm14, %v3975_v32, %v3971_v40 }
 0x25f   :  { %v3962_v43 = vrot.slane %v3961_v1, 1 }
 0x261   :  { %v3963_v49 = vadd.f32 %v3962_v43, %v3961_v1 }
 0x263   :  { %v3973_v46 = vrot.slane %v3963_v49, 4 }
 0x265   :  { %v3979_v4 = vsel %vm3976_vm14, %v3978_v14, %v3973_v46 }
 0x266   :  { %v3984_v11 = vrot.slane %v3979_v4, 7 }
 0x268   :  { %v3986_v5 = vsel %vm3985_vm0, %v3984_v11, %v3977_v41 }
 0x269   :  { %v3988_v8 = vsel %vm3987_vm1, %v3984_v11, %v3986_v5 }
 0x26a   :  { %v3990_v9 = vsel %vm3989_vm4, %v3984_v11, %v3988_v8 }
 0x26b   :  { %v3992_v54 = vsel %vm3991_vm5, %v3984_v11, %v3990_v9 }
 0x26c   :  { %3998 = vst.msk [vmem:[#allocation2] sm:$0x3f] %vm3997_vm6, %v3992_v54 }
 0x26d   :  { %4009 = dma.vmem_to_hbm [thread:$0]  %s4005_s10, 96, %s4007_s13, [#allocation3]  }
 0x26e   :  { %6626 = dma.done.wait [#allocation3], 96  }
 0x26f   :  { %6627 = vsyncadd [#allocation3], 4294967200 }
 0x270   :  { %4014 = vsyncpa [#allocation3], 1 }

</bundles_post_ra>
